<compile_context>
chip_gen: v5e
topology: v5e:2x2
jax: 0.10.0
libtpu: 0.0.40
codegen_flags: <defaults>
</compile_context>

<pallas_src>
import jax
import jax.numpy as jnp
from jax import lax
from jax.experimental import pallas as pl
from jax.experimental.pallas import tpu as pltpu

# ---- problem sizes (small, consistent with the module's forward) -------------
B = 2               # dialogue batch
SAMPLE_NUMS = 10    # self.sample_nums in the module
SEQ = 16            # sequence length
HIDDEN = 128        # config.hidden_size
VOCAB = 100
TEMPERATURE = 0.1   # args.temperature
AVG_EPS = 1e-6      # BertAVG(eps=1e-06)
COS_EPS = 1e-8      # torch.cosine_similarity default eps


def _gelu(x):
    # TODO(synk): HuggingFace BERT's default GELU is the exact erf form; the
    # tanh approximation is used here -> tiny numerical drift vs the reference.
    return 0.5 * x * (1.0 + jnp.tanh(0.7978845608028654 * (x + 0.044715 * x * x * x)))


# ---- fused kernel: encoder tail + BertAVG + cosine logits + loss -------------
def _fused_kernel(emb_ref, w1_ref, b1_ref, masks_ref, labels_ref,
                  feat_ref, logits_ref, loss_ref):
    _, b, sn, s = masks_ref.shape
    h = feat_ref.shape[-1]

    # --- synthetic encoder hot path: LayerNorm -> dense (bf16 MXU) -> GELU ----
    x = emb_ref[...]                                        # (b*sn*s, h) f32
    mu = jnp.mean(x, axis=-1, keepdims=True)
    var = jnp.mean(x * x, axis=-1, keepdims=True) - mu * mu
    xn = (x - mu) * lax.rsqrt(var + 1e-12)
    y = jnp.dot(xn.astype(jnp.bfloat16), w1_ref[...].astype(jnp.bfloat16),
                preferred_element_type=jnp.float32) + b1_ref[...]
    hs = _gelu(y).reshape(b, sn, s, h)                      # self_output (stays on-chip)

    # --- BertAVG masked averages (masks are {0,1}: single multiply) -----------
    def masked_avg(hidden, m, axis):
        num = jnp.sum(hidden * m[..., None], axis=axis)
        den = jnp.sum(m, axis=axis, keepdims=True) + AVG_EPS
        return num / den

    q = masked_avg(hs, masks_ref[1], axis=2)                # role-A   (b, sn, h)
    r = masked_avg(hs, masks_ref[2], axis=2)                # role-B   (b, sn, h)

    # final_feature = BertAVG(full mask) at sample index 0 only (rest unused)
    feat_ref[...] = masked_avg(hs[:, 0], masks_ref[0][:, 0], axis=1)   # (b, h)

    # --- cosine similarity / temperature (torch-style product clamp) ----------
    dot = jnp.sum(q * r, axis=-1)                           # (b, sn)
    qq = jnp.sum(q * q, axis=-1)
    rr = jnp.sum(r * r, axis=-1)
    inv = lax.rsqrt(jnp.maximum(qq * rr, COS_EPS * COS_EPS))
    logits = dot * inv * (1.0 / TEMPERATURE)
    logits_ref[...] = logits

    # --- loss = -mean(log_softmax(logits, -1) * labels) ------------------------
    m = jnp.max(logits, axis=-1, keepdims=True)
    z = logits - m
    lse = jnp.log(jnp.sum(jnp.exp(z), axis=-1, keepdims=True))
    loss_ref[0, 0] = -jnp.mean((z - lse) * labels_ref[...])


def qnqcde_fused(emb_flat, w1, b1, masks, labels):
    _, b, sn, _ = masks.shape
    h = w1.shape[-1]
    vmem = pl.BlockSpec(memory_space=pltpu.MemorySpace.VMEM)
    smem = pl.BlockSpec(memory_space=pltpu.MemorySpace.SMEM)
    feat, logits, loss = pl.pallas_call(
        _fused_kernel,
        out_shape=(
            jax.ShapeDtypeStruct((b, h), jnp.float32),      # final_feature
            jax.ShapeDtypeStruct((b, sn), jnp.float32),     # logits_apn
            jax.ShapeDtypeStruct((1, 1), jnp.float32),      # loss (scalar)
        ),
        in_specs=[vmem, vmem, vmem, vmem, vmem],
        out_specs=(vmem, vmem, smem),
    )(emb_flat, w1, b1, masks, labels)
    return feat, logits, loss[0, 0]


# ---- parameters (deterministic synthetic init) --------------------------------
def init_params(key):
    ks = jax.random.split(key, 5)
    sd = 0.02
    return {
        "word_emb": sd * jax.random.normal(ks[0], (VOCAB, HIDDEN), jnp.float32),
        "pos_emb": sd * jax.random.normal(ks[1], (SEQ, HIDDEN), jnp.float32),
        "type_emb": sd * jax.random.normal(ks[2], (2, HIDDEN), jnp.float32),
        "W1": sd * jax.random.normal(ks[3], (HIDDEN, HIDDEN), jnp.float32),
        "b1": jnp.zeros((1, HIDDEN), jnp.float32),
    }


# ---- full forward (mirrors QNQCDE.forward, strategy='mean_by_role') ----------
def qnqcde_forward(params, data):
    (input_ids, attention_mask, token_type_ids, role_ids,
     turn_ids, position_ids, labels) = data

    b = input_ids.shape[0]
    sn = input_ids.shape[1]
    n = b * sn
    s = input_ids.shape[-1]

    input_ids = input_ids.reshape(n, s)
    attention_mask = attention_mask.reshape(n, s)
    token_type_ids = token_type_ids.reshape(n, s)
    role_ids = role_ids.reshape(n, s)
    position_ids = position_ids.reshape(n, s)
    # turn_ids are consumed only by the 'plato' backbone path -> unused here.

    one_mask = jnp.ones_like(role_ids)
    zero_mask = jnp.zeros_like(role_ids)
    role_a_mask = jnp.where(role_ids == 0, one_mask, zero_mask)
    role_b_mask = jnp.where(role_ids == 1, one_mask, zero_mask)
    att_f = attention_mask.astype(jnp.float32)
    a_att = (attention_mask * role_a_mask).astype(jnp.float32)
    b_att = (attention_mask * role_b_mask).astype(jnp.float32)
    # all three BertAVG masks DMA'd as one operand: (3, b, sn, s)
    masks = jnp.stack([att_f, a_att, b_att], axis=0).reshape(3, b, sn, s)

    # ---- synthetic encoder embeddings ----------------------------------------
    # TODO(synk): pretrained HuggingFace BERT encoder replaced by a deterministic
    # synthetic encoder (embedding gather in JAX glue; LayerNorm+dense+GELU fused
    # into the Pallas kernel). No self-attention over attention_mask is performed.
    emb = (params["word_emb"][input_ids]
           + params["pos_emb"][position_ids]
           + params["type_emb"][token_type_ids]).astype(jnp.float32)
    emb_flat = emb.reshape(n * s, HIDDEN)

    # TODO(synk): the reference also computes a BERT pooled_output that is
    # reshaped but never used or returned on this path -- dead compute, dropped.
    feat, logits, loss = qnqcde_fused(emb_flat, params["W1"], params["b1"],
                                      masks, labels.astype(jnp.float32))

    return {"loss": loss, "final_feature": feat, "logits_apn": logits}


if __name__ == "__main__":
    key = jax.random.PRNGKey(0)
    kp, k1, k2, k3 = jax.random.split(key, 4)

    params = init_params(kp)

    input_ids = jax.random.randint(k1, (B, SAMPLE_NUMS, SEQ), 0, VOCAB, dtype=jnp.int32)
    lengths = jax.random.randint(k2, (B, SAMPLE_NUMS, 1), SEQ // 2, SEQ + 1)
    attention_mask = (jnp.arange(SEQ)[None, None, :] < lengths).astype(jnp.int32)
    token_type_ids = jnp.zeros((B, SAMPLE_NUMS, SEQ), jnp.int32)
    role_ids = jax.random.randint(k3, (B, SAMPLE_NUMS, SEQ), 0, 2, dtype=jnp.int32)
    turn_ids = jnp.zeros((B, SAMPLE_NUMS, SEQ), jnp.int32)
    position_ids = jnp.broadcast_to(jnp.arange(SEQ, dtype=jnp.int32),
                                    (B, SAMPLE_NUMS, SEQ))
    labels = jnp.zeros((B, SAMPLE_NUMS), jnp.float32).at[:, 0].set(1.0)

    data = (input_ids, attention_mask, token_type_ids, role_ids,
            turn_ids, position_ids, labels)

    out = qnqcde_forward(params, data)
    out = jax.block_until_ready(out)

    assert out["final_feature"].shape == (B, HIDDEN)
    assert out["logits_apn"].shape == (B, SAMPLE_NUMS)
    assert out["loss"].shape == ()
    assert bool(jnp.isfinite(out["loss"]))
    print("KERNEL_OK")
</pallas_src>

<mosaic_0001>
module attributes {stable_mosaic.version = 11 : i64} {
  func.func @_fused_kernel(%arg0: memref<320x128xf32, #tpu.memory_space<vmem>>, %arg1: memref<128x128xf32, #tpu.memory_space<vmem>>, %arg2: memref<1x128xf32, #tpu.memory_space<vmem>>, %arg3: memref<3x2x10x16xf32, #tpu.memory_space<vmem>>, %arg4: memref<2x10xf32, #tpu.memory_space<vmem>>, %arg5: memref<2x128xf32, #tpu.memory_space<vmem>>, %arg6: memref<2x10xf32, #tpu.memory_space<vmem>>, %arg7: memref<1x1xf32, #tpu.memory_space<smem>>) attributes {dimension_semantics = [], scalar_prefetch = 0 : i64, scratch_operands = 0 : i64, tpu.core_type = #tpu.core_type<tc>} {
    %c0 = arith.constant 0 : index
    %c0_0 = arith.constant 0 : index
    %0 = vector.load %arg0[%c0, %c0_0] : memref<320x128xf32, #tpu.memory_space<vmem>>, vector<320x128xf32>
    %cst = arith.constant dense<0.000000e+00> : vector<320xf32>
    %1 = vector.multi_reduction <add>, %0, %cst [1] : vector<320x128xf32> to vector<320xf32>
    %2 = vector.shape_cast %1 : vector<320xf32> to vector<320x1xf32>
    %cst_1 = arith.constant 1.280000e+02 : f32
    %3 = vector.broadcast %cst_1 : f32 to vector<320x1xf32>
    %4 = arith.divf %2, %3 : vector<320x1xf32>
    %5 = arith.mulf %0, %0 : vector<320x128xf32>
    %cst_2 = arith.constant dense<0.000000e+00> : vector<320xf32>
    %6 = vector.multi_reduction <add>, %5, %cst_2 [1] : vector<320x128xf32> to vector<320xf32>
    %7 = vector.shape_cast %6 : vector<320xf32> to vector<320x1xf32>
    %cst_3 = arith.constant 1.280000e+02 : f32
    %8 = vector.broadcast %cst_3 : f32 to vector<320x1xf32>
    %9 = arith.divf %7, %8 : vector<320x1xf32>
    %10 = arith.mulf %4, %4 : vector<320x1xf32>
    %11 = arith.subf %9, %10 : vector<320x1xf32>
    %12 = vector.broadcast %4 : vector<320x1xf32> to vector<320x128xf32>
    %13 = arith.subf %0, %12 : vector<320x128xf32>
    %cst_4 = arith.constant 9.99999996E-13 : f32
    %14 = vector.broadcast %cst_4 : f32 to vector<320x1xf32>
    %15 = arith.addf %11, %14 : vector<320x1xf32>
    %16 = math.rsqrt %15 : vector<320x1xf32>
    %17 = vector.broadcast %16 : vector<320x1xf32> to vector<320x128xf32>
    %18 = arith.mulf %13, %17 : vector<320x128xf32>
    %19 = arith.truncf %18 : vector<320x128xf32> to vector<320x128xbf16>
    %c0_5 = arith.constant 0 : index
    %c0_6 = arith.constant 0 : index
    %20 = vector.load %arg1[%c0_5, %c0_6] : memref<128x128xf32, #tpu.memory_space<vmem>>, vector<128x128xf32>
    %21 = arith.truncf %20 : vector<128x128xf32> to vector<128x128xbf16>
    %cst_7 = arith.constant dense<0.000000e+00> : vector<320x128xf32>
    %22 = tpu.matmul %19, %21, %cst_7 {dimension_numbers = #tpu.dot_dimension_numbers<[1], [0], [0], [1], [0, 0, 1, 1], [], []>} : vector<320x128xbf16>, vector<128x128xbf16>, vector<320x128xf32> -> vector<320x128xf32>
    %c0_8 = arith.constant 0 : index
    %c0_9 = arith.constant 0 : index
    %23 = vector.load %arg2[%c0_8, %c0_9] : memref<1x128xf32, #tpu.memory_space<vmem>>, vector<1x128xf32>
    %24 = vector.broadcast %23 : vector<1x128xf32> to vector<320x128xf32>
    %25 = arith.addf %22, %24 : vector<320x128xf32>
    %cst_10 = arith.constant 5.000000e-01 : f32
    %26 = vector.broadcast %cst_10 : f32 to vector<320x128xf32>
    %27 = arith.mulf %26, %25 : vector<320x128xf32>
    %cst_11 = arith.constant 4.471500e-02 : f32
    %28 = vector.broadcast %cst_11 : f32 to vector<320x128xf32>
    %29 = arith.mulf %28, %25 : vector<320x128xf32>
    %30 = arith.mulf %29, %25 : vector<320x128xf32>
    %31 = arith.mulf %30, %25 : vector<320x128xf32>
    %32 = arith.addf %25, %31 : vector<320x128xf32>
    %cst_12 = arith.constant 0.797884583 : f32
    %33 = vector.broadcast %cst_12 : f32 to vector<320x128xf32>
    %34 = arith.mulf %33, %32 : vector<320x128xf32>
    %35 = math.tanh %34 : vector<320x128xf32>
    %cst_13 = arith.constant 1.000000e+00 : f32
    %36 = vector.broadcast %cst_13 : f32 to vector<320x128xf32>
    %37 = arith.addf %36, %35 : vector<320x128xf32>
    %38 = arith.mulf %27, %37 : vector<320x128xf32>
    %39 = vector.shape_cast %38 : vector<320x128xf32> to vector<2x10x16x128xf32>
    %c1 = arith.constant 1 : index
    %c0_14 = arith.constant 0 : index
    %c0_15 = arith.constant 0 : index
    %c0_16 = arith.constant 0 : index
    %40 = vector.load %arg3[%c1, %c0_14, %c0_15, %c0_16] : memref<3x2x10x16xf32, #tpu.memory_space<vmem>>, vector<1x2x10x16xf32>
    %41 = vector.shape_cast %40 : vector<1x2x10x16xf32> to vector<2x10x16xf32>
    %42 = vector.shape_cast %41 : vector<2x10x16xf32> to vector<2x10x16x1xf32>
    %43 = vector.broadcast %42 : vector<2x10x16x1xf32> to vector<2x10x16x128xf32>
    %44 = arith.mulf %39, %43 : vector<2x10x16x128xf32>
    %cst_17 = arith.constant dense<0.000000e+00> : vector<2x10x128xf32>
    %45 = vector.multi_reduction <add>, %44, %cst_17 [2] : vector<2x10x16x128xf32> to vector<2x10x128xf32>
    %cst_18 = arith.constant dense<0.000000e+00> : vector<2x10xf32>
    %46 = vector.multi_reduction <add>, %41, %cst_18 [2] : vector<2x10x16xf32> to vector<2x10xf32>
    %47 = vector.shape_cast %46 : vector<2x10xf32> to vector<2x10x1xf32>
    %cst_19 = arith.constant 9.99999997E-7 : f32
    %48 = vector.broadcast %cst_19 : f32 to vector<2x10x1xf32>
    %49 = arith.addf %47, %48 : vector<2x10x1xf32>
    %50 = vector.broadcast %49 : vector<2x10x1xf32> to vector<2x10x128xf32>
    %51 = arith.divf %45, %50 : vector<2x10x128xf32>
    %c2 = arith.constant 2 : index
    %c0_20 = arith.constant 0 : index
    %c0_21 = arith.constant 0 : index
    %c0_22 = arith.constant 0 : index
    %52 = vector.load %arg3[%c2, %c0_20, %c0_21, %c0_22] : memref<3x2x10x16xf32, #tpu.memory_space<vmem>>, vector<1x2x10x16xf32>
    %53 = vector.shape_cast %52 : vector<1x2x10x16xf32> to vector<2x10x16xf32>
    %54 = vector.shape_cast %53 : vector<2x10x16xf32> to vector<2x10x16x1xf32>
    %55 = vector.broadcast %54 : vector<2x10x16x1xf32> to vector<2x10x16x128xf32>
    %56 = arith.mulf %39, %55 : vector<2x10x16x128xf32>
    %cst_23 = arith.constant dense<0.000000e+00> : vector<2x10x128xf32>
    %57 = vector.multi_reduction <add>, %56, %cst_23 [2] : vector<2x10x16x128xf32> to vector<2x10x128xf32>
    %cst_24 = arith.constant dense<0.000000e+00> : vector<2x10xf32>
    %58 = vector.multi_reduction <add>, %53, %cst_24 [2] : vector<2x10x16xf32> to vector<2x10xf32>
    %59 = vector.shape_cast %58 : vector<2x10xf32> to vector<2x10x1xf32>
    %cst_25 = arith.constant 9.99999997E-7 : f32
    %60 = vector.broadcast %cst_25 : f32 to vector<2x10x1xf32>
    %61 = arith.addf %59, %60 : vector<2x10x1xf32>
    %62 = vector.broadcast %61 : vector<2x10x1xf32> to vector<2x10x128xf32>
    %63 = arith.divf %57, %62 : vector<2x10x128xf32>
    %64 = vector.extract_strided_slice %39 {offsets = [0, 0, 0, 0], sizes = [2, 1, 16, 128], strides = [1, 1, 1, 1]} : vector<2x10x16x128xf32> to vector<2x1x16x128xf32>
    %65 = vector.shape_cast %64 : vector<2x1x16x128xf32> to vector<2x16x128xf32>
    %c0_26 = arith.constant 0 : index
    %c0_27 = arith.constant 0 : index
    %c0_28 = arith.constant 0 : index
    %c0_29 = arith.constant 0 : index
    %66 = vector.load %arg3[%c0_26, %c0_27, %c0_28, %c0_29] : memref<3x2x10x16xf32, #tpu.memory_space<vmem>>, vector<1x2x10x16xf32>
    %67 = vector.shape_cast %66 : vector<1x2x10x16xf32> to vector<2x10x16xf32>
    %68 = vector.extract_strided_slice %67 {offsets = [0, 0, 0], sizes = [2, 1, 16], strides = [1, 1, 1]} : vector<2x10x16xf32> to vector<2x1x16xf32>
    %69 = vector.shape_cast %68 : vector<2x1x16xf32> to vector<2x16xf32>
    %70 = vector.shape_cast %69 : vector<2x16xf32> to vector<2x16x1xf32>
    %71 = vector.broadcast %70 : vector<2x16x1xf32> to vector<2x16x128xf32>
    %72 = arith.mulf %65, %71 : vector<2x16x128xf32>
    %cst_30 = arith.constant dense<0.000000e+00> : vector<2x128xf32>
    %73 = vector.multi_reduction <add>, %72, %cst_30 [1] : vector<2x16x128xf32> to vector<2x128xf32>
    %cst_31 = arith.constant dense<0.000000e+00> : vector<2xf32>
    %74 = vector.multi_reduction <add>, %69, %cst_31 [1] : vector<2x16xf32> to vector<2xf32>
    %75 = vector.shape_cast %74 : vector<2xf32> to vector<2x1xf32>
    %cst_32 = arith.constant 9.99999997E-7 : f32
    %76 = vector.broadcast %cst_32 : f32 to vector<2x1xf32>
    %77 = arith.addf %75, %76 : vector<2x1xf32>
    %78 = vector.broadcast %77 : vector<2x1xf32> to vector<2x128xf32>
    %79 = arith.divf %73, %78 : vector<2x128xf32>
    %c0_33 = arith.constant 0 : index
    %c0_34 = arith.constant 0 : index
    %80 = vector.load %arg5[%c0_33, %c0_34] : memref<2x128xf32, #tpu.memory_space<vmem>>, vector<2x128xf32>
    tpu.vector_store %arg5[%c0_33, %c0_34], %79 {strides = array<i32>} : memref<2x128xf32, #tpu.memory_space<vmem>>, vector<2x128xf32>,
    %81 = arith.mulf %51, %63 : vector<2x10x128xf32>
    %cst_35 = arith.constant dense<0.000000e+00> : vector<2x10xf32>
    %82 = vector.multi_reduction <add>, %81, %cst_35 [2] : vector<2x10x128xf32> to vector<2x10xf32>
    %83 = arith.mulf %51, %51 : vector<2x10x128xf32>
    %cst_36 = arith.constant dense<0.000000e+00> : vector<2x10xf32>
    %84 = vector.multi_reduction <add>, %83, %cst_36 [2] : vector<2x10x128xf32> to vector<2x10xf32>
    %85 = arith.mulf %63, %63 : vector<2x10x128xf32>
    %cst_37 = arith.constant dense<0.000000e+00> : vector<2x10xf32>
    %86 = vector.multi_reduction <add>, %85, %cst_37 [2] : vector<2x10x128xf32> to vector<2x10xf32>
    %87 = arith.mulf %84, %86 : vector<2x10xf32>
    %cst_38 = arith.constant 1.000000e-16 : f32
    %88 = vector.broadcast %cst_38 : f32 to vector<2x10xf32>
    %89 = arith.maximumf %87, %88 : vector<2x10xf32>
    %90 = math.rsqrt %89 : vector<2x10xf32>
    %91 = arith.mulf %82, %90 : vector<2x10xf32>
    %cst_39 = arith.constant 1.000000e+01 : f32
    %92 = vector.broadcast %cst_39 : f32 to vector<2x10xf32>
    %93 = arith.mulf %91, %92 : vector<2x10xf32>
    %c0_40 = arith.constant 0 : index
    %c0_41 = arith.constant 0 : index
    %94 = vector.load %arg6[%c0_40, %c0_41] : memref<2x10xf32, #tpu.memory_space<vmem>>, vector<2x10xf32>
    tpu.vector_store %arg6[%c0_40, %c0_41], %93 {strides = array<i32>} : memref<2x10xf32, #tpu.memory_space<vmem>>, vector<2x10xf32>,
    %cst_42 = arith.constant dense<0xFF800000> : vector<2xf32>
    %95 = vector.multi_reduction <maximumf>, %93, %cst_42 [1] : vector<2x10xf32> to vector<2xf32>
    %96 = vector.shape_cast %95 : vector<2xf32> to vector<2x1xf32>
    %97 = vector.broadcast %96 : vector<2x1xf32> to vector<2x10xf32>
    %98 = arith.subf %93, %97 : vector<2x10xf32>
    %99 = math.exp %98 : vector<2x10xf32>
    %cst_43 = arith.constant dense<0.000000e+00> : vector<2xf32>
    %100 = vector.multi_reduction <add>, %99, %cst_43 [1] : vector<2x10xf32> to vector<2xf32>
    %101 = vector.shape_cast %100 : vector<2xf32> to vector<2x1xf32>
    %102 = math.log %101 : vector<2x1xf32>
    %103 = vector.broadcast %102 : vector<2x1xf32> to vector<2x10xf32>
    %104 = arith.subf %98, %103 : vector<2x10xf32>
    %c0_44 = arith.constant 0 : index
    %c0_45 = arith.constant 0 : index
    %105 = vector.load %arg4[%c0_44, %c0_45] : memref<2x10xf32, #tpu.memory_space<vmem>>, vector<2x10xf32>
    %106 = arith.mulf %104, %105 : vector<2x10xf32>
    %107 = vector.shape_cast %106 : vector<2x10xf32> to vector<1x2x10xf32>
    %cst_46 = arith.constant dense<0.000000e+00> : vector<1xf32>
    %108 = vector.multi_reduction <add>, %107, %cst_46 [1, 2] : vector<1x2x10xf32> to vector<1xf32>
    %109 = vector.shape_cast %108 : vector<1xf32> to vector<1x1x1xf32>
    %110 = vector.extract %109[0, 0, 0] : f32 from vector<1x1x1xf32>
    %cst_47 = arith.constant 2.000000e+01 : f32
    %111 = arith.divf %110, %cst_47 : f32
    %cst_48 = arith.constant 0.000000e+00 : f32
    %112 = arith.subf %cst_48, %111 : f32
    %c0_49 = arith.constant 0 : index
    %c0_50 = arith.constant 0 : index
    %113 = memref.load %arg7[%c0_49, %c0_50] : memref<1x1xf32, #tpu.memory_space<smem>>
    memref.store %112, %arg7[%c0_49, %c0_50] : memref<1x1xf32, #tpu.memory_space<smem>>
    return
  }
}

</mosaic_0001>

<bundles_post_ra>
// kernel: tpu_custom_call.1
= control target key start
LH: loop header
LB: loop body
LE: loop exit
PB: predicated region body
PF: predicated region fallthrough
CT: control target
= control target key end

     0   :  { %13 = vsyncpa [#allocation3], 0  ;;  %s8121_s0 = inlined_call_operand.hbm [shape: f32[320,128], index: 0, kind: input, shape index: {}]   ;;  %s8122_s1 = inlined_call_operand.vmem [shape: f32[128,128], index: 1, kind: input, shape index: {}]   ;;  %s8123_s2 = inlined_call_operand.vmem [shape: f32[1,128], index: 2, kind: input, shape index: {}]   ;;  %s8124_s3 = inlined_call_operand.vmem [shape: f32[3,2,10,16], index: 3, kind: input, shape index: {}]   ;;  %s8125_s4 = inlined_call_operand.vmem [shape: f32[2,10], index: 4, kind: input, shape index: {}]   ;;  %s8126_s5 = inlined_call_operand.hbm [shape: f32[2,128], index: 5, kind: output, shape index: {0}]   ;;  %s8127_s6 = inlined_call_operand.hbm [shape: f32[2,10], index: 6, kind: output, shape index: {1}]   ;;  %s8128_s7 = inlined_call_operand.hbm [shape: f32[1,1], index: 7, kind: output, shape index: {2}]  }
   0x1   :  { %14 = vsyncpa [#allocation4], 0 }
   0x2   :  { %15 = vsyncpa [#allocation8], 0 }
   0x3   :  { %16 = vsyncpa [#allocation5], 0  ;;  %s21_s26 = sshll.u32 %s8121_s0, 4  ;;  %s4166_s27 = smov [#allocation2]   ;;  %s22_s26 = int_to_ptr.hbm [resolvable:$true] %s21_s26 }
   0x4   :  { %s23_s28 = sshll.u32 %s4166_s27, 4  ;;  %s4167_s29 = smov 128   ;;  %s24_s28 = int_to_ptr.vmem [resolvable:$true] %s23_s28 }
   0x5   :  { %s4168_s30 = smov 8  }
   0x6   :  { %29 = dma.hbm_to_vmem [thread:$0]  %s22_s26, 5120, %s24_s28, [#allocation3], %s4167_s29, %s4167_s29, %s4168_s30  }
   0x7   :  { %4158 = dma.done.wait [#allocation3], 5120  }
   0x8   :  { %4159 = vsyncadd [#allocation3], 4294962176  ;;  %v4218_v0 = vld [vmem:[#allocation2 + $0x20] sm:$0xff]  ;;  %v4220_v1 = vld [vmem:[#allocation2 + $0x10] sm:$0xff]  ;;  %vm8280_vm0 = vcmask 123904   ;;  %vm1931_vm2 = vcmask 130048  }
   0x9   :  { %8281 = vst [vmem:[#allocation14_spill] sm:$0xff] %v4218_v0  ;;  %v4222_v2 = vld [vmem:[#allocation2] sm:$0xff]  ;;  %90 = vadd.xlane.f32.xlu2 %v4218_v0  ;;  %86 = vadd.xlane.f32.xlu1 %v4220_v1  ;;  %v4227_v3 = vld [vmem:[#allocation2 + $0x28] sm:$0xff]  ;;  %v4229_v4 = vld [vmem:[#allocation2 + $0x18] sm:$0xff]  ;;  %v213_v42 = vmul.f32 %v4218_v0, %v4218_v0  ;;  %v211_v44 = vmul.f32 %v4220_v1, %v4220_v1  ;;  %s3683_s28 = sshll.u32 %s8127_s6, 4  ;;  %s4173_s6 = smov [#allocation6]   ;;  %s3684_s28 = int_to_ptr.hbm [resolvable:$true] %s3683_s28 }
   0xa   :  { %82 = vadd.xlane.f32.xlu0 %v4222_v2  ;;  %8282 = vst [vmem:[#allocation15_spill] sm:$0xff] %v4227_v3  ;;  %v4231_v5 = vld [vmem:[#allocation2 + $0x8] sm:$0xff]  ;;  %v4236_v6 = vld [vmem:[#allocation2 + $0x40] sm:$0xff]  ;;  %v4238_v7 = vld [vmem:[#allocation2 + $0x38] sm:$0xff]  ;;  %v209_v40 = vmul.f32 %v4222_v2, %v4222_v2  ;;  %v212_v43 = vmul.f32 %v4229_v4, %v4229_v4  ;;  %v214_v50 = vmul.f32 %v4227_v3, %v4227_v3  ;;  %s3670_s29 = sshll.u32 %s4173_s6, 4  ;;  %s3672_s8 = sshll.u32 %s8126_s5, 4  ;;  %s3671_s29 = int_to_ptr.vmem [resolvable:$true] %s3670_s29  ;;  %s3673_s8 = int_to_ptr.hbm [resolvable:$true] %s3672_s8 }
   0xb   :  { %8283 = vst [vmem:[#allocation16_spill] sm:$0xff] %v4236_v6  ;;  %v4240_v8 = vld [vmem:[#allocation2 + $0x30] sm:$0xff]  ;;  %v4245_v9 = vld [vmem:[#allocation2 + $0x58] sm:$0xff]  ;;  %v4249_v11 = vld [vmem:[#allocation2 + $0x48] sm:$0xff]  ;;  %v210_v39 = vmul.f32 %v4231_v5, %v4231_v5  ;;  %v216_v48 = vmul.f32 %v4238_v7, %v4238_v7  ;;  %v217_v56 = vmul.f32 %v4236_v6, %v4236_v6  ;;  %s3692_s13 = sshll.u32 %s8128_s7, 4  ;;  %s4174_s16 = smov [#allocation9]   ;;  %s3693_s13 = int_to_ptr.hbm [resolvable:$true] %s3692_s13 }
   0xc   :  { %8284 = vst [vmem:[#allocation17_spill] sm:$0xff] %v4238_v7  ;;  %v4247_v10 = vld [vmem:[#allocation2 + $0x50] sm:$0xff]  ;;  %v4256_v13 = vld [vmem:[#allocation2 + $0x68] sm:$0xff]  ;;  %v4258_v14 = vld [vmem:[#allocation2 + $0x60] sm:$0xff]  ;;  %v215_v49 = vmul.f32 %v4240_v8, %v4240_v8  ;;  %v218_v55 = vmul.f32 %v4249_v11, %v4249_v11  ;;  %v220_v62 = vmul.f32 %v4245_v9, %v4245_v9 }
   0xd   :  { %8285 = vst [vmem:[#allocation18_spill] sm:$0xff] %v4249_v11  ;;  %v4254_v12 = vld [vmem:[#allocation2 + $0x70] sm:$0xff]  ;;  %v4263_v15 = vld [vmem:[#allocation2 + $0x88] sm:$0xff]  ;;  %v4265_v16 = vld [vmem:[#allocation2 + $0x80] sm:$0xff]  ;;  %v219_v54 = vmul.f32 %v4247_v10, %v4247_v10  ;;  %v222_v60 = vmul.f32 %v4256_v13, %v4256_v13  ;;  %v221_v61 = vmul.f32 %v4258_v14, %v4258_v14 }
   0xe   :  { %8286 = vst [vmem:[#allocation19_spill] sm:$0xff] %v4254_v12  ;;  %v4267_v17 = vld [vmem:[#allocation2 + $0x78] sm:$0xff]  ;;  %v4272_v18 = vld [vmem:[#allocation2 + $0xa0] sm:$0xff]  ;;  %v4276_v20 = vld [vmem:[#allocation2 + $0x90] sm:$0xff] }
   0xf   :  { %8287 = vst [vmem:[#allocation20_spill] sm:$0xff] %v4256_v13  ;;  %v4274_v19 = vld [vmem:[#allocation2 + $0x98] sm:$0xff]  ;;  %v4283_v22 = vld [vmem:[#allocation2 + $0xb0] sm:$0xff]  ;;  %v4285_v23 = vld [vmem:[#allocation2 + $0xa8] sm:$0xff] }
  0x10   :  { %8288 = vst [vmem:[#allocation21_spill] sm:$0xff] %v4258_v14  ;;  %v4281_v21 = vld [vmem:[#allocation2 + $0xb8] sm:$0xff]  ;;  %v4290_v24 = vld [vmem:[#allocation2 + $0xd0] sm:$0xff]  ;;  %v4292_v25 = vld [vmem:[#allocation2 + $0xc8] sm:$0xff] }
  0x11   :  { %92 = vadd.xlane.f32.xlu2 %v4227_v3  ;;  %88 = vadd.xlane.f32.xlu1 %v4229_v4  ;;  %8289 = vst [vmem:[#allocation22_spill] sm:$0xff] %v4263_v15  ;;  %v4294_v26 = vld [vmem:[#allocation2 + $0xc0] sm:$0xff]  ;;  %v4299_v27 = vld [vmem:[#allocation2 + $0xe8] sm:$0xff]  ;;  %v4303_v29 = vld [vmem:[#allocation2 + $0xd8] sm:$0xff] }
  0x12   :  { %84 = vadd.xlane.f32.xlu0 %v4231_v5  ;;  %8290 = vst [vmem:[#allocation23_spill] sm:$0xff] %v4265_v16  ;;  %v4301_v28 = vld [vmem:[#allocation2 + $0xe0] sm:$0xff]  ;;  %v4310_v31 = vld [vmem:[#allocation2 + $0xf8] sm:$0xff]  ;;  %v4312_v32 = vld [vmem:[#allocation2 + $0xf0] sm:$0xff] }
  0x13   :  { %8291 = vst [vmem:[#allocation24_spill] sm:$0xff] %v4267_v17  ;;  %v4308_v30 = vld [vmem:[#allocation2 + $0x100] sm:$0xff]  ;;  %v4317_v33 = vld [vmem:[#allocation2 + $0x118] sm:$0xff]  ;;  %v4319_v34 = vld [vmem:[#allocation2 + $0x110] sm:$0xff] }
  0x14   :  { %8292 = vst [vmem:[#allocation25_spill] sm:$0xff] %v4272_v18  ;;  %v4321_v35 = vld [vmem:[#allocation2 + $0x108] sm:$0xff]  ;;  %v4326_v36 = vld [vmem:[#allocation2 + $0x130] sm:$0xff]  ;;  %v4330_v38 = vld [vmem:[#allocation2 + $0x120] sm:$0xff] }
  0x15   :  { %8293 = vst [vmem:[#allocation26_spill] sm:$0xff] %v4274_v19  ;;  %v4328_v37 = vld [vmem:[#allocation2 + $0x128] sm:$0xff]  ;;  %v4339_v41 = vld [vmem:[#allocation2 + $0x138] sm:$0xff] }
  0x16   :  { %8294 = vst [vmem:[#allocation27_spill] sm:$0xff] %v4276_v20 }
  0x17   :  { %8295 = vst [vmem:[#allocation28_spill] sm:$0xff] %v4281_v21 }
  0x18   :  { %8296 = vst [vmem:[#allocation29_spill] sm:$0xff] %v4283_v22 }
  0x19   :  { %98 = vadd.xlane.f32.xlu2 %v4236_v6  ;;  %96 = vadd.xlane.f32.xlu1 %v4238_v7  ;;  %8297 = vst [vmem:[#allocation30_spill] sm:$0xff] %v4285_v23 }
  0x1a   :  { %94 = vadd.xlane.f32.xlu0 %v4240_v8  ;;  %8298 = vst [vmem:[#allocation31_spill] sm:$0xff] %v4290_v24 }
  0x1b   :  { %8299 = vst [vmem:[#allocation32_spill] sm:$0xff] %v4292_v25 }
  0x1c   :  { %8300 = vst [vmem:[#allocation33_spill] sm:$0xff] %v4294_v26 }
  0x1d   :  { %8301 = vst [vmem:[#allocation34_spill] sm:$0xff] %v4308_v30 }
  0x1e   :  { %8302 = vst [vmem:[#allocation35_spill] sm:$0xff] %v4310_v31 }
  0x1f   :  { %8303 = vst [vmem:[#allocation36_spill] sm:$0xff] %v4312_v32 }
  0x21   :  { %104 = vadd.xlane.f32.xlu2 %v4245_v9  ;;  %102 = vadd.xlane.f32.xlu1 %v4247_v10 }
  0x22   :  { %100 = vadd.xlane.f32.xlu0 %v4249_v11 }
  0x29   :  { %110 = vadd.xlane.f32.xlu2 %v4254_v12  ;;  %108 = vadd.xlane.f32.xlu1 %v4256_v13 }
  0x2a   :  { %106 = vadd.xlane.f32.xlu0 %v4258_v14 }
  0x31   :  { %116 = vadd.xlane.f32.xlu2 %v4263_v15  ;;  %114 = vadd.xlane.f32.xlu1 %v4265_v16 }
  0x32   :  { %112 = vadd.xlane.f32.xlu0 %v4267_v17 }
  0x39   :  { %122 = vadd.xlane.f32.xlu2 %v4272_v18  ;;  %120 = vadd.xlane.f32.xlu1 %v4274_v19 }
  0x3a   :  { %118 = vadd.xlane.f32.xlu0 %v4276_v20 }
  0x41   :  { %128 = vadd.xlane.f32.xlu2 %v4281_v21  ;;  %126 = vadd.xlane.f32.xlu1 %v4283_v22 }
  0x42   :  { %124 = vadd.xlane.f32.xlu0 %v4285_v23 }
  0x49   :  { %134 = vadd.xlane.f32.xlu2 %v4290_v24  ;;  %132 = vadd.xlane.f32.xlu1 %v4292_v25 }
  0x4a   :  { %130 = vadd.xlane.f32.xlu0 %v4294_v26 }
  0x51   :  { %140 = vadd.xlane.f32.xlu2 %v4299_v27  ;;  %138 = vadd.xlane.f32.xlu1 %v4301_v28 }
  0x52   :  { %136 = vadd.xlane.f32.xlu0 %v4303_v29 }
  0x59   :  { %146 = vadd.xlane.f32.xlu2 %v4308_v30  ;;  %144 = vadd.xlane.f32.xlu1 %v4310_v31 }
  0x5a   :  { %142 = vadd.xlane.f32.xlu0 %v4312_v32 }
  0x61   :  { %152 = vadd.xlane.f32.xlu2 %v4317_v33  ;;  %150 = vadd.xlane.f32.xlu1 %v4319_v34 }
  0x62   :  { %148 = vadd.xlane.f32.xlu0 %v4321_v35 }
  0x69   :  { %158 = vadd.xlane.f32.xlu2 %v4326_v36  ;;  %156 = vadd.xlane.f32.xlu1 %v4328_v37 }
  0x6a   :  { %154 = vadd.xlane.f32.xlu0 %v4330_v38 }
  0x71   :  { %251 = vadd.xlane.f32.xlu2 %v210_v39  ;;  %249 = vadd.xlane.f32.xlu1 %v209_v40 }
  0x72   :  { %160 = vadd.xlane.f32.xlu0 %v4339_v41 }
  0x79   :  { %257 = vadd.xlane.f32.xlu2 %v213_v42  ;;  %255 = vadd.xlane.f32.xlu1 %v212_v43  ;;  %v225_v42 = vmul.f32 %v4265_v16, %v4265_v16  ;;  %v224_v43 = vmul.f32 %v4267_v17, %v4267_v17 }
  0x7a   :  { %253 = vadd.xlane.f32.xlu0 %v211_v44  ;;  %v223_v44 = vmul.f32 %v4254_v12, %v4254_v12 }
  0x7c   :  { %v4348_v45 = vpop.xlane.xlu2 %90  ;;  %v4350_v46 = vpop.xlane.xlu1 %86 }
  0x7d   :  { %v4352_v47 = vpop.xlane.xlu0 %82 }
  0x81   :  { %263 = vadd.xlane.f32.xlu2 %v216_v48  ;;  %261 = vadd.xlane.f32.xlu1 %v215_v49 }
  0x82   :  { %259 = vadd.xlane.f32.xlu0 %v214_v50 }
  0x84   :  { %v4360_v51 = vpop.xlane.xlu2 %92  ;;  %v4362_v52 = vpop.xlane.xlu1 %88 }
  0x85   :  { %v4364_v53 = vpop.xlane.xlu0 %84 }
  0x89   :  { %269 = vadd.xlane.f32.xlu2 %v219_v54  ;;  %267 = vadd.xlane.f32.xlu1 %v218_v55  ;;  %v228_v54 = vmul.f32 %v4274_v19, %v4274_v19  ;;  %v227_v55 = vmul.f32 %v4276_v20, %v4276_v20  ;;  %v234_v20 = vmul.f32 %v4292_v25, %v4292_v25 }
  0x8a   :  { %265 = vadd.xlane.f32.xlu0 %v217_v56  ;;  %v226_v56 = vmul.f32 %v4263_v15, %v4263_v15  ;;  %v237_v19 = vmul.f32 %v4301_v28, %v4301_v28  ;;  %v236_v25 = vmul.f32 %v4303_v29, %v4303_v29  ;;  %v239_v28 = vmul.f32 %v4312_v32, %v4312_v32 }
  0x8b   :  { %v238_v29 = vmul.f32 %v4299_v27, %v4299_v27  ;;  %v1001_v27 = vld [vmem:[%s8122_s1 + $0x60] sm:$0xff] }
  0x8c   :  { %v4372_v57 = vpop.xlane.xlu2 %98  ;;  %v4374_v58 = vpop.xlane.xlu1 %96 }
  0x8d   :  { %v4376_v59 = vpop.xlane.xlu0 %94 }
  0x91   :  { %275 = vadd.xlane.f32.xlu2 %v222_v60  ;;  %273 = vadd.xlane.f32.xlu1 %v221_v61 }
  0x92   :  { %271 = vadd.xlane.f32.xlu0 %v220_v62 }
  0x94   :  { %v4384_v63 = vpop.xlane.xlu2 %104  ;;  %v4386_v39 = vpop.xlane.xlu1 %102 }
  0x95   :  { %v4388_v40 = vpop.xlane.xlu0 %100 }
  0x99   :  { %281 = vadd.xlane.f32.xlu2 %v225_v42  ;;  %279 = vadd.xlane.f32.xlu1 %v224_v43  ;;  %v231_v42 = vmul.f32 %v4283_v22, %v4283_v22  ;;  %v230_v43 = vmul.f32 %v4285_v23, %v4285_v23  ;;  %v233_v22 = vmul.f32 %v4294_v26, %v4294_v26 }
  0x9a   :  { %277 = vadd.xlane.f32.xlu0 %v223_v44  ;;  %v229_v44 = vmul.f32 %v4272_v18, %v4272_v18  ;;  %v232_v23 = vmul.f32 %v4281_v21, %v4281_v21  ;;  %v235_v26 = vmul.f32 %v4290_v24, %v4290_v24  ;;  %v240_v21 = vmul.f32 %v4310_v31, %v4310_v31 }
  0x9b   :  { %v4169_v24 = vmov 128.0  }
  0x9c   :  { %v4396_v48 = vpop.xlane.xlu2 %110  ;;  %v4398_v49 = vpop.xlane.xlu1 %108  ;;  %3791 = vrcp.f32 %v4169_v24  ;;  %v243_v24 = vmul.f32 %v4319_v34, %v4319_v34  ;;  %v1000_v34 = vld [vmem:[%s8122_s1 + $0x58] sm:$0xff] }
  0x9d   :  { %v4400_v50 = vpop.xlane.xlu0 %106 }
  0xa1   :  { %287 = vadd.xlane.f32.xlu2 %v228_v54  ;;  %285 = vadd.xlane.f32.xlu1 %v227_v55 }
  0xa2   :  { %283 = vadd.xlane.f32.xlu0 %v226_v56 }
  0xa4   :  { %v4408_v60 = vpop.xlane.xlu2 %116  ;;  %v4410_v61 = vpop.xlane.xlu1 %114 }
  0xa5   :  { %v4412_v62 = vpop.xlane.xlu0 %112 }
  0xa9   :  { %293 = vadd.xlane.f32.xlu2 %v231_v42  ;;  %291 = vadd.xlane.f32.xlu1 %v230_v43 }
  0xaa   :  { %289 = vadd.xlane.f32.xlu0 %v229_v44 }
  0xac   :  { %v4420_v54 = vpop.xlane.xlu2 %122  ;;  %v4422_v55 = vpop.xlane.xlu1 %120 }
  0xad   :  { %v4424_v56 = vpop.xlane.xlu0 %118 }
  0xb1   :  { %299 = vadd.xlane.f32.xlu2 %v234_v20  ;;  %297 = vadd.xlane.f32.xlu1 %v233_v22 }
  0xb2   :  { %295 = vadd.xlane.f32.xlu0 %v232_v23 }
  0xb4   :  { %v4432_v42 = vpop.xlane.xlu2 %128  ;;  %v4434_v43 = vpop.xlane.xlu1 %126 }
  0xb5   :  { %v4436_v44 = vpop.xlane.xlu0 %124 }
  0xb9   :  { %305 = vadd.xlane.f32.xlu2 %v237_v19  ;;  %303 = vadd.xlane.f32.xlu1 %v236_v25  ;;  %v1003_v19 = vld [vmem:[%s8122_s1 + $0x70] sm:$0xff]  ;;  %v1004_v25 = vld [vmem:[%s8122_s1 + $0x78] sm:$0xff] }
  0xba   :  { %301 = vadd.xlane.f32.xlu0 %v235_v26  ;;  %v1012_v26 = vpack.c.bf16 %v1004_v25, %v1003_v19  ;;  %v241_v19 = vmul.f32 %v4308_v30, %v4308_v30  ;;  %v8149_v25 = vlaneseq }
  0xbc   :  { %v4444_v20 = vpop.xlane.xlu2 %134  ;;  %v4446_v22 = vpop.xlane.xlu1 %132  ;;  %1017 = vmatpush.bf16.msra.mxu0 %v1012_v26  ;;  %3721 = vmatpush.bf16.msra.mxu1 %v1012_v26 }
  0xbd   :  { %v4448_v23 = vpop.xlane.xlu0 %130  ;;  %3722 = vmatpush.bf16.msra.mxu2 %v1012_v26  ;;  %3723 = vmatpush.bf16.msra.mxu3 %v1012_v26  ;;  %v999_v26 = vld [vmem:[%s8122_s1 + $0x50] sm:$0xff] }
  0xbe   :  { %8304 = vst [vmem:[#allocation37_spill] sm:$0xff] %v4448_v23  ;;  %v1002_v23 = vld [vmem:[%s8122_s1 + $0x68] sm:$0xff] }
  0xc1   :  { %311 = vadd.xlane.f32.xlu2 %v240_v21  ;;  %309 = vadd.xlane.f32.xlu1 %v239_v28  ;;  %v242_v28 = vmul.f32 %v4321_v35, %v4321_v35  ;;  %v1010_v35 = vpack.c.bf16 %v1000_v34, %v999_v26  ;;  %v998_v26 = vld [vmem:[%s8122_s1 + $0x48] sm:$0xff]  ;;  %v244_v34 = vmul.f32 %v4317_v33, %v4317_v33 }
  0xc2   :  { %307 = vadd.xlane.f32.xlu0 %v238_v29  ;;  %v1011_v29 = vpack.c.bf16 %v1002_v23, %v1001_v27  ;;  %v4523_v33 = vld [vmem:[%s8124_s3 + $0x28] sm:$0x3] }
  0xc3   :  { %8310 = vst [vmem:[#allocation43_spill] sm:$0xff] %v4523_v33 }
  0xc4   :  { %v4462_v32 = vpop.xlane.xlu2 %140  ;;  %v4464_v31 = vpop.xlane.xlu1 %138  ;;  %1018 = vmatpush.bf16.msra.mxu0 %v1011_v29  ;;  %3724 = vmatpush.bf16.msra.mxu1 %v1011_v29 }
  0xc5   :  { %8305 = vst [vmem:[#allocation38_spill] sm:$0xff] %v4462_v32  ;;  %v4472_v21 = vpop.xlane.xlu0 %136  ;;  %v4483_v32 = vshrl.u32 %v8149_v25, 7  ;;  %3725 = vmatpush.bf16.msra.mxu2 %v1011_v29  ;;  %3726 = vmatpush.bf16.msra.mxu3 %v1011_v29  ;;  %v8349_v13 = vld [vmem:[#allocation37_spill] sm:$0xff] }
  0xc6   :  { %8306 = vst [vmem:[#allocation39_spill] sm:$0xff] %v4464_v31  ;;  %v4480_v31 = vpop.eup %3791 }
  0xc7   :  { %8307 = vst [vmem:[#allocation40_spill] sm:$0xff] %v4483_v32  ;;  %3759 = vset.pattern.permute.xlu2 %v4483_v32  ;;  %v163_v23 = vmul.f32 128.0, %v4480_v31  ;;  %3758 = vset.pattern.permute.xlu1 %v4483_v32  ;;  %vm167_vm1 = vweird.f32 %v4480_v31 }
  0xc8   :  { %1019 = vmatpush.bf16.msra.mxu0 %v1010_v35  ;;  %3761 = vset.pattern.permute.xlu0 %v4483_v32 }
  0xc9   :  { %317 = vadd.xlane.f32.xlu2 %v243_v24  ;;  %315 = vadd.xlane.f32.xlu1 %v242_v28  ;;  %v246_v24 = vmul.f32 %v4328_v37, %v4328_v37  ;;  %v245_v28 = vmul.f32 %v4330_v38, %v4330_v38  ;;  %v995_v37 = vld [vmem:[%s8122_s1 + $0x30] sm:$0xff]  ;;  %v996_v38 = vld [vmem:[%s8122_s1 + $0x38] sm:$0xff] }
  0xca   :  { %313 = vadd.xlane.f32.xlu0 %v241_v19  ;;  %3727 = vmatpush.bf16.msra.mxu1 %v1010_v35  ;;  %v997_v19 = vld [vmem:[%s8122_s1 + $0x40] sm:$0xff] }
  0xcb   :  { %3728 = vmatpush.bf16.msra.mxu2 %v1010_v35  ;;  %v1009_v32 = vpack.c.bf16 %v998_v26, %v997_v19  ;;  %3729 = vmatpush.bf16.msra.mxu3 %v1010_v35  ;;  %v248_v19 = vmul.f32 %v4339_v41, %v4339_v41  ;;  %v994_v26 = vld [vmem:[%s8122_s1 + $0x28] sm:$0xff]  ;;  %v1936_v35 = vsel %vm8280_vm0, %v4523_v33, 0.0  ;;  %v991_v41 = vld [vmem:[%s8122_s1 + $0x10] sm:$0xff] }
  0xcc   :  { %v4494_v27 = vpop.xlane.xlu2 %146  ;;  %v4496_v25 = vpop.xlane.xlu1 %144 }
  0xcd   :  { %8308 = vst [vmem:[#allocation41_spill] sm:$0xff] %v4496_v25  ;;  %v4499_v30 = vpop.xlane.xlu0 %142  ;;  %1020 = vmatpush.bf16.msra.mxu0 %v1009_v32  ;;  %v1008_v25 = vpack.c.bf16 %v996_v38, %v995_v37 }
  0xce   :  { %8309 = vst [vmem:[#allocation42_spill] sm:$0xff] %v4499_v30  ;;  %v164_v30 = vsub.f32 1.0, %v163_v23  ;;  %3730 = vmatpush.bf16.msra.mxu1 %v1009_v32 }
  0xcf   :  { %3731 = vmatpush.bf16.msra.mxu2 %v1009_v32  ;;  %3732 = vmatpush.bf16.msra.mxu3 %v1009_v32 }
  0xd0   :  { %v165_v29 = vmul.f32 %v4480_v31, %v164_v30  ;;  %v993_v30 = vld [vmem:[%s8122_s1 + $0x20] sm:$0xff] }
  0xd1   :  { %323 = vadd.xlane.f32.xlu2 %v246_v24  ;;  %321 = vadd.xlane.f32.xlu1 %v245_v28  ;;  %v1007_v37 = vpack.c.bf16 %v994_v26, %v993_v30 }
  0xd2   :  { %319 = vadd.xlane.f32.xlu0 %v244_v34  ;;  %1021 = vmatpush.bf16.msra.mxu0 %v1008_v25  ;;  %v247_v34 = vmul.f32 %v4326_v36, %v4326_v36  ;;  %v166_v38 = vadd.f32 %v4480_v31, %v165_v29 }
  0xd3   :  { %3733 = vmatpush.bf16.msra.mxu1 %v1008_v25  ;;  %3734 = vmatpush.bf16.msra.mxu2 %v1008_v25 }
  0xd4   :  { %v4525_v23 = vpop.xlane.xlu2 %152  ;;  %v4527_v24 = vpop.xlane.xlu1 %150  ;;  %v4552_v29 = vsel %vm167_vm1, %v4480_v31, %v166_v38  ;;  %3735 = vmatpush.bf16.msra.mxu3 %v1008_v25  ;;  %v989_v31 = vld [vmem:[%s8122_s1] sm:$0xff]  ;;  %v990_v25 = vld [vmem:[%s8122_s1 + $0x8] sm:$0xff] }
  0xd5   :  { %8311 = vst [vmem:[#allocation44_spill] sm:$0xff] %v4525_v23  ;;  %v4529_v28 = vpop.xlane.xlu0 %148  ;;  %v4585_v38 = vmul.f32 %v4552_v29, %v4364_v53  ;;  %v4742_v6 = vmul.f32 %v4552_v29, %v4412_v62  ;;  %v4754_v11 = vmul.f32 %v4552_v29, %v4420_v54  ;;  %v4803_v15 = vmul.f32 %v4552_v29, %v4424_v56 }
  0xd6   :  { %8312 = vst [vmem:[#allocation45_spill] sm:$0xff] %v4527_v24  ;;  %1022 = vmatpush.bf16.msra.mxu0 %v1007_v37  ;;  %v4819_v56 = vmul.f32 %v4552_v29, %v4432_v42 }
  0xd7   :  { %8313 = vst [vmem:[#allocation46_spill] sm:$0xff] %v4529_v28  ;;  %3736 = vmatpush.bf16.msra.mxu1 %v1007_v37  ;;  %v992_v28 = vld [vmem:[%s8122_s1 + $0x18] sm:$0xff]  ;;  %3737 = vmatpush.bf16.msra.mxu2 %v1007_v37  ;;  %v370_v53 = vmul.f32 %v4585_v38, %v4585_v38  ;;  %v4831_v42 = vmul.f32 %v4803_v15, %v4803_v15 }
  0xd8   :  { %v1006_v36 = vpack.c.bf16 %v992_v28, %v991_v41  ;;  %v4565_v28 = vmul.f32 %v4552_v29, %v4348_v45  ;;  %v4581_v45 = vmul.f32 %v4552_v29, %v4352_v47  ;;  %3738 = vmatpush.bf16.msra.mxu3 %v1007_v37  ;;  %8331 = vst [vmem:[#allocation64_spill] sm:$0xff] %v4742_v6 }
  0xd9   :  { %1937 = vadd.xlane.f32.xlu2 %v1936_v35  ;;  %327 = vadd.xlane.f32.xlu1 %v248_v19  ;;  %v4561_v19 = vld [vmem:[%s8124_s3 + $0x30] sm:$0xff]  ;;  %v4577_v35 = vmul.f32 %v4552_v29, %v4350_v46  ;;  %v4595_v46 = vmul.f32 %v4552_v29, %v4362_v52  ;;  %v4631_v52 = vmul.f32 %v4552_v29, %v4374_v58 }
  0xda   :  { %325 = vadd.xlane.f32.xlu0 %v247_v34  ;;  %1023 = vmatpush.bf16.msra.mxu0 %v1006_v36  ;;  %8316 = vst [vmem:[#allocation49_spill] sm:$0xff] %v4565_v28  ;;  %v1005_v34 = vpack.c.bf16 %v990_v25, %v989_v31  ;;  %v1939_v41 = vsel %vm1931_vm2, %v4561_v19, 0.0  ;;  %v4599_v47 = vmul.f32 %v4565_v28, %v4565_v28 }
  0xdb   :  { %3739 = vmatpush.bf16.msra.mxu1 %v1006_v36  ;;  %3740 = vmatpush.bf16.msra.mxu2 %v1006_v36  ;;  %v4605_v37 = vmul.f32 %v4577_v35, %v4577_v35  ;;  %v369_v31 = vmul.f32 %v4581_v45, %v4581_v45  ;;  %8320 = vst [vmem:[#allocation53_spill] sm:$0xff] %v4631_v52 }
  0xdc   :  { %v4554_v32 = vpop.xlane.xlu2 %158  ;;  %v4556_v30 = vpop.xlane.xlu1 %156  ;;  %3741 = vmatpush.bf16.msra.mxu3 %v1006_v36  ;;  %v3718_v36 = vld [vmem:[%s8124_s3 + $0x48] sm:$0x3]  ;;  %v4654_v28 = vmul.f32 %v4552_v29, %v4384_v63  ;;  %v4669_v63 = vmul.f32 %v4631_v52, %v4631_v52  ;;  %8332 = vst [vmem:[#allocation65_spill] sm:$0xff] %v4754_v11  ;;  %v4846_v14 = vmul.f32 %v4819_v56, %v4819_v56 }
  0xdd   :  { %8314 = vst [vmem:[#allocation47_spill] sm:$0xff] %v4554_v32  ;;  %v4567_v26 = vpop.xlane.xlu0 %154  ;;  %v4591_v32 = vmul.f32 %v4552_v29, %v4360_v51  ;;  %v4609_v51 = vmul.f32 %v4552_v29, %v4372_v57  ;;  %v4640_v57 = vmul.f32 %v4552_v29, %v4376_v59  ;;  %v4658_v59 = vmul.f32 %v4552_v29, %v4386_v39 }
  0xde   :  { %8315 = vst [vmem:[#allocation48_spill] sm:$0xff] %v4556_v30  ;;  %1024 = vmatpush.bf16.msra.mxu0 %v1005_v34  ;;  %v2737_v3 = vsel %vm8280_vm0, %v3718_v36, 0.0  ;;  %v4714_v39 = vmul.f32 %v4552_v29, %v4400_v50 }
  0xdf   :  { %8317 = vst [vmem:[#allocation50_spill] sm:$0xff] %v4567_v26  ;;  %3742 = vmatpush.bf16.msra.mxu1 %v1005_v34  ;;  %3743 = vmatpush.bf16.msra.mxu2 %v1005_v34  ;;  %v4621_v26 = vmul.f32 %v4591_v32, %v4591_v32  ;;  %v4650_v24 = vmul.f32 %v4609_v51, %v4609_v51 }
  0xe0   :  { %8318 = vst [vmem:[#allocation51_spill] sm:$0xff] %v4591_v32  ;;  %3744 = vmatpush.bf16.msra.mxu3 %v1005_v34 }
  0xe1   :  { %8319 = vst [vmem:[#allocation52_spill] sm:$0xff] %v4609_v51  ;;  %v4732_v51 = vmul.f32 %v4552_v29, %v4410_v61  ;;  %v4765_v61 = vmul.f32 %v4552_v29, %v4422_v55 }
  0xe2   :  { %1940 = vadd.xlane.f32.xlu0 %v1939_v41  ;;  %v4627_v41 = vmul.f32 %v4595_v46, %v4595_v46  ;;  %8321 = vst [vmem:[#allocation54_spill] sm:$0xff] %v4640_v57 }
  0xe3   :  { %8323 = vst [vmem:[#allocation56_spill] sm:$0xff] %v4650_v24  ;;  %v4675_v24 = vmul.f32 %v4552_v29, %v4396_v48  ;;  %v4695_v48 = vmul.f32 %v4658_v59, %v4658_v59 }
  0xe4   :  { %v252_v25 = vpop.xlane.xlu2 %251  ;;  %v250_v30 = vpop.xlane.xlu1 %249  ;;  %8328 = vst [vmem:[#allocation61_spill] sm:$0xff] %v4714_v39 }
  0xe5   :  { %v330_v0 = vmul.f32 %v252_v25, %v4552_v29  ;;  %v4643_v32 = vpop.xlane.xlu0 %160  ;;  %v329_v58 = vmul.f32 %v250_v30, %v4552_v29  ;;  %v4662_v25 = vmul.f32 %v4552_v29, %v4388_v40  ;;  %8325 = vst [vmem:[#allocation58_spill] sm:$0xff] %v4675_v24  ;;  %v4725_v40 = vmul.f32 %v4552_v29, %v4408_v60 }
  0xe6   :  { %8322 = vst [vmem:[#allocation55_spill] sm:$0xff] %v4643_v32 }
  0xe7   :  { %8324 = vst [vmem:[#allocation57_spill] sm:$0xff] %v4662_v25  ;;  %v410_v30 = vsub.f32 %v330_v0, %v370_v53  ;;  %v409_v32 = vsub.f32 %v329_v58, %v369_v31  ;;  %v4679_v0 = vmul.f32 %v4640_v57, %v4640_v57  ;;  %v4689_v31 = vmul.f32 %v4654_v28, %v4654_v28 }
  0xe8   :  { %v4699_v58 = vmul.f32 %v4552_v29, %v4398_v49  ;;  %v4710_v23 = vmul.f32 %v4662_v25, %v4662_v25  ;;  %v4721_v49 = vmul.f32 %v4675_v24, %v4675_v24  ;;  %8329 = vst [vmem:[#allocation62_spill] sm:$0xff] %v4725_v40 }
  0xe9   :  { %v4683_v34 = vadd.f32 1e-12, %v410_v30  ;;  %v4685_v53 = vadd.f32 1e-12, %v409_v32  ;;  %v4704_v32 = vld [vmem:[%s8124_s3 + $0x20] sm:$0xff]  ;;  %8330 = vst [vmem:[#allocation63_spill] sm:$0xff] %v4732_v51 }
  0xea   :  { %8326 = vst [vmem:[#allocation59_spill] sm:$0xff] %v4699_v58  ;;  %2738 = vadd.xlane.f32.xlu0 %v2737_v3  ;;  %v4738_v60 = vmul.f32 %v4699_v58, %v4699_v58  ;;  %v8334_v58 = vperm.slane %v4704_v32, 0 }
  0xeb   :  { %8327 = vst [vmem:[#allocation60_spill] sm:$0xff] %v4704_v32  ;;  %3793 = vrsqrt.f32 %v4683_v34  ;;  %vm545_vm4 = vweird.f32 %v4683_v34  ;;  %vm535_vm6 = vweird.f32 %v4685_v53 }
  0xec   :  { %3795 = vrsqrt.f32 %v4685_v53  ;;  %v258_v36 = vpop.xlane.xlu2 %257  ;;  %v256_v30 = vpop.xlane.xlu1 %255  ;;  %8333 = vst [vmem:[#allocation66_spill] sm:$0xff] %v4765_v61 }
  0xed   :  { %v254_v3 = vpop.xlane.xlu0 %253  ;;  %v332_v25 = vmul.f32 %v256_v30, %v4552_v29  ;;  %v4750_v30 = vmul.f32 %v4714_v39, %v4714_v39  ;;  %v333_v54 = vmul.f32 %v258_v36, %v4552_v29  ;;  %8336 = vst [vmem:[#allocation67_spill] sm:$0xff] %v4803_v15 }
  0xee   :  { %v331_v52 = vmul.f32 %v254_v3, %v4552_v29  ;;  %v4761_v3 = vmul.f32 %v4725_v40, %v4725_v40  ;;  %8337 = vst [vmem:[#allocation68_spill] sm:$0xff] %v4819_v56 }
  0xef   :  { %v412_v24 = vsub.f32 %v332_v25, %v4627_v41  ;;  %v4774_v41 = vmul.f32 %v4732_v51, %v4732_v51  ;;  %v8335_v25 = vperm.slane %v4704_v32, 1  ;;  %v413_v18 = vsub.f32 %v333_v54, %v4599_v47  ;;  %8341 = vst [vmem:[#allocation70_spill] sm:$0xff] %v4846_v14 }
  0xf0   :  { %v411_v50 = vsub.f32 %v331_v52, %v4605_v37  ;;  %v4786_v37 = vmul.f32 %v4742_v6, %v4742_v6  ;;  %v4841_v47 = vmul.f32 %v4552_v29, %v4436_v44  ;;  %v4909_v14 = vmul.f32 %v4552_v29, %v8349_v13 }
  0xf1   :  { %v4768_v12 = vpop.eup %3793  ;;  %v4778_v62 = vadd.f32 1e-12, %v412_v24  ;;  %1496 = vperm.xlu2 %3759, %v8334_v58   ;;  %v4799_v58 = vmul.f32 %v4754_v11, %v4754_v11  ;;  %v4855_v44 = vadd.f32 1e-12, %v413_v18 }
  0xf2   :  { %v4782_v55 = vpop.eup %3795  ;;  %v540_v52 = vmul.f32 %v4768_v12, %v4683_v34  ;;  %v4791_v40 = vadd.f32 1e-12, %v411_v50  ;;  %1509 = vperm.xlu1 %3758, %v8335_v25   ;;  %v4811_v50 = vmul.f32 %v4765_v61, %v4765_v61  ;;  %vm546_vm5 = vweird.f32 %v4768_v12  ;;  %8350 = vst [vmem:[#allocation37_spill] sm:$0xff] %v4909_v14 }
  0xf3   :  { %v530_v51 = vmul.f32 %v4782_v55, %v4685_v53  ;;  %vm536_vm3 = vweird.f32 %v4782_v55  ;;  %v8348_v53 = vperm.slane %v4704_v32, 4  ;;  %vm547_vm8 = vmor %vm545_vm4, %vm546_vm5  ;;  %v8352_v34 = vsub.f32 %v4231_v5, %v4585_v38 }
  0xf4   :  { %v541_v25 = vmul.f32 %v4768_v12, %v540_v52  ;;  %3797 = vrsqrt.f32 %v4791_v40  ;;  %v4815_v24 = vpop.xlane.xlu2 %263  ;;  %v262_v16 = vpop.xlane.xlu1 %261  ;;  %vm537_vm7 = vmor %vm535_vm6, %vm536_vm3  ;;  %vm555_vm11 = vweird.f32 %v4791_v40  ;;  %vm565_vm13 = vweird.f32 %v4778_v62 }
  0xf5   :  { %v531_v6 = vmul.f32 %v4782_v55, %v530_v51  ;;  %3799 = vrsqrt.f32 %v4778_v62  ;;  %v260_v36 = vpop.xlane.xlu0 %259  ;;  %vm575_vm15 = vweird.f32 %v4855_v44 }
  0xf6   :  { %v542_v11 = vmul.f32 0.5, %v541_v25  ;;  %v334_v52 = vmul.f32 %v260_v36, %v4552_v29  ;;  %v4837_v25 = vmul.f32 %v4552_v29, %v4434_v43 }
  0xf7   :  { %v532_v57 = vmul.f32 0.5, %v531_v6  ;;  %v8343_v6 = vperm.slane %v4704_v32, 2 }
  0xf8   :  { %8340 = vst [vmem:[#allocation69_spill] sm:$0xff] %v4837_v25  ;;  %v414_v54 = vsub.f32 %v334_v52, %v4621_v26  ;;  %v543_v36 = vsub.f32 1.5, %v542_v11  ;;  %v8344_v11 = vperm.slane %v4704_v32, 5  ;;  %v4872_v18 = vmul.f32 %v4837_v25, %v4837_v25 }
  0xf9   :  { %1522 = vperm.xlu2 %3759, %v8343_v6   ;;  %v533_v7 = vsub.f32 1.5, %v532_v57  ;;  %v8364_v25 = vperm.slane %v4523_v33, 1 }
  0xfa   :  { %v4853_v61 = vpop.eup %3797  ;;  %v4857_v39 = vadd.f32 1e-12, %v414_v54  ;;  %1561 = vperm.xlu1 %3758, %v8344_v11   ;;  %v544_v6 = vmul.f32 %v4768_v12, %v543_v36  ;;  %8345 = vst [vmem:[#allocation71_spill] sm:$0xff] %v4872_v18  ;;  %v4876_v54 = vmul.f32 %v4552_v29, %v4444_v20 }
  0xfb   :  { %v4863_v26 = vpop.eup %3799  ;;  %v550_v52 = vmul.f32 %v4853_v61, %v4791_v40  ;;  %v534_v57 = vmul.f32 %v4782_v55, %v533_v7  ;;  %v4885_v7 = vmul.f32 %v4552_v29, %v4446_v22  ;;  %vm556_vm9 = vweird.f32 %v4853_v61  ;;  %v8377_v40 = vld [vmem:[#allocation42_spill] sm:$0xff] }
  0xfc   :  { %8346 = vst [vmem:[#allocation72_spill] sm:$0xff] %v4876_v54  ;;  %v560_v11 = vmul.f32 %v4863_v26, %v4778_v62  ;;  %v270_v17 = vpop.xlane.xlu2 %269  ;;  %v4880_v43 = vpop.xlane.xlu1 %267  ;;  %3801 = vrsqrt.f32 %v4857_v39  ;;  %v4932_v5 = vmul.f32 %v4876_v54, %v4876_v54  ;;  %vm566_vm10 = vweird.f32 %v4863_v26  ;;  %vm4997_vm12 = vmor %vm555_vm11, %vm556_vm9 }
  0xfd   :  { %8347 = vst [vmem:[#allocation73_spill] sm:$0xff] %v4885_v7  ;;  %v551_v36 = vmul.f32 %v4853_v61, %v550_v52  ;;  %v339_v15 = vmul.f32 %v270_v17, %v4552_v29  ;;  %v4889_v51 = vpop.xlane.xlu0 %265  ;;  %v538_v22 = vsel %vm537_vm7, %v4782_v55, %v534_v57  ;;  %3803 = vrsqrt.f32 %v4855_v44  ;;  %vm5015_vm14 = vmor %vm565_vm13, %vm566_vm10 }
  0xfe   :  { %v561_v56 = vmul.f32 %v4863_v26, %v560_v11  ;;  %1548 = vperm.xlu0 %3761, %v8348_v53   ;;  %v548_v11 = vsel %vm547_vm8, %v4768_v12, %v544_v6  ;;  %v8351_v55 = vsub.f32 %v4222_v2, %v4581_v45  ;;  %v335_v12 = vmul.f32 %v262_v16, %v4552_v29  ;;  %v8355_v2 = vld [vmem:[#allocation30_spill] sm:$0xff] }
  0xff   :  { %v552_v52 = vmul.f32 0.5, %v551_v36  ;;  %v419_v20 = vsub.f32 %v339_v15, %v4695_v48  ;;  %v930_v17 = vmul.f32 %v548_v11, %v8352_v34  ;;  %v4921_v15 = vmul.f32 %v4841_v47, %v4841_v47  ;;  %v8360_v6 = vld [vmem:[#allocation38_spill] sm:$0xff] }
 0x100   :  { %v562_v53 = vmul.f32 0.5, %v561_v56  ;;  %v929_v57 = vmul.f32 %v538_v22, %v8351_v55  ;;  %v8354_v48 = vperm.slane %v4704_v32, 3  ;;  %v8356_v56 = vperm.slane %v4704_v32, 6 }
 0x101   :  { %v4924_v13 = vadd.f32 1e-12, %v419_v20  ;;  %v553_v22 = vsub.f32 1.5, %v552_v52  ;;  %v4944_v34 = vmul.f32 %v4885_v7, %v4885_v7  ;;  %v4960_v54 = vmul.f32 %v4552_v29, %v8360_v6 }
 0x102   :  { %1535 = vperm.xlu2 %3759, %v8354_v48   ;;  %v969_v38 = vpack.c.bf16 %v930_v17, %v929_v57  ;;  %1574 = vperm.xlu1 %3758, %v8356_v56   ;;  %v563_v11 = vsub.f32 1.5, %v562_v53  ;;  %v4940_v55 = vpop.eup %3801  ;;  %v4950_v48 = vmul.f32 %v4909_v14, %v4909_v14  ;;  %v336_v56 = vmul.f32 %v4815_v24, %v4552_v29  ;;  %v8362_v17 = vld [vmem:[#allocation39_spill] sm:$0xff] }
 0x103   :  { %3805 = vrsqrt.f32 %v4924_v13  ;;  %v4954_v53 = vpop.eup %3803  ;;  %8361 = vst [vmem:[#allocation30_spill] sm:$0xff] %v4960_v54  ;;  %v415_v57 = vsub.f32 %v335_v12, %v4679_v0  ;;  %v4966_v24 = vmul.f32 %v4552_v29, %v8362_v17  ;;  %v580_v6 = vmul.f32 %v4940_v55, %v4857_v39 }
 0x104   :  { %1025 = vmatmul.bf16.vlgmr.msra.gmra.mxu0 %v969_v38  ;;  %v276_v52 = vpop.xlane.xlu2 %275  ;;  %v274_v20 = vpop.xlane.xlu1 %273  ;;  %v554_v0 = vmul.f32 %v4853_v61, %v553_v22  ;;  %v564_v12 = vmul.f32 %v4863_v26, %v563_v11  ;;  %v570_v17 = vmul.f32 %v4954_v53, %v4855_v44  ;;  %v4987_v7 = vmul.f32 %v4960_v54, %v4960_v54 }
 0x105   :  { %v272_v16 = vpop.xlane.xlu0 %271  ;;  %8363 = vst [vmem:[#allocation38_spill] sm:$0xff] %v4966_v24  ;;  %v4991_v22 = vmul.f32 %v4552_v29, %v4472_v21  ;;  %v4993_v11 = vadd.f32 1e-12, %v415_v57  ;;  %v8367_v14 = vperm.slane %v4704_v32, 7  ;;  %v8371_v57 = vperm.slane %v4561_v19, 0 }
 0x106   :  { %v340_v38 = vmul.f32 %v272_v16, %v4552_v29  ;;  %1613 = vperm.xlu0 %3761, %v8364_v25   ;;  %v416_v25 = vsub.f32 %v336_v56, %v4669_v63  ;;  %8365 = vst [vmem:[#allocation39_spill] sm:$0xff] %v4987_v7  ;;  %v5004_v63 = vmul.f32 %v4966_v24, %v4966_v24  ;;  %v8389_v7 = vperm.slane %v4561_v19, 1 }
 0x107   :  { %8366 = vst [vmem:[#allocation74_spill] sm:$0xff] %v4991_v22  ;;  %v5021_v62 = vmul.f32 %v4552_v29, %v4494_v27  ;;  %v571_v54 = vmul.f32 %v4954_v53, %v570_v17  ;;  %v337_v17 = vmul.f32 %v4889_v51, %v4552_v29  ;;  %v5064_v18 = vmul.f32 %v4991_v22, %v4991_v22  ;;  %v8388_v22 = vld [vmem:[#allocation56_spill] sm:$0xff] }
 0x108   :  { %v420_v16 = vsub.f32 %v340_v38, %v4689_v31  ;;  %8370 = vst [vmem:[#allocation75_spill] sm:$0xff] %v5004_v63  ;;  %v581_v38 = vmul.f32 %v4940_v55, %v580_v6  ;;  %v5035_v36 = vadd.f32 1e-12, %v416_v25  ;;  %v8379_v25 = vperm.slane %v4561_v19, 4 }
 0x109   :  { %v4983_v45 = vpop.eup %3805  ;;  %8374 = vst [vmem:[#allocation76_spill] sm:$0xff] %v5021_v62  ;;  %v5068_v51 = vmul.f32 %v5021_v62, %v5021_v62  ;;  %v417_v62 = vsub.f32 %v337_v17, %v8388_v22  ;;  %vm576_vm1 = vweird.f32 %v4954_v53  ;;  %vm586_vm3 = vweird.f32 %v4940_v55 }
 0x10a   :  { %1587 = vperm.xlu2 %3759, %v8367_v14   ;;  %v630_v31 = vmul.f32 %v4983_v45, %v4924_v13  ;;  %v5008_v21 = vadd.f32 1e-12, %v420_v16  ;;  %1626 = vperm.xlu1 %3758, %v8371_v57   ;;  %v558_v16 = vsel %vm4997_vm12, %v4853_v61, %v554_v0  ;;  %v568_v57 = vsel %vm5015_vm14, %v4863_v26, %v564_v12  ;;  %v8375_v14 = vld [vmem:[#allocation41_spill] sm:$0xff]  ;;  %vm5170_vm8 = vmor %vm575_vm15, %vm576_vm1 }
 0x10b   :  { %v5032_v24 = vmul.f32 %v4552_v29, %v8375_v14  ;;  %v5044_v61 = vmul.f32 %v4552_v29, %v8377_v40  ;;  %v8380_v14 = vsub.f32 %v4220_v1, %v4577_v35  ;;  %v8381_v40 = vsub.f32 %v4229_v4, %v4595_v46  ;;  %8382 = vst [vmem:[#allocation77_spill] sm:$0xff] %v5064_v18  ;;  %v5074_v1 = vld [vmem:[%s8124_s3 + $0x38] sm:$0x3] }
 0x10c   :  { %3807 = vrsqrt.f32 %v5008_v21  ;;  %v5038_v27 = vpop.xlane.xlu2 %281  ;;  %v5040_v6 = vpop.xlane.xlu1 %279  ;;  %v631_v26 = vmul.f32 %v4983_v45, %v630_v31  ;;  %8383 = vst [vmem:[#allocation78_spill] sm:$0xff] %v5068_v51  ;;  %v582_v12 = vmul.f32 0.5, %v581_v38  ;;  %v572_v46 = vmul.f32 0.5, %v571_v54  ;;  %v8390_v38 = vld [vmem:[#allocation44_spill] sm:$0xff]  ;;  %v8408_v51 = vld [vmem:[#allocation49_spill] sm:$0xff] }
 0x10d   :  { %8376 = vst [vmem:[#allocation41_spill] sm:$0xff] %v5032_v24  ;;  %3809 = vrsqrt.f32 %v4993_v11  ;;  %v5048_v0 = vpop.xlane.xlu0 %277  ;;  %v931_v56 = vmul.f32 %v558_v16, %v8380_v14  ;;  %v932_v32 = vmul.f32 %v568_v57, %v8381_v40  ;;  %v342_v16 = vmul.f32 %v276_v52, %v4552_v29 }
 0x10e   :  { %8378 = vst [vmem:[#allocation42_spill] sm:$0xff] %v5044_v61  ;;  %1678 = vperm.xlu0 %3761, %v8379_v25   ;;  %v341_v25 = vmul.f32 %v274_v20, %v4552_v29  ;;  %3811 = vrsqrt.f32 %v5035_v36  ;;  %v5082_v57 = vmul.f32 %v5032_v24, %v5032_v24  ;;  %v5088_v14 = vmul.f32 %v5044_v61, %v5044_v61  ;;  %v8392_v61 = vld [vmem:[#allocation45_spill] sm:$0xff] }
 0x10f   :  { %v632_v40 = vmul.f32 0.5, %v631_v26  ;;  %v8386_v31 = vperm.slane %v4523_v33, 0  ;;  %v970_v4 = vpack.c.bf16 %v932_v32, %v931_v56  ;;  %v5104_v26 = vmul.f32 %v4552_v29, %v8390_v38 }
 0x110   :  { %v421_v52 = vsub.f32 %v341_v25, %v4750_v30  ;;  %v5111_v32 = vmul.f32 %v4552_v29, %v8392_v61  ;;  %v422_v22 = vsub.f32 %v342_v16, %v4738_v60  ;;  %vm585_vm4 = vweird.f32 %v4857_v39 }
 0x111   :  { %8391 = vst [vmem:[#allocation56_spill] sm:$0xff] %v5104_v26  ;;  %v633_v61 = vsub.f32 1.5, %v632_v40  ;;  %v5140_v40 = vld [vmem:[%s8124_s3 + $0x40] sm:$0xff]  ;;  %v8396_v35 = vperm.slane %v4561_v19, 2  ;;  %vm636_vm5 = vweird.f32 %v4983_v45  ;;  %vm5160_vm6 = vmor %vm585_vm4, %vm586_vm3  ;;  %vm635_vm9 = vweird.f32 %v4924_v13 }
 0x112   :  { %1600 = vperm.xlu2 %3759, %v8386_v31   ;;  %v5092_v54 = vpop.eup %3807  ;;  %1639 = vperm.xlu1 %3758, %v8389_v7   ;;  %v583_v31 = vsub.f32 1.5, %v582_v12  ;;  %8393 = vst [vmem:[#allocation44_spill] sm:$0xff] %v5111_v32  ;;  %v338_v7 = vmul.f32 %v4880_v43, %v4552_v29  ;;  %v573_v12 = vsub.f32 1.5, %v572_v46  ;;  %v5129_v43 = vadd.f32 1e-12, %v417_v62  ;;  %vm5190_vm11 = vmor %vm635_vm9, %vm636_vm5 }
 0x113   :  { %v5100_v24 = vpop.eup %3809  ;;  %v640_v33 = vmul.f32 %v5092_v54, %v5008_v21  ;;  %v5135_v16 = vadd.f32 1e-12, %v421_v52  ;;  %8395 = vst [vmem:[#allocation45_spill] sm:$0xff] %v5140_v40  ;;  %v634_v63 = vmul.f32 %v4983_v45, %v633_v61  ;;  %v8196_v39 = vperm.slane %v5140_v40, 1 }
 0x114   :  { %1030 = vmatmul.bf16.gmra.mxu0 %v970_v4  ;;  %v5116_v17 = vpop.xlane.xlu2 %287  ;;  %v5118_v56 = vpop.xlane.xlu1 %285  ;;  %v590_v60 = vmul.f32 %v5100_v24, %v4993_v11  ;;  %v8394_v4 = vperm.slane %v5074_v1, 1  ;;  %v584_v30 = vmul.f32 %v4940_v55, %v583_v31  ;;  %v418_v62 = vsub.f32 %v338_v7, %v4710_v23 }
 0x115   :  { %v641_v38 = vmul.f32 %v5092_v54, %v640_v33  ;;  %v5121_v20 = vpop.xlane.xlu0 %283  ;;  %v5125_v25 = vpop.eup %3811  ;;  %v574_v46 = vmul.f32 %v4954_v53, %v573_v12  ;;  %3813 = vrsqrt.f32 %v5129_v43  ;;  %v8397_v23 = vperm.slane %v4561_v19, 5 }
 0x116   :  { %1743 = vperm.xlu0 %3761, %v8394_v4   ;;  %v5146_v4 = vadd.f32 1e-12, %v422_v22  ;;  %v600_v52 = vmul.f32 %v5125_v25, %v5035_v36  ;;  %v591_v31 = vmul.f32 %v5100_v24, %v590_v60  ;;  %vm646_vm7 = vweird.f32 %v5092_v54 }
 0x117   :  { %v642_v33 = vmul.f32 0.5, %v641_v38  ;;  %3815 = vrsqrt.f32 %v5135_v16  ;;  %v588_v22 = vsel %vm5160_vm6, %v4940_v55, %v584_v30  ;;  %v5179_v61 = vadd.f32 1e-12, %v418_v62 }
 0x118   :  { %3817 = vrsqrt.f32 %v5146_v4  ;;  %vm645_vm10 = vweird.f32 %v5008_v21  ;;  %v343_v13 = vmul.f32 %v5048_v0, %v4552_v29  ;;  %v601_v21 = vmul.f32 %v5125_v25, %v600_v52 }
 0x119   :  { %v643_v38 = vsub.f32 1.5, %v642_v33  ;;  %v578_v33 = vsel %vm5170_vm8, %v4954_v53, %v574_v46  ;;  %vm647_vm12 = vmor %vm645_vm10, %vm646_vm7  ;;  %v8404_v46 = vld [vmem:[#allocation15_spill] sm:$0xff]  ;;  %v592_v55 = vmul.f32 0.5, %v591_v31  ;;  %v8411_v52 = vsub.f32 %v4247_v10, %v4658_v59 }
 0x11a   :  { %1652 = vperm.xlu2 %3759, %v8396_v35   ;;  %1691 = vperm.xlu1 %3758, %v8397_v23   ;;  %v8405_v23 = vld [vmem:[#allocation51_spill] sm:$0xff]  ;;  %v423_v10 = vsub.f32 %v343_v13, %v4721_v49  ;;  %v8415_v59 = vperm.slane %v4561_v19, 3  ;;  %3819 = vrsqrt.f32 %v5179_v61  ;;  %v602_v13 = vmul.f32 0.5, %v601_v21 }
 0x11b   :  { %v644_v12 = vmul.f32 %v5092_v54, %v643_v38  ;;  %v638_v38 = vsel %vm5190_vm11, %v4983_v45, %v634_v63  ;;  %v8406_v0 = vsub.f32 %v8404_v46, %v8405_v23  ;;  %v344_v45 = vmul.f32 %v5040_v6, %v4552_v29  ;;  %v8407_v63 = vld [vmem:[#allocation14_spill] sm:$0xff] }
 0x11c   :  { %v5183_v60 = vpop.xlane.xlu2 %293  ;;  %v292_v44 = vpop.xlane.xlu1 %291  ;;  %v939_v31 = vmul.f32 %v638_v38, %v8411_v52  ;;  %v8412_v6 = vsub.f32 %v4245_v9, %v4654_v28  ;;  %v5236_v46 = vmul.f32 %v5104_v26, %v5104_v26  ;;  %v8413_v23 = vld [vmem:[#allocation46_spill] sm:$0xff]  ;;  %v8198_v21 = vperm.slane %v4561_v19, 7 }
 0x11d   :  { %v290_v30 = vpop.xlane.xlu0 %289  ;;  %v350_v62 = vmul.f32 %v292_v44, %v4552_v29  ;;  %v934_v7 = vmul.f32 %v588_v22, %v8406_v0  ;;  %v648_v35 = vsel %vm647_vm12, %v5092_v54, %v644_v12  ;;  %v8199_v44 = vperm.slane %v4561_v19, 6  ;;  %v5222_v22 = vpop.eup %3813 }
 0x11e   :  { %v349_v53 = vmul.f32 %v290_v30, %v4552_v29  ;;  %2312 = vperm.xlu0 %3761, %v8196_v39   ;;  %v8409_v30 = vsub.f32 %v8407_v63, %v8408_v51  ;;  %v5220_v39 = vld [vmem:[%s8124_s3 + $0x50] sm:$0xff]  ;;  %v940_v51 = vmul.f32 %v648_v35, %v8412_v6  ;;  %v5240_v0 = vmul.f32 %v4552_v29, %v8413_v23  ;;  %v8419_v6 = vld [vmem:[#allocation50_spill] sm:$0xff] }
 0x11f   :  { %8410 = vst [vmem:[#allocation15_spill] sm:$0xff] %v5220_v39  ;;  %v430_v12 = vsub.f32 %v350_v62, %v4921_v15  ;;  %v8197_v38 = vperm.slane %v5220_v39, 1  ;;  %v424_v49 = vsub.f32 %v344_v45, %v4786_v37  ;;  %v348_v37 = vmul.f32 %v5116_v17, %v4552_v29  ;;  %v5273_v45 = vld [vmem:[#allocation2 + $0x108] sm:$0xff] }
 0x120   :  { %v933_v18 = vmul.f32 %v578_v33, %v8409_v30  ;;  %v429_v54 = vsub.f32 %v349_v53, %v4799_v58  ;;  %v5232_v33 = vpop.eup %3815  ;;  %8414 = vst [vmem:[#allocation51_spill] sm:$0xff] %v5240_v0  ;;  %v345_v58 = vmul.f32 %v5038_v27, %v4552_v29  ;;  %v974_v62 = vpack.c.bf16 %v940_v51, %v939_v31 }
 0x121   :  { %v5247_v9 = vpop.eup %3817  ;;  %v5256_v53 = vmul.f32 %v5111_v32, %v5111_v32  ;;  %v593_v27 = vsub.f32 1.5, %v592_v55  ;;  %v650_v35 = vmul.f32 %v5232_v33, %v5135_v16  ;;  %8416 = vst [vmem:[#allocation14_spill] sm:$0xff] %v5273_v45  ;;  %v5283_v31 = vadd.f32 1e-12, %v423_v10  ;;  %v8426_v32 = vld [vmem:[#allocation53_spill] sm:$0xff]  ;;  %v8437_v45 = vld [vmem:[#allocation59_spill] sm:$0xff] }
 0x122   :  { %1665 = vperm.xlu2 %3759, %v8415_v59   ;;  %v5249_v28 = vadd.f32 1e-12, %v429_v54  ;;  %v971_v15 = vpack.c.bf16 %v934_v7, %v933_v18  ;;  %1704 = vperm.xlu1 %3758, %v8199_v44   ;;  %v5263_v18 = vadd.f32 1e-12, %v430_v12  ;;  %v5267_v7 = vmul.f32 %v5240_v0, %v5240_v0  ;;  %v8417_v54 = vld [vmem:[#allocation48_spill] sm:$0xff] }
 0x123   :  { %1050 = vmatmul.bf16.vlgmr.msra.gmra.mxu1 %v974_v62  ;;  %v425_v63 = vsub.f32 %v345_v58, %v4774_v41  ;;  %v5279_v12 = vmul.f32 %v4552_v29, %v8417_v54  ;;  %v660_v52 = vmul.f32 %v5247_v9, %v5146_v4  ;;  %v5293_v51 = vmul.f32 %v4552_v29, %v8419_v6  ;;  %v5303_v62 = vpop.eup %3819 }
 0x124   :  { %3821 = vrsqrt.f32 %v5249_v28  ;;  %1035 = vmatmul.bf16.gmra.mxu0 %v971_v15  ;;  %v5285_v41 = vpop.xlane.xlu2 %299  ;;  %v5287_v17 = vpop.xlane.xlu1 %297  ;;  %v610_v23 = vmul.f32 %v5222_v22, %v5129_v43  ;;  %v5297_v58 = vadd.f32 1e-12, %v424_v49  ;;  %v594_v59 = vmul.f32 %v5100_v24, %v593_v27 }
 0x125   :  { %v296_v55 = vpop.xlane.xlu0 %295  ;;  %8418 = vst [vmem:[#allocation49_spill] sm:$0xff] %v5279_v12  ;;  %v651_v10 = vmul.f32 %v5232_v33, %v650_v35  ;;  %3823 = vrsqrt.f32 %v5263_v18  ;;  %vm596_vm13 = vweird.f32 %v5100_v24  ;;  %v603_v15 = vsub.f32 1.5, %v602_v13 }
 0x126   :  { %2442 = vperm.xlu0 %3761, %v8197_v38   ;;  %8420 = vst [vmem:[#allocation46_spill] sm:$0xff] %v5293_v51  ;;  %v5305_v54 = vadd.f32 1e-12, %v425_v63  ;;  %v428_v6 = vsub.f32 %v348_v37, %v4811_v50  ;;  %v346_v38 = vmul.f32 %v5121_v20, %v4552_v29  ;;  %vm595_vm14 = vweird.f32 %v4993_v11 }
 0x127   :  { %v661_v27 = vmul.f32 %v5247_v9, %v660_v52  ;;  %3825 = vrsqrt.f32 %v5283_v31  ;;  %v8204_v13 = vperm.slane %v5140_v40, 2  ;;  %vm5318_vm15 = vmor %vm595_vm14, %vm596_vm13  ;;  %v604_v50 = vmul.f32 %v5125_v25, %v603_v15 }
 0x128   :  { %3827 = vrsqrt.f32 %v5297_v58  ;;  %v598_v11 = vsel %vm5318_vm15, %v5100_v24, %v594_v59  ;;  %vm606_vm1 = vweird.f32 %v5125_v25  ;;  %v620_v63 = vmul.f32 %v5303_v62, %v5179_v61  ;;  %v8425_v24 = vld [vmem:[#allocation17_spill] sm:$0xff] }
 0x129   :  { %v652_v37 = vmul.f32 0.5, %v651_v10  ;;  %v347_v52 = vmul.f32 %v5118_v56, %v4552_v29  ;;  %vm605_vm3 = vweird.f32 %v5035_v36  ;;  %v5335_v15 = vadd.f32 1e-12, %v428_v6  ;;  %v8423_v56 = vld [vmem:[#allocation54_spill] sm:$0xff] }
 0x12a   :  { %1717 = vperm.xlu2 %3759, %v8198_v21   ;;  %v5313_v49 = vpop.eup %3821  ;;  %v426_v21 = vsub.f32 %v346_v38, %v4761_v3  ;;  %v351_v44 = vmul.f32 %v5183_v60, %v4552_v29  ;;  %vm607_vm4 = vmor %vm605_vm3, %vm606_vm1  ;;  %v5347_v10 = vmul.f32 %v5279_v12, %v5279_v12  ;;  %v8424_v60 = vsub.f32 %v4240_v8, %v8423_v56 }
 0x12b   :  { %v730_v20 = vmul.f32 %v5313_v49, %v5249_v28  ;;  %v5343_v59 = vpop.eup %3823  ;;  %v608_v3 = vsel %vm607_vm4, %v5125_v25, %v604_v50  ;;  %v662_v6 = vmul.f32 0.5, %v661_v27  ;;  %3829 = vrsqrt.f32 %v5305_v54 }
 0x12c   :  { %v935_v38 = vmul.f32 %v598_v11, %v8424_v60  ;;  %v352_v30 = vmul.f32 %v296_v55, %v4552_v29  ;;  %v8427_v12 = vsub.f32 %v8425_v24, %v8426_v32  ;;  %v427_v25 = vsub.f32 %v347_v52, %v4831_v42  ;;  %v5366_v50 = vpop.xlane.xlu2 %305  ;;  %v5368_v8 = vpop.xlane.xlu1 %303  ;;  %v8428_v32 = vld [vmem:[#allocation71_spill] sm:$0xff] }
 0x12d   :  { %v5340_v35 = vpop.xlane.xlu0 %301  ;;  %v731_v36 = vmul.f32 %v5313_v49, %v730_v20  ;;  %v5361_v0 = vpop.eup %3825  ;;  %v611_v20 = vmul.f32 %v5222_v22, %v610_v23  ;;  %v653_v27 = vsub.f32 1.5, %v652_v37  ;;  %3831 = vrsqrt.f32 %v5335_v15 }
 0x12e   :  { %2325 = vperm.xlu0 %3761, %v8204_v13   ;;  %v936_v26 = vmul.f32 %v608_v3, %v8427_v12  ;;  %v621_v13 = vmul.f32 %v5303_v62, %v620_v63  ;;  %v5370_v11 = vpop.eup %3827  ;;  %v5373_v55 = vadd.f32 1e-12, %v426_v21  ;;  %v431_v12 = vsub.f32 %v351_v44, %v8428_v32  ;;  %v8430_v3 = vld [vmem:[#allocation70_spill] sm:$0xff] }
 0x12f   :  { %v740_v23 = vmul.f32 %v5343_v59, %v5263_v18  ;;  %v8429_v63 = vperm.slane %v5074_v1, 0  ;;  %v732_v42 = vmul.f32 0.5, %v731_v36  ;;  %v654_v24 = vmul.f32 %v5232_v33, %v653_v27 }
 0x130   :  { %v972_v52 = vpack.c.bf16 %v936_v26, %v935_v38  ;;  %vm656_vm5 = vweird.f32 %v5232_v33  ;;  %v670_v37 = vmul.f32 %v5361_v0, %v5283_v31  ;;  %v432_v21 = vsub.f32 %v352_v30, %v8430_v3 }
 0x131   :  { %vm655_vm6 = vweird.f32 %v5135_v16  ;;  %v663_v44 = vsub.f32 1.5, %v662_v6  ;;  %v5388_v56 = vmul.f32 %v5293_v51, %v5293_v51  ;;  %v5390_v60 = vmul.f32 0.5, %v611_v20  ;;  %v5400_v30 = vpop.eup %3829 }
 0x132   :  { %1730 = vperm.xlu2 %3759, %v8429_v63   ;;  %v5392_v36 = vmul.f32 0.5, %v621_v13  ;;  %v680_v26 = vmul.f32 %v5370_v11, %v5297_v58  ;;  %vm5396_vm7 = vmor %vm655_vm6, %vm656_vm5  ;;  %3833 = vrsqrt.f32 %v5373_v55  ;;  %v5403_v16 = vadd.f32 1e-12, %v431_v12 }
 0x133   :  { %v658_v6 = vsel %vm5396_vm7, %v5232_v33, %v654_v24  ;;  %v664_v13 = vmul.f32 %v5247_v9, %v663_v44  ;;  %v733_v20 = vsub.f32 1.5, %v732_v42  ;;  %v741_v27 = vmul.f32 %v5343_v59, %v740_v23  ;;  %v5414_v63 = vpop.eup %3831  ;;  %v8433_v33 = vld [vmem:[#allocation21_spill] sm:$0xff] }
 0x134   :  { %1040 = vmatmul.bf16.gmra.mxu0 %v972_v52  ;;  %vm665_vm8 = vweird.f32 %v5146_v4  ;;  %vm666_vm9 = vweird.f32 %v5247_v9  ;;  %v671_v12 = vmul.f32 %v5361_v0, %v670_v37  ;;  %v5417_v52 = vadd.f32 1e-12, %v427_v25  ;;  %v8434_v24 = vld [vmem:[#allocation61_spill] sm:$0xff] }
 0x135   :  { %v5412_v32 = vpop.xlane.xlu0 %307  ;;  %v5419_v3 = vadd.f32 1e-12, %v432_v21  ;;  %vm667_vm10 = vmor %vm665_vm8, %vm666_vm9  ;;  %v8435_v42 = vsub.f32 %v8433_v33, %v8434_v24  ;;  %v690_v4 = vmul.f32 %v5400_v30, %v5305_v54  ;;  %v8207_v38 = vperm.slane %v5220_v39, 3  ;;  %v8436_v21 = vld [vmem:[#allocation20_spill] sm:$0xff] }
 0x136   :  { %v668_v23 = vsel %vm667_vm10, %v5247_v9, %v664_v13  ;;  %v8210_v51 = vperm.slane %v5140_v40, 0  ;;  %v681_v37 = vmul.f32 %v5370_v11, %v680_v26  ;;  %3835 = vrsqrt.f32 %v5403_v16  ;;  %v312_v9 = vpop.xlane.xlu2 %311  ;;  %v310_v13 = vpop.xlane.xlu1 %309 }
 0x137   :  { %v941_v44 = vmul.f32 %v658_v6, %v8435_v42  ;;  %v354_v25 = vmul.f32 %v5285_v41, %v4552_v29  ;;  %v8438_v33 = vsub.f32 %v8436_v21, %v8437_v45  ;;  %v742_v24 = vmul.f32 0.5, %v741_v27  ;;  %2468 = vperm.xlu0 %3761, %v8207_v38  }
 0x138   :  { %v353_v42 = vmul.f32 %v5287_v17, %v4552_v29  ;;  %v734_v26 = vmul.f32 %v5313_v49, %v733_v20  ;;  %vm736_vm11 = vweird.f32 %v5313_v49  ;;  %v5444_v41 = vpop.eup %3833  ;;  %v5446_v45 = vmul.f32 0.5, %v671_v12 }
 0x139   :  { %v942_v6 = vmul.f32 %v668_v23, %v8438_v33  ;;  %v720_v27 = vmul.f32 %v5414_v63, %v5335_v15  ;;  %3837 = vrsqrt.f32 %v5419_v3  ;;  %v613_v23 = vsub.f32 1.5, %v5390_v60 }
 0x13a   :  { %2299 = vperm.xlu2 %3759, %v8210_v51   ;;  %3839 = vrsqrt.f32 %v5417_v52  ;;  %vm735_vm12 = vweird.f32 %v5249_v28  ;;  %v355_v20 = vmul.f32 %v5340_v35, %v4552_v29  ;;  %vm615_vm13 = vweird.f32 %v5129_v43  ;;  %v8469_v51 = vld [vmem:[#allocation29_spill] sm:$0xff] }
 0x13b   :  { %v975_v17 = vpack.c.bf16 %v942_v6, %v941_v44  ;;  %v5458_v12 = vmul.f32 %v5400_v30, %v690_v4  ;;  %v5460_v21 = vmul.f32 0.5, %v681_v37  ;;  %v434_v33 = vsub.f32 %v354_v25, %v4944_v34  ;;  %vm5466_vm14 = vmor %vm735_vm12, %vm736_vm11 }
 0x13c   :  { %v360_v44 = vmul.f32 %v312_v9, %v4552_v29  ;;  %v433_v28 = vsub.f32 %v353_v42, %v4950_v48  ;;  %v359_v35 = vmul.f32 %v310_v13, %v4552_v29  ;;  %v738_v4 = vsel %vm5466_vm14, %v5313_v49, %v734_v26  ;;  %v5475_v6 = vpop.eup %3835 }
 0x13d   :  { %1055 = vmatmul.bf16.gmra.mxu1 %v975_v17  ;;  %v743_v37 = vsub.f32 1.5, %v742_v24  ;;  %v673_v34 = vsub.f32 1.5, %v5446_v45  ;;  %v5479_v25 = vmul.f32 %v5414_v63, %v720_v27  ;;  %v700_v9 = vmul.f32 %v5444_v41, %v5373_v55  ;;  %v314_v24 = vpop.xlane.xlu0 %313  ;;  %v8441_v27 = vld [vmem:[#allocation25_spill] sm:$0xff] }
 0x13e   :  { %vm746_vm15 = vweird.f32 %v5343_v59  ;;  %v435_v48 = vsub.f32 %v355_v20, %v4932_v5  ;;  %v356_v42 = vmul.f32 %v5368_v8, %v4552_v29  ;;  %vm745_vm1 = vweird.f32 %v5263_v18  ;;  %v8442_v17 = vld [vmem:[#allocation65_spill] sm:$0xff] }
 0x13f   :  { %v744_v49 = vmul.f32 %v5343_v59, %v743_v37  ;;  %v5489_v13 = vpop.eup %3837  ;;  %v5491_v26 = vadd.f32 1e-12, %v434_v33  ;;  %v440_v45 = vsub.f32 %v360_v44, %v5082_v57  ;;  %vm747_vm3 = vmor %vm745_vm1, %vm746_vm15  ;;  %v8443_v60 = vsub.f32 %v8441_v27, %v8442_v17 }
 0x140   :  { %v8209_v5 = vperm.slane %v5140_v40, 6  ;;  %v5498_v20 = vpop.eup %3839  ;;  %vm675_vm4 = vweird.f32 %v5283_v31  ;;  %v750_v18 = vmul.f32 %v5475_v6, %v5403_v16  ;;  %v5503_v8 = vadd.f32 1e-12, %v433_v28  ;;  %v8456_v31 = vld [vmem:[#allocation19_spill] sm:$0xff] }
 0x141   :  { %v949_v38 = vmul.f32 %v738_v4, %v8443_v60  ;;  %v439_v33 = vsub.f32 %v359_v35, %v5088_v14  ;;  %v748_v57 = vsel %vm747_vm3, %v5343_v59, %v744_v49  ;;  %v8444_v44 = vsub.f32 %v8355_v2, %v4841_v47  ;;  %v8445_v14 = vld [vmem:[#allocation77_spill] sm:$0xff]  ;;  %v316_v35 = vpop.xlane.xlu1 %315 }
 0x142   :  { %v361_v4 = vmul.f32 %v314_v24, %v4552_v29  ;;  %2377 = vperm.xlu0 %3761, %v8209_v5   ;;  %v614_v27 = vmul.f32 %v5222_v22, %v613_v23  ;;  %vm616_vm5 = vweird.f32 %v5222_v22  ;;  %v760_v28 = vmul.f32 %v5489_v13, %v5419_v3 }
 0x143   :  { %v950_v37 = vmul.f32 %v748_v57, %v8444_v44  ;;  %v5517_v17 = vadd.f32 1e-12, %v435_v48  ;;  %v436_v59 = vsub.f32 %v356_v42, %v8445_v14  ;;  %v623_v47 = vsub.f32 1.5, %v5392_v36  ;;  %vm5533_vm6 = vmor %vm615_vm13, %vm616_vm5  ;;  %v8451_v44 = vld [vmem:[#allocation52_spill] sm:$0xff] }
 0x144   :  { %v710_v2 = vmul.f32 %v5498_v20, %v5417_v52  ;;  %3841 = vrsqrt.f32 %v5491_v26  ;;  %v5524_v49 = vadd.f32 1e-12, %v440_v45  ;;  %v701_v24 = vmul.f32 %v5444_v41, %v700_v9 }
 0x145   :  { %v979_v23 = vpack.c.bf16 %v950_v37, %v949_v38  ;;  %v751_v60 = vmul.f32 %v5475_v6, %v750_v18  ;;  %3843 = vrsqrt.f32 %v5503_v8  ;;  %v5529_v48 = vadd.f32 1e-12, %v439_v33  ;;  %v8448_v38 = vld [vmem:[#allocation78_spill] sm:$0xff] }
 0x146   :  { %v5539_v42 = vmul.f32 %v5366_v50, %v4552_v29  ;;  %v441_v45 = vsub.f32 %v361_v4, %v8448_v38  ;;  %v362_v9 = vmul.f32 %v316_v35, %v4552_v29  ;;  %v618_v18 = vsel %vm5533_vm6, %v5222_v22, %v614_v27  ;;  %v8450_v22 = vld [vmem:[#allocation16_spill] sm:$0xff] }
 0x147   :  { %1075 = vmatmul.bf16.vlgmr.msra.gmra.mxu2 %v979_v23  ;;  %v761_v33 = vmul.f32 %v5489_v13, %v760_v28  ;;  %3845 = vrsqrt.f32 %v5517_v17  ;;  %v5548_v43 = vadd.f32 1e-12, %v436_v59  ;;  %v624_v57 = vmul.f32 %v5303_v62, %v623_v47  ;;  %v320_v28 = vpop.xlane.xlu0 %319  ;;  %v8453_v47 = vld [vmem:[#allocation18_spill] sm:$0xff]  ;;  %v8454_v23 = vld [vmem:[#allocation57_spill] sm:$0xff] }
 0x148   :  { %3847 = vrsqrt.f32 %v5524_v49  ;;  %vm625_vm7 = vweird.f32 %v5179_v61  ;;  %vm626_vm8 = vweird.f32 %v5303_v62  ;;  %v674_v50 = vmul.f32 %v5361_v0, %v673_v34 }
 0x149   :  { %8449 = vst [vmem:[#allocation48_spill] sm:$0xff] %v5548_v43  ;;  %3849 = vrsqrt.f32 %v5529_v48  ;;  %vm627_vm9 = vmor %vm625_vm7, %vm626_vm8  ;;  %v8452_v37 = vsub.f32 %v8450_v22, %v8451_v44  ;;  %vm676_vm10 = vweird.f32 %v5361_v0  ;;  %v683_v27 = vsub.f32 1.5, %v5460_v21 }
 0x14a   :  { %v5561_v14 = vpop.eup %3841  ;;  %v5563_v59 = vadd.f32 1e-12, %v441_v45  ;;  %v442_v61 = vsub.f32 %v362_v9, %v5267_v7  ;;  %v628_v34 = vsel %vm627_vm9, %v5303_v62, %v624_v57  ;;  %vm677_vm11 = vmor %vm675_vm4, %vm676_vm10  ;;  %vm686_vm12 = vweird.f32 %v5370_v11  ;;  %v8457_v9 = vld [vmem:[#allocation58_spill] sm:$0xff] }
 0x14b   :  { %v937_v4 = vmul.f32 %v618_v18, %v8452_v37  ;;  %v5570_v35 = vpop.eup %3843  ;;  %v8455_v36 = vsub.f32 %v8453_v47, %v8454_v23  ;;  %v678_v38 = vsel %vm677_vm11, %v5361_v0, %v674_v50  ;;  %v684_v45 = vmul.f32 %v5370_v11, %v683_v27  ;;  %v8460_v47 = vld [vmem:[#allocation24_spill] sm:$0xff] }
 0x14c   :  { %vm685_vm13 = vweird.f32 %v5297_v58  ;;  %v711_v7 = vmul.f32 %v5498_v20, %v710_v2  ;;  %v762_v62 = vmul.f32 0.5, %v761_v33  ;;  %3851 = vrsqrt.f32 %v5548_v43  ;;  %v8459_v2 = vld [vmem:[#allocation75_spill] sm:$0xff]  ;;  %v8461_v23 = vld [vmem:[#allocation64_spill] sm:$0xff] }
 0x14d   :  { %v938_v21 = vmul.f32 %v628_v34, %v8455_v36  ;;  %vm687_vm14 = vmor %vm685_vm13, %vm686_vm12  ;;  %v8458_v18 = vsub.f32 %v8456_v31, %v8457_v9  ;;  %v5583_v22 = vpop.eup %3845  ;;  %v5585_v44 = vmul.f32 0.5, %v701_v24  ;;  %v752_v37 = vmul.f32 0.5, %v751_v60  ;;  %v8470_v31 = vld [vmem:[#allocation69_spill] sm:$0xff] }
 0x14e   :  { %v688_v50 = vsel %vm687_vm14, %v5370_v11, %v684_v45  ;;  %v5588_v27 = vpop.eup %3847  ;;  %v780_v58 = vmul.f32 %v5561_v14, %v5491_v26  ;;  %v437_v33 = vsub.f32 %v5539_v42, %v8459_v2  ;;  %v5594_v34 = vadd.f32 1e-12, %v442_v61 }
 0x14f   :  { %v943_v57 = vmul.f32 %v678_v38, %v8458_v18  ;;  %v973_v0 = vpack.c.bf16 %v938_v21, %v937_v4  ;;  %v8462_v36 = vsub.f32 %v8460_v47, %v8461_v23  ;;  %v5599_v24 = vpop.eup %3849  ;;  %v770_v60 = vmul.f32 %v5570_v35, %v5503_v8  ;;  %v318_v18 = vpop.xlane.xlu2 %317 }
 0x150   :  { %v358_v11 = vmul.f32 %v5412_v32, %v4552_v29  ;;  %3853 = vrsqrt.f32 %v5563_v59  ;;  %v8208_v4 = vperm.slane %v5220_v39, 7  ;;  %v5608_v42 = vmul.f32 0.5, %v5458_v12  ;;  %v5633_v23 = vpop.xlane.xlu0 %325 }
 0x151   :  { %v944_v38 = vmul.f32 %v688_v50, %v8462_v36  ;;  %1045 = vmatmul.bf16.gmra.mxu0 %v973_v0  ;;  %v5611_v61 = vmul.f32 0.5, %v5479_v25  ;;  %v763_v21 = vsub.f32 1.5, %v762_v62  ;;  %v5614_v9 = vmul.f32 0.5, %v711_v7  ;;  %8464 = vst [vmem:[#allocation50_spill] sm:$0xff] %v5633_v23  ;;  %v8472_v23 = vld [vmem:[#allocation28_spill] sm:$0xff] }
 0x152   :  { %vm765_vm15 = vweird.f32 %v5419_v3  ;;  %v840_v32 = vmul.f32 %v5588_v27, %v5524_v49  ;;  %2520 = vperm.xlu0 %3761, %v8208_v4   ;;  %v5621_v12 = vpop.eup %3851  ;;  %v781_v25 = vmul.f32 %v5561_v14, %v780_v58  ;;  %v5624_v0 = vadd.f32 1e-12, %v437_v33 }
 0x153   :  { %v976_v45 = vpack.c.bf16 %v944_v38, %v943_v57  ;;  %v790_v62 = vmul.f32 %v5583_v22, %v5517_v17  ;;  %3855 = vrsqrt.f32 %v5594_v34  ;;  %v771_v7 = vmul.f32 %v5570_v35, %v770_v60  ;;  %v8463_v57 = vld [vmem:[#allocation39_spill] sm:$0xff] }
 0x154   :  { %v438_v50 = vsub.f32 %v358_v11, %v8463_v57  ;;  %v830_v2 = vmul.f32 %v5599_v24, %v5529_v48  ;;  %v753_v47 = vsub.f32 1.5, %v752_v37  ;;  %v364_v58 = vmul.f32 %v320_v28, %v4552_v29 }
 0x155   :  { %1060 = vmatmul.bf16.gmra.mxu1 %v976_v45  ;;  %vm755_vm1 = vweird.f32 %v5403_v16  ;;  %vm756_vm3 = vweird.f32 %v5475_v6  ;;  %v764_v33 = vmul.f32 %v5489_v13, %v763_v21  ;;  %v800_v38 = vmul.f32 %v5621_v12, %v5548_v43  ;;  %v4058_v21 = vld [vmem:[%s8124_s3 + $0x20] sm:$0xff]  ;;  %v8473_v43 = vld [vmem:[#allocation68_spill] sm:$0xff] }
 0x156   :  { %v5639_v36 = vpop.eup %3853  ;;  %v841_v60 = vmul.f32 %v5588_v27, %v840_v32  ;;  %v754_v11 = vmul.f32 %v5475_v6, %v753_v47  ;;  %vm5645_vm4 = vmor %vm755_vm1, %vm756_vm3  ;;  %vm766_vm5 = vweird.f32 %v5489_v13  ;;  %v791_v16 = vmul.f32 %v5583_v22, %v790_v62  ;;  %v8467_v32 = vld [vmem:[#allocation40_spill] sm:$0xff] }
 0x157   :  { %v363_v28 = vmul.f32 %v318_v18, %v4552_v29  ;;  %vm767_vm6 = vmor %vm765_vm15, %vm766_vm5  ;;  %v1932_v45 = vsel %vm1931_vm2, %v4058_v21, 0.0  ;;  %v5659_v57 = vadd.s32 8, %v8467_v32  ;;  %vm705_vm7 = vweird.f32 %v5373_v55  ;;  %v322_v55 = vpop.xlane.xlu1 %321 }
 0x158   :  { %v831_v47 = vmul.f32 %v5599_v24, %v830_v2  ;;  %v758_v18 = vsel %vm5645_vm4, %v5475_v6, %v754_v11  ;;  %v768_v3 = vsel %vm767_vm6, %v5489_v13, %v764_v33  ;;  %1933 = vadd.xlane.f32.xlu1 %v1932_v45  ;;  %v693_v62 = vsub.f32 1.5, %v5608_v42  ;;  %v324_v11 = vpop.xlane.xlu2 %323 }
 0x159   :  { %8468 = vst [vmem:[#allocation54_spill] sm:$0xff] %v5659_v57  ;;  %v5668_v4 = vpop.eup %3855  ;;  %v850_v21 = vmul.f32 %v5639_v36, %v5563_v59  ;;  %v444_v5 = vsub.f32 %v364_v58, %v5236_v46  ;;  %v8471_v32 = vsub.f32 %v8469_v51, %v8470_v31  ;;  %v8474_v37 = vsub.f32 %v8472_v23, %v8473_v43 }
 0x15a   :  { %3760 = vset.pattern.permute.xlu1 %v5659_v57  ;;  %3857 = vrsqrt.f32 %v5624_v0  ;;  %v801_v13 = vmul.f32 %v5621_v12, %v800_v38  ;;  %v842_v42 = vmul.f32 0.5, %v841_v60  ;;  %v5682_v33 = vadd.f32 1e-12, %v438_v50  ;;  %3774 = vset.pattern.permute.xlu0 %v5659_v57  ;;  %v5695_v50 = vpop.xlane.xlu0 %1940 }
 0x15b   :  { %v951_v2 = vmul.f32 %v758_v18, %v8471_v32  ;;  %v952_v6 = vmul.f32 %v768_v3, %v8474_v37  ;;  %3762 = vset.pattern.permute.xlu2 %v5659_v57  ;;  %v5686_v46 = vmul.f32 0.5, %v781_v25  ;;  %v5688_v51 = vmul.f32 0.5, %v791_v16 }
 0x15c   :  { %v443_v43 = vsub.f32 %v363_v28, %v5256_v53  ;;  %v832_v23 = vmul.f32 0.5, %v831_v47  ;;  %v860_v58 = vmul.f32 %v5668_v4, %v5594_v34  ;;  %v694_v38 = vmul.f32 %v5400_v30, %v693_v62 }
 0x15d   :  { %v980_v31 = vpack.c.bf16 %v952_v6, %v951_v2  ;;  %vm696_vm8 = vweird.f32 %v5400_v30  ;;  %v772_v60 = vmul.f32 0.5, %v771_v7  ;;  %vm845_vm9 = vweird.f32 %v5524_v49 }
 0x15e   :  { %v851_v25 = vmul.f32 %v5639_v36, %v850_v21  ;;  %v5699_v16 = vadd.f32 1e-12, %v444_v5  ;;  %v5701_v53 = vmul.f32 0.5, %v801_v13  ;;  %v843_v28 = vsub.f32 1.5, %v842_v42  ;;  %v8480_v13 = vld [vmem:[#allocation60_spill] sm:$0xff] }
 0x15f   :  { %1080 = vmatmul.bf16.gmra.mxu2 %v980_v31  ;;  %3859 = vrsqrt.f32 %v5682_v33  ;;  %vm695_vm10 = vweird.f32 %v5305_v54  ;;  %v793_v45 = vsub.f32 1.5, %v5688_v51  ;;  %v5706_v32 = vadd.f32 1e-12, %v443_v43  ;;  %v8482_v43 = vld [vmem:[#allocation23_spill] sm:$0xff] }
 0x160   :  { %v5709_v7 = vmul.f32 %v324_v11, %v4552_v29  ;;  %vm5711_vm11 = vmor %vm695_vm10, %vm696_vm8  ;;  %v8477_v5 = vsub.f32 1.5, %v5585_v44  ;;  %v5718_v3 = vpop.eup %3857  ;;  %v861_v62 = vmul.f32 %v5668_v4, %v860_v58  ;;  %vm706_vm12 = vweird.f32 %v5444_v41  ;;  %v8485_v58 = vld [vmem:[#allocation22_spill] sm:$0xff]  ;;  %v8522_v51 = vld [vmem:[#allocation51_spill] sm:$0xff] }
 0x161   :  { %v698_v54 = vsel %vm5711_vm11, %v5400_v30, %v694_v38  ;;  %v833_v21 = vsub.f32 1.5, %v832_v23  ;;  %v5725_v2 = vmul.f32 0.5, %v851_v25  ;;  %3861 = vrsqrt.f32 %v5699_v16  ;;  %vm707_vm13 = vmor %vm705_vm7, %vm706_vm12 }
 0x162   :  { %v704_v18 = vmul.f32 %v5444_v41, %v8477_v5  ;;  %vm835_vm14 = vweird.f32 %v5529_v48  ;;  %vm836_vm15 = vweird.f32 %v5599_v24  ;;  %v844_v6 = vmul.f32 %v5588_v27, %v843_v28  ;;  %v8483_v48 = vld [vmem:[#allocation63_spill] sm:$0xff] }
 0x163   :  { %v834_v37 = vmul.f32 %v5599_v24, %v833_v21  ;;  %vm5734_vm1 = vmor %vm835_vm14, %vm836_vm15  ;;  %vm846_vm3 = vweird.f32 %v5588_v27  ;;  %v8481_v42 = vperm.slane %v8480_v13, 0  ;;  %v8484_v31 = vsub.f32 %v8482_v43, %v8483_v48  ;;  %v8488_v21 = vld [vmem:[#allocation36_spill] sm:$0xff]  ;;  %v8491_v43 = vld [vmem:[#allocation35_spill] sm:$0xff] }
 0x164   :  { %v708_v44 = vsel %vm707_vm13, %v5444_v41, %v704_v18  ;;  %v8486_v41 = vld [vmem:[#allocation62_spill] sm:$0xff]  ;;  %vm847_vm4 = vmor %vm845_vm9, %vm846_vm3  ;;  %v1942_v25 = vsel %vm8280_vm0, %v5074_v1, 0.0  ;;  %v773_v28 = vsub.f32 1.5, %v772_v60  ;;  %3863 = vrsqrt.f32 %v5706_v32  ;;  %v8492_v48 = vld [vmem:[#allocation41_spill] sm:$0xff] }
 0x165   :  { %1502 = vperm.xlu0 %3774, %v8481_v42   ;;  %v945_v23 = vmul.f32 %v698_v54, %v8484_v31  ;;  %v8487_v11 = vsub.f32 %v8485_v58, %v8486_v41  ;;  %v5752_v47 = vpop.eup %3859  ;;  %v838_v5 = vsel %vm5734_vm1, %v5599_v24, %v834_v37  ;;  %v848_v18 = vsel %vm847_vm4, %v5588_v27, %v844_v6 }
 0x166   :  { %1943 = vadd.xlane.f32.xlu1 %v1942_v25  ;;  %vm776_vm5 = vweird.f32 %v5570_v35  ;;  %vm855_vm6 = vweird.f32 %v5563_v59  ;;  %v862_v49 = vmul.f32 0.5, %v861_v62  ;;  %v8493_v31 = vsub.f32 %v8491_v43, %v8492_v48  ;;  %v5772_v62 = vpop.xlane.xlu0 %2738 }
 0x167   :  { %v946_v38 = vmul.f32 %v708_v44, %v8487_v11  ;;  %v8489_v44 = vld [vmem:[#allocation42_spill] sm:$0xff]  ;;  %vm865_vm7 = vweird.f32 %v5594_v34  ;;  %v365_v24 = vmul.f32 %v322_v55, %v4552_v29  ;;  %v774_v27 = vmul.f32 %v5570_v35, %v773_v28  ;;  %8494 = vst [vmem:[#allocation17_spill] sm:$0xff] %v5772_v62  ;;  %v5774_v30 = vpop.eup %3861 }
 0x168   :  { %v8490_v60 = vsub.f32 %v8488_v21, %v8489_v44  ;;  %v960_v58 = vmul.f32 %v848_v18, %v8493_v31  ;;  %vm775_vm8 = vweird.f32 %v5503_v8  ;;  %v783_v37 = vsub.f32 1.5, %v5686_v46  ;;  %v8500_v21 = vld [vmem:[#allocation73_spill] sm:$0xff] }
 0x169   :  { %v977_v54 = vpack.c.bf16 %v946_v38, %v945_v23  ;;  %v853_v6 = vsub.f32 1.5, %v5725_v2  ;;  %v446_v23 = vsub.f32 %v5709_v7, %v5347_v10  ;;  %vm777_vm9 = vmor %vm775_vm8, %vm776_vm5  ;;  %vm786_vm10 = vweird.f32 %v5561_v14  ;;  %v8495_v2 = vld [vmem:[#allocation33_spill] sm:$0xff] }
 0x16a   :  { %v959_v42 = vmul.f32 %v838_v5, %v8490_v60  ;;  %v778_v8 = vsel %vm777_vm9, %v5570_v35, %v774_v27  ;;  %v784_v46 = vmul.f32 %v5561_v14, %v783_v37  ;;  %vm785_vm11 = vweird.f32 %v5491_v26  ;;  %v8496_v10 = vld [vmem:[#allocation37_spill] sm:$0xff]  ;;  %v5792_v28 = vpop.eup %3863  ;;  %v8508_v37 = vld [vmem:[#allocation55_spill] sm:$0xff] }
 0x16b   :  { %1065 = vmatmul.bf16.gmra.mxu1 %v977_v54  ;;  %v713_v55 = vsub.f32 1.5, %v5614_v9  ;;  %v863_v11 = vsub.f32 1.5, %v862_v49  ;;  %vm787_vm12 = vmor %vm785_vm11, %vm786_vm10  ;;  %v8497_v7 = vsub.f32 %v8495_v2, %v8496_v10  ;;  %v2740_v25 = vsel %vm1931_vm2, %v5220_v39, 0.0  ;;  %v8499_v54 = vld [vmem:[#allocation32_spill] sm:$0xff]  ;;  %v8512_v2 = vld [vmem:[#allocation67_spill] sm:$0xff] }
 0x16c   :  { %v984_v41 = vpack.c.bf16 %v960_v58, %v959_v42  ;;  %vm716_vm13 = vweird.f32 %v5498_v20  ;;  %v445_v35 = vsub.f32 %v365_v24, %v5388_v56  ;;  %v788_v26 = vsel %vm787_vm12, %v5561_v14, %v784_v46  ;;  %v8524_v56 = vld [vmem:[#allocation47_spill] sm:$0xff] }
 0x16d   :  { %v953_v38 = vmul.f32 %v778_v8, %v8497_v7  ;;  %v8498_v9 = vperm.slane %v8480_v13, 6  ;;  %v714_v5 = vmul.f32 %v5498_v20, %v713_v55  ;;  %v723_v18 = vsub.f32 1.5, %v5611_v61 }
 0x16e   :  { %1100 = vmatmul.bf16.vlgmr.msra.gmra.mxu3 %v984_v41  ;;  %v880_v49 = vmul.f32 %v5774_v30, %v5699_v16  ;;  %v8501_v44 = vsub.f32 %v8499_v54, %v8500_v21  ;;  %vm715_vm14 = vweird.f32 %v5417_v52  ;;  %vm726_vm15 = vweird.f32 %v5414_v63  ;;  %2741 = vadd.xlane.f32.xlu1 %v2740_v25  ;;  %v8515_v25 = vld [vmem:[#allocation66_spill] sm:$0xff]  ;;  %v8527_v52 = vld [vmem:[#allocation48_spill] sm:$0xff] }
 0x16f   :  { %1580 = vperm.xlu0 %3774, %v8498_v9   ;;  %vm5807_vm1 = vmor %vm715_vm14, %vm716_vm13  ;;  %v724_v14 = vmul.f32 %v5414_v63, %v723_v18  ;;  %vm725_vm3 = vweird.f32 %v5335_v15  ;;  %v854_v61 = vmul.f32 %v5639_v36, %v853_v6  ;;  %vm856_vm4 = vweird.f32 %v5639_v36  ;;  %v8518_v18 = vld [vmem:[#allocation34_spill] sm:$0xff] }
 0x170   :  { %v954_v60 = vmul.f32 %v788_v26, %v8501_v44  ;;  %v870_v42 = vmul.f32 %v5792_v28, %v5706_v32  ;;  %vm5817_vm5 = vmor %vm725_vm3, %vm726_vm15  ;;  %v864_v48 = vmul.f32 %v5668_v4, %v863_v11  ;;  %vm866_vm8 = vweird.f32 %v5668_v4  ;;  %v5862_v55 = vpop.permute.xlu0 %1548  ;;  %v8511_v11 = vld [vmem:[#allocation27_spill] sm:$0xff]  ;;  %v8521_v44 = vld [vmem:[#allocation14_spill] sm:$0xff] }
 0x171   :  { %v5823_v31 = vadd.f32 1e-12, %v446_v23  ;;  %v718_v15 = vsel %vm5807_vm1, %v5498_v20, %v714_v5  ;;  %v728_v58 = vsel %vm5817_vm5, %v5414_v63, %v724_v14  ;;  %vm5833_vm9 = vmor %vm855_vm6, %vm856_vm4  ;;  %v2734_v27 = vsel %vm1931_vm2, %v5140_v40, 0.0 }
 0x172   :  { %v981_v43 = vpack.c.bf16 %v954_v60, %v953_v38  ;;  %v5841_v6 = vmul.f32 %v4552_v29, %v8508_v37  ;;  %vm795_vm10 = vweird.f32 %v5517_v17  ;;  %v820_v20 = vmul.f32 %v5752_v47, %v5682_v33  ;;  %vm5850_vm6 = vmor %vm865_vm7, %vm866_vm8  ;;  %2735 = vadd.xlane.f32.xlu2 %v2734_v27  ;;  %v8514_v38 = vld [vmem:[#allocation26_spill] sm:$0xff] }
 0x173   :  { %v5846_v23 = vadd.f32 1e-12, %v445_v35  ;;  %v881_v59 = vmul.f32 %v5774_v30, %v880_v49  ;;  %v858_v41 = vsel %vm5833_vm9, %v5639_v36, %v854_v61  ;;  %v868_v8 = vsel %vm5850_vm6, %v5668_v4, %v864_v48  ;;  %v5875_v4 = vld [vmem:[%s8124_s3 + $0x58] sm:$0x3] }
 0x174   :  { %1085 = vmatmul.bf16.gmra.mxu2 %v981_v43  ;;  %v803_v46 = vsub.f32 1.5, %v5701_v53  ;;  %v871_v34 = vmul.f32 %v5792_v28, %v870_v42  ;;  %v8513_v10 = vsub.f32 %v8511_v11, %v8512_v2  ;;  %v8516_v35 = vsub.f32 %v8514_v38, %v8515_v25  ;;  %v8519_v49 = vld [vmem:[#allocation76_spill] sm:$0xff]  ;;  %v328_v42 = vpop.xlane.xlu1 %327 }
 0x175   :  { %vm796_vm2 = vweird.f32 %v5583_v22  ;;  %3865 = vrsqrt.f32 %v5823_v31  ;;  %v794_v36 = vmul.f32 %v5583_v22, %v793_v45  ;;  %vm806_vm7 = vweird.f32 %v5621_v12 }
 0x176   :  { %v947_v7 = vmul.f32 %v718_v15, %v8513_v10  ;;  %v948_v26 = vmul.f32 %v728_v58, %v8516_v35  ;;  %v804_v53 = vmul.f32 %v5621_v12, %v803_v46  ;;  %v8517_v9 = vperm.slane %v4561_v19, 1  ;;  %vm5900_vm11 = vmor %vm795_vm10, %vm796_vm2  ;;  %v4059_v15 = vld [vmem:[#allocation2 + $0xd8] sm:$0xff]  ;;  %v8528_v58 = vld [vmem:[#allocation74_spill] sm:$0xff] }
 0x177   :  { %v810_v5 = vmul.f32 %v5718_v3, %v5624_v0  ;;  %3867 = vrsqrt.f32 %v5846_v23  ;;  %v8520_v54 = vsub.f32 %v8518_v18, %v8519_v49  ;;  %v8523_v60 = vsub.f32 %v8521_v44, %v8522_v51 }
 0x178   :  { %1645 = vperm.xlu0 %3774, %v8517_v9   ;;  %v5896_v14 = vmul.f32 %v4552_v29, %v8524_v56  ;;  %v882_v61 = vmul.f32 0.5, %v881_v59  ;;  %vm805_vm12 = vweird.f32 %v8527_v52  ;;  %v2743_v48 = vsel %vm8280_vm0, %v5875_v4, 0.0  ;;  %v5940_v49 = vpop.permute.xlu0 %1613 }
 0x179   :  { %v961_v21 = vmul.f32 %v858_v41, %v8520_v54  ;;  %v962_v45 = vmul.f32 %v868_v8, %v8523_v60  ;;  %v476_v24 = vsub.f32 %v4059_v15, %v8528_v58  ;;  %v408_v27 = vmul.f32 %v5841_v6, %v5841_v6  ;;  %vm5913_vm13 = vmor %vm805_vm12, %vm806_vm7  ;;  %v5917_v41 = vpop.xlane.xlu2 %1937  ;;  %v8531_v8 = vld [vmem:[#allocation50_spill] sm:$0xff]  ;;  %8536 = vst [vmem:[#allocation53_spill] sm:$0xff] %v5940_v49 }
 0x17a   :  { %v821_v37 = vmul.f32 %v5752_v47, %v820_v20  ;;  %v978_v63 = vpack.c.bf16 %v948_v26, %v947_v7  ;;  %v872_v59 = vmul.f32 0.5, %v871_v34  ;;  %v367_v46 = vmul.f32 %v8531_v8, %v4552_v29  ;;  %2744 = vadd.xlane.f32.xlu2 %v2743_v48  ;;  %v8532_v26 = vld [vmem:[#allocation31_spill] sm:$0xff] }
 0x17b   :  { %v798_v11 = vsel %vm5900_vm11, %v5583_v22, %v794_v36  ;;  %v808_v20 = vsel %vm5913_vm13, %v5621_v12, %v804_v53  ;;  %v811_v2 = vmul.f32 %v5718_v3, %v810_v5  ;;  %v368_v10 = vmul.f32 %v328_v42, %v4552_v29  ;;  %v5929_v34 = vpop.eup %3865  ;;  %v8533_v36 = vld [vmem:[#allocation72_spill] sm:$0xff] }
 0x17c   :  { %1070 = vmatmul.bf16.gmra.mxu1 %v978_v63  ;;  %v985_v7 = vpack.c.bf16 %v962_v45, %v961_v21  ;;  %v407_v38 = vmul.f32 %v5896_v14, %v5896_v14  ;;  %v883_v25 = vsub.f32 1.5, %v882_v61  ;;  %v822_v22 = vmul.f32 0.5, %v821_v37  ;;  %v4060_v37 = vld [vmem:[#allocation2 + $0x118] sm:$0xff] }
 0x17d   :  { %v5933_v35 = vpop.eup %3867  ;;  %v8534_v12 = vsub.f32 %v8532_v26, %v8533_v36  ;;  %v956_v9 = vmul.f32 %v808_v20, %v476_v24  ;;  %v873_v5 = vsub.f32 1.5, %v872_v59  ;;  %v8535_v18 = vperm.slane %v4561_v19, 6  ;;  %v6003_v36 = vld [vmem:[%s8124_s3 + $0x50] sm:$0xff] }
 0x17e   :  { %1105 = vmatmul.bf16.gmra.mxu3 %v985_v7  ;;  %v447_v29 = vsub.f32 %v367_v46, %v407_v38  ;;  %v812_v54 = vmul.f32 0.5, %v811_v2  ;;  %v448_v21 = vsub.f32 %v368_v10, %v408_v27  ;;  %v900_v44 = vmul.f32 %v5929_v34, %v5823_v31 }
 0x17f   :  { %v955_v53 = vmul.f32 %v798_v11, %v8534_v12  ;;  %v890_v51 = vmul.f32 %v5933_v35, %v5846_v23  ;;  %v884_v60 = vmul.f32 %v5774_v30, %v883_v25  ;;  %vm886_vm14 = vweird.f32 %v5774_v30  ;;  %v8542_v11 = vld [vmem:[#allocation44_spill] sm:$0xff] }
 0x180   :  { %1710 = vperm.xlu0 %3774, %v8535_v18   ;;  %v823_v45 = vsub.f32 1.5, %v822_v22  ;;  %vm885_vm15 = vweird.f32 %v5699_v16  ;;  %v5949_v61 = vadd.f32 1e-12, %v447_v29  ;;  %v874_v42 = vmul.f32 %v5792_v28, %v873_v5  ;;  %v6007_v29 = vpop.permute.xlu1 %1509 }
 0x181   :  { %v982_v56 = vpack.c.bf16 %v956_v9, %v955_v53  ;;  %vm876_vm1 = vweird.f32 %v5792_v28  ;;  %v8215_v43 = vperm.slane %v5220_v39, 2  ;;  %vm875_vm3 = vweird.f32 %v5706_v32  ;;  %vm5957_vm4 = vmor %vm885_vm15, %vm886_vm14  ;;  %v5963_v58 = vpop.permute.xlu2 %1496  ;;  %v8539_v32 = vld [vmem:[#allocation56_spill] sm:$0xff]  ;;  %v5973_v59 = vpop.f32.mrf.mxu0  ;;  %v4063_v53 = vld [vmem:[#allocation2 + $0xe8] sm:$0xff] }
 0x182   :  { %v5955_v52 = vadd.f32 1e-12, %v448_v21  ;;  %v901_v16 = vmul.f32 %v5929_v34, %v900_v44  ;;  %v891_v15 = vmul.f32 %v5933_v35, %v890_v51  ;;  %v888_v24 = vsel %vm5957_vm4, %v5774_v30, %v884_v60  ;;  %vm5969_vm5 = vmor %vm875_vm3, %vm876_vm1  ;;  %v4061_v30 = vld [vmem:[#allocation2 + $0x110] sm:$0xff]  ;;  %v8547_v9 = vld [vmem:[#allocation30_spill] sm:$0xff] }
 0x183   :  { %v813_v27 = vsub.f32 1.5, %v812_v54  ;;  %v484_v63 = vsub.f32 %v4060_v37, %v8539_v32  ;;  %3869 = vrsqrt.f32 %v5949_v61  ;;  %v878_v8 = vsel %vm5969_vm5, %v5792_v28, %v874_v42  ;;  %v5988_v28 = vpop.permute.xlu0 %1678  ;;  %v4064_v51 = vld [vmem:[#allocation2 + $0xe0] sm:$0xff] }
 0x184   :  { %1090 = vmatmul.bf16.gmra.mxu2 %v982_v56  ;;  %v824_v46 = vmul.f32 %v5752_v47, %v823_v45  ;;  %vm826_vm8 = vweird.f32 %v5752_v47  ;;  %v483_v20 = vsub.f32 %v4061_v30, %v8542_v11  ;;  %vm825_vm9 = vweird.f32 %v5682_v33  ;;  %8543 = vst [vmem:[#allocation71_spill] sm:$0xff] %v5988_v28  ;;  %v8548_v60 = vld [vmem:[#allocation38_spill] sm:$0xff] }
 0x185   :  { %3871 = vrsqrt.f32 %v5955_v52  ;;  %v964_v2 = vmul.f32 %v888_v24, %v484_v63  ;;  %v902_v10 = vmul.f32 0.5, %v901_v16  ;;  %v892_v7 = vmul.f32 0.5, %v891_v15  ;;  %vm5992_vm6 = vmor %vm825_vm9, %vm826_vm8  ;;  %v8553_v30 = vld [vmem:[#allocation46_spill] sm:$0xff] }
 0x186   :  { %v814_v38 = vmul.f32 %v5718_v3, %v813_v27  ;;  %vm816_vm10 = vweird.f32 %v5718_v3  ;;  %v963_v25 = vmul.f32 %v878_v8, %v483_v20  ;;  %v8544_v22 = vperm.slane %v8480_v13, 2 }
 0x187   :  { %vm815_vm2 = vweird.f32 %v5624_v0  ;;  %v828_v33 = vsel %vm5992_vm6, %v5752_v47, %v824_v46  ;;  %v8214_v12 = vperm.slane %v6003_v36, 4  ;;  %v478_v5 = vsub.f32 %v4063_v53, %v8547_v9  ;;  %v4065_v46 = vld [vmem:[#allocation2 + $0x120] sm:$0xff] }
 0x188   :  { %2461 = vperm.xlu0 %3774, %v8215_v43   ;;  %1528 = vperm.xlu1 %3760, %v8544_v22   ;;  %v986_v18 = vpack.c.bf16 %v964_v2, %v963_v25  ;;  %vm817_vm7 = vmor %vm815_vm2, %vm816_vm10  ;;  %v903_v0 = vsub.f32 1.5, %v902_v10  ;;  %v893_v21 = vsub.f32 1.5, %v892_v7  ;;  %v477_v45 = vsub.f32 %v4064_v51, %v8548_v60  ;;  %v6048_v2 = vld [vmem:[%s8123_s2] ss:$0 sm:$0xff]  ;;  %v6055_v26 = vpop.permute.xlu1 %1561 }
 0x189   :  { %v6009_v54 = vpop.eup %3869  ;;  %v818_v47 = vsel %vm817_vm7, %v5718_v3, %v814_v38  ;;  %v958_v56 = vmul.f32 %v828_v33, %v478_v5  ;;  %v6015_v42 = vpop.f32.mrf.mxu0  ;;  %vm896_vm11 = vweird.f32 %v5933_v35  ;;  %vm906_vm12 = vweird.f32 %v5929_v34  ;;  %v4066_v38 = vld [vmem:[#allocation2 + $0x128] sm:$0xff]  ;;  %v8555_v25 = vld [vmem:[#allocation49_spill] sm:$0xff] }
 0x18a   :  { %v6017_v48 = vpop.permute.xlu2 %1522  ;;  %v910_v16 = vmul.f32 %v6009_v54, %v5949_v61  ;;  %v957_v15 = vmul.f32 %v818_v47, %v477_v45  ;;  %v894_v24 = vmul.f32 %v5933_v35, %v893_v21  ;;  %v904_v27 = vmul.f32 %v5929_v34, %v903_v0 }
 0x18b   :  { %v6012_v44 = vpop.eup %3871  ;;  %vm895_vm13 = vweird.f32 %v5846_v23  ;;  %v8549_v32 = vperm.slane %v8480_v13, 3  ;;  %vm905_vm14 = vweird.f32 %v5823_v31  ;;  %v6037_v17 = vpop.permute.xlu0 %1743  ;;  %v8213_v8 = vperm.slane %v6003_v36, 6 }
 0x18c   :  { %v920_v3 = vmul.f32 %v6012_v44, %v5955_v52  ;;  %v983_v37 = vpack.c.bf16 %v958_v56, %v957_v15  ;;  %vm6033_vm15 = vmor %vm895_vm13, %vm896_vm11  ;;  %8552 = vst [vmem:[#allocation70_spill] sm:$0xff] %v6037_v17  ;;  %v485_v11 = vsub.f32 %v4065_v46, %v8553_v30  ;;  %v8554_v23 = vperm.slane %v8480_v13, 1  ;;  %v8558_v46 = vld [vmem:[#allocation43_spill] sm:$0xff] }
 0x18d   :  { %vm907_vm1 = vmor %vm905_vm14, %vm906_vm12  ;;  %v911_v20 = vmul.f32 %v6009_v54, %v910_v16  ;;  %v898_v10 = vsel %vm6033_vm15, %v5933_v35, %v894_v24  ;;  %v486_v22 = vsub.f32 %v4066_v38, %v8555_v25  ;;  %v8557_v60 = vperm.slane %v8480_v13, 4  ;;  %v4068_v38 = vld [vmem:[#allocation2 + $0x130] sm:$0xff] }
 0x18e   :  { %1110 = vmatmul.bf16.gmra.mxu3 %v986_v18  ;;  %v921_v31 = vmul.f32 %v6012_v44, %v920_v3  ;;  %v908_v7 = vsel %vm907_vm1, %v5929_v34, %v904_v27  ;;  %v965_v9 = vmul.f32 %v898_v10, %v485_v11  ;;  %v8556_v34 = vperm.slane %v8480_v13, 7 }
 0x18f   :  { %v966_v5 = vmul.f32 %v908_v7, %v486_v22  ;;  %v912_v18 = vmul.f32 0.5, %v911_v20  ;;  %vm916_vm3 = vweird.f32 %v6009_v54  ;;  %vm926_vm4 = vweird.f32 %v6012_v44  ;;  %v4067_v20 = vld [vmem:[#allocation2 + $0x138] sm:$0xff] }
 0x190   :  { %2487 = vperm.xlu0 %3774, %v8214_v12   ;;  %1541 = vperm.xlu1 %3760, %v8549_v32   ;;  %v922_v0 = vmul.f32 0.5, %v921_v31  ;;  %v6068_v27 = vpop.permute.xlu1 %1574  ;;  %vm915_vm5 = vweird.f32 %v5949_v61  ;;  %v8559_v30 = vperm.slane %v8558_v46, 0  ;;  %v8212_v11 = vperm.slane %v5875_v4, 0 }
 0x191   :  { %v1031_v33 = vpop.f32.mrf.mxu0  ;;  %v987_v51 = vpack.c.bf16 %v966_v5, %v965_v9  ;;  %v913_v45 = vsub.f32 1.5, %v912_v18  ;;  %vm925_vm8 = vweird.f32 %v5955_v52  ;;  %vm917_vm9 = vmor %vm915_vm5, %vm916_vm3  ;;  %v488_v31 = vsub.f32 %v4067_v20, %v5841_v6 }
 0x192   :  { %1515 = vperm.xlu2 %3762, %v8554_v23   ;;  %v1032_v53 = vadd.f32 %v6048_v2, %v1031_v33  ;;  %v6060_v21 = vpop.permute.xlu2 %1535  ;;  %v923_v56 = vsub.f32 1.5, %v922_v0  ;;  %vm927_vm10 = vmor %vm925_vm8, %vm926_vm4  ;;  %v8561_v10 = vperm.slane %v8480_v13, 5  ;;  %v487_v52 = vsub.f32 %v4068_v38, %v5896_v14 }
 0x193   :  { %v2313_v16 = vpop.permute.xlu0 %2312  ;;  %v8564_v0 = vperm.slane %v4561_v19, 2  ;;  %v8606_v28 = vperm.slane %v5220_v39, 3 }
 0x194   :  { %1095 = vmatmul.bf16.gmra.mxu2 %v983_v37  ;;  %v1168_v35 = vmul.f32 0.044715, %v1032_v53  ;;  %v914_v37 = vmul.f32 %v6009_v54, %v913_v45  ;;  %v924_v32 = vmul.f32 %v6012_v44, %v923_v56 }
 0x196   :  { %v1208_v47 = vmul.f32 %v1168_v35, %v1032_v53  ;;  %v918_v61 = vsel %vm917_vm9, %v6009_v54, %v914_v37  ;;  %v928_v7 = vsel %vm927_vm10, %v6012_v44, %v924_v32  ;;  %v1128_v54 = vmul.f32 0.5, %v1032_v53 }
 0x197   :  { %v967_v6 = vmul.f32 %v918_v61, %v487_v52  ;;  %v968_v9 = vmul.f32 %v928_v7, %v488_v31  ;;  %v8568_v32 = vperm.slane %v4561_v19, 3  ;;  %v8571_v7 = vperm.slane %v4561_v19, 7 }
 0x198   :  { %2513 = vperm.xlu0 %3774, %v8213_v8   ;;  %1593 = vperm.xlu1 %3760, %v8556_v34   ;;  %v1248_v15 = vmul.f32 %v1208_v47, %v1032_v53  ;;  %v6092_v18 = vpop.permute.xlu1 %1626 }
 0x199   :  { %v6066_v3 = vpop.f32.mrf.mxu0  ;;  %8563 = vst [vmem:[#allocation20_spill] sm:$0xff] %v6092_v18  ;;  %v988_v14 = vpack.c.bf16 %v968_v9, %v967_v6  ;;  %v8573_v9 = vperm.slane %v4561_v19, 4 }
 0x19a   :  { %1554 = vperm.xlu2 %3762, %v8557_v60   ;;  %v1288_v24 = vadd.f32 %v1248_v15, %v1032_v53  ;;  %v6079_v23 = vpop.permute.xlu2 %1587  ;;  %v6109_v53 = vadd.f32 %v6048_v2, %v5973_v59 }
 0x19b   :  { %8560 = vst [vmem:[#allocation21_spill] sm:$0xff] %v6079_v23  ;;  %v6090_v33 = vpop.permute.xlu0 %2442 }
 0x19c   :  { %v1328_v63 = vmul.f32 0.7978846, %v1288_v24  ;;  %8562 = vst [vmem:[#allocation61_spill] sm:$0xff] %v6090_v33 }
 0x19e   :  { %1115 = vmatmul.bf16.gmra.mxu3 %v987_v51  ;;  %3873 = vtanh.f32 %v1328_v63  ;;  %v8565_v51 = vperm.slane %v8558_v46, 1  ;;  %v6117_v46 = vadd.f32 %v6048_v2, %v6015_v42 }
 0x1a0   :  { %1606 = vperm.xlu1 %3760, %v8559_v30   ;;  %2539 = vperm.xlu0 %3774, %v8212_v11   ;;  %v6096_v44 = vpop.f32.mrf.mxu1  ;;  %v6113_v63 = vpop.permute.xlu1 %1639  ;;  %v1166_v30 = vmul.f32 0.044715, %v6109_v53  ;;  %v1167_v31 = vmul.f32 0.044715, %v6117_v46 }
 0x1a1   :  { %v1036_v25 = vpop.f32.mrf.mxu0 }
 0x1a2   :  { %1567 = vperm.xlu2 %3762, %v8561_v10   ;;  %v1037_v22 = vadd.f32 %v6048_v2, %v1036_v25  ;;  %v6102_v60 = vpop.permute.xlu2 %1600  ;;  %v1206_v61 = vmul.f32 %v1166_v30, %v6109_v53  ;;  %v1207_v25 = vmul.f32 %v1167_v31, %v6117_v46 }
 0x1a3   :  { %8566 = vst [vmem:[#allocation59_spill] sm:$0xff] %v6102_v60  ;;  %v2326_v24 = vpop.permute.xlu0 %2325 }
 0x1a4   :  { %v3874_v5 = vpop.eup %3873  ;;  %v1170_v13 = vmul.f32 0.044715, %v1037_v22  ;;  %v1130_v38 = vmul.f32 0.5, %v1037_v22 }
 0x1a5   :  { %v1408_v35 = vadd.f32 1.0, %v3874_v5  ;;  %v1246_v5 = vmul.f32 %v1206_v61, %v6109_v53 }
 0x1a6   :  { %v1210_v34 = vmul.f32 %v1170_v13, %v1037_v22 }
 0x1a7   :  { %v6098_v47 = vmul.f32 %v1408_v35, %v1128_v54  ;;  %v1247_v35 = vmul.f32 %v1207_v25, %v6117_v46 }
 0x1a8   :  { %1658 = vperm.xlu1 %3760, %v8564_v0   ;;  %v1250_v45 = vmul.f32 %v1210_v34, %v1037_v22  ;;  %v6122_v20 = vpop.f32.mrf.mxu1  ;;  %v6138_v13 = vpop.permute.xlu1 %1691 }
 0x1a9   :  { %v6105_v56 = vmul.f32 %v2313_v16, %v6098_v47  ;;  %v8569_v16 = vperm.slane %v4561_v19, 0  ;;  %8574 = vst [vmem:[#allocation78_spill] sm:$0xff] %v6138_v13 }
 0x1aa   :  { %1619 = vperm.xlu2 %3762, %v8565_v51   ;;  %v1290_v15 = vadd.f32 %v1250_v45, %v1037_v22  ;;  %v6124_v59 = vpop.permute.xlu2 %1652  ;;  %v8577_v51 = vperm.slane %v5074_v1, 0 }
 0x1ab   :  { %8567 = vst [vmem:[#allocation25_spill] sm:$0xff] %v6105_v56  ;;  %v6130_v52 = vpop.permute.xlu0 %2468 }
 0x1ac   :  { %v1330_v37 = vmul.f32 0.7978846, %v1290_v15  ;;  %8570 = vst [vmem:[#allocation65_spill] sm:$0xff] %v6124_v59  ;;  %v1287_v15 = vadd.f32 %v1247_v35, %v6117_v46 }
 0x1ad   :  { %8572 = vst [vmem:[#allocation77_spill] sm:$0xff] %v6130_v52 }
 0x1ae   :  { %1120 = vmatmul.bf16.gmra.mxu3 %v988_v14  ;;  %3875 = vtanh.f32 %v1330_v37  ;;  %v1286_v14 = vadd.f32 %v1246_v5, %v6109_v53  ;;  %v8578_v37 = vperm.slane %v4561_v19, 5  ;;  %v8582_v5 = vperm.slane %v5074_v1, 1 }
 0x1af   :  { %v6172_v1 = vadd.f32 %v6048_v2, %v6066_v3 }
 0x1b0   :  { %1671 = vperm.xlu1 %3760, %v8568_v32   ;;  %v1326_v32 = vmul.f32 0.7978846, %v1286_v14  ;;  %v6153_v61 = vpop.permute.xlu1 %1704 }
 0x1b1   :  { %8579 = vst [vmem:[#allocation18_spill] sm:$0xff] %v6153_v61 }
 0x1b2   :  { %1632 = vperm.xlu2 %3762, %v8569_v16   ;;  %v6145_v34 = vpop.permute.xlu2 %1665  ;;  %3877 = vtanh.f32 %v1326_v32 }
 0x1b3   :  { %8576 = vst [vmem:[#allocation52_spill] sm:$0xff] %v6145_v34 }
 0x1b4   :  { %v3876_v10 = vpop.eup %3875  ;;  %v2378_v16 = vpop.permute.xlu0 %2377 }
 0x1b5   :  { %v1410_v42 = vadd.f32 1.0, %v3876_v10  ;;  %v1327_v10 = vmul.f32 0.7978846, %v1287_v15 }
 0x1b7   :  { %v6133_v6 = vmul.f32 %v1410_v42, %v1130_v38  ;;  %v8580_v42 = vperm.slane %v5140_v40, 0  ;;  %3879 = vtanh.f32 %v1327_v10  ;;  %v1038_v10 = vpop.f32.mrf.mxu0 }
 0x1b8   :  { %1723 = vperm.xlu1 %3760, %v8571_v7  }
 0x1b9   :  { %v6141_v0 = vmul.f32 %v2326_v24, %v6133_v6 }
 0x1ba   :  { %1684 = vperm.xlu2 %3762, %v8573_v9   ;;  %v1056_v54 = vpop.f32.mrf.mxu1  ;;  %v6158_v9 = vpop.permute.xlu2 %1717 }
 0x1bb   :  { %8575 = vst [vmem:[#allocation16_spill] sm:$0xff] %v6141_v0  ;;  %v1057_v22 = vadd.f32 %v6048_v2, %v1056_v54  ;;  %v3878_v54 = vpop.eup %3877 }
 0x1bc   :  { %8581 = vst [vmem:[#allocation57_spill] sm:$0xff] %v6158_v9 }
 0x1bd   :  { %v1178_v45 = vmul.f32 0.044715, %v1057_v22 }
 0x1bf   :  { %v1218_v24 = vmul.f32 %v1178_v45, %v1057_v22  ;;  %v3880_v45 = vpop.eup %3879 }
 0x1c0   :  { %1736 = vperm.xlu1 %3760, %v8577_v51  }
 0x1c1   :  { %v1258_v30 = vmul.f32 %v1218_v24, %v1057_v22  ;;  %v1406_v24 = vadd.f32 1.0, %v3878_v54 }
 0x1c2   :  { %1697 = vperm.xlu2 %3762, %v8578_v37   ;;  %v1058_v31 = vpop.f32.mrf.mxu1 }
 0x1c3   :  { %v1059_v7 = vadd.f32 %v6048_v2, %v1058_v31  ;;  %v1298_v38 = vadd.f32 %v1258_v30, %v1057_v22  ;;  %v8585_v30 = vperm.slane %v5140_v40, 1 }
 0x1c4   :  { %v6162_v35 = vpop.permute.xlu0 %2520 }
 0x1c5   :  { %v1338_v25 = vmul.f32 0.7978846, %v1298_v38  ;;  %v1179_v19 = vmul.f32 0.044715, %v1059_v7  ;;  %8583 = vst [vmem:[#allocation19_spill] sm:$0xff] %v6162_v35  ;;  %v1138_v38 = vmul.f32 0.5, %v1057_v22 }
 0x1c6   :  { %v1127_v22 = vmul.f32 0.5, %v6117_v46 }
 0x1c7   :  { %3881 = vtanh.f32 %v1338_v25  ;;  %v1219_v51 = vmul.f32 %v1179_v19, %v1059_v7  ;;  %v1126_v25 = vmul.f32 0.5, %v6109_v53  ;;  %v8586_v19 = vperm.slane %v5220_v39, 1 }
 0x1c8   :  { %2305 = vperm.xlu1 %3760, %v8580_v42  }
 0x1c9   :  { %v1259_v31 = vmul.f32 %v1219_v51, %v1059_v7  ;;  %v6183_v3 = vmul.f32 %v1406_v24, %v1126_v25 }
 0x1ca   :  { %1749 = vperm.xlu2 %3762, %v8582_v5   ;;  %v6166_v32 = vpop.f32.mrf.mxu2  ;;  %v1407_v5 = vadd.f32 1.0, %v3880_v45 }
 0x1cb   :  { %v1934_v14 = vpop.xlane.xlu1 %1933  ;;  %v1299_v54 = vadd.f32 %v1259_v31, %v1059_v7  ;;  %8588 = vst [vmem:[#allocation24_spill] sm:$0xff] %v6183_v3  ;;  %v1751_v24 = vmul.f32 %v5963_v58, %v6183_v3 }
 0x1cc   :  { %v6164_v15 = vadd.f32 1e-06, %v1934_v14  ;;  %v6178_v14 = vpop.permute.xlu2 %1730  ;;  %v6189_v8 = vmul.f32 %v1407_v5, %v1127_v22  ;;  %v6203_v22 = vadd.f32 %v6048_v2, %v1038_v10 }
 0x1cd   :  { %v3882_v37 = vpop.eup %3881  ;;  %8587 = vst [vmem:[#allocation75_spill] sm:$0xff] %v6178_v14  ;;  %v1339_v53 = vmul.f32 0.7978846, %v1299_v54  ;;  %v8592_v54 = vld [vmem:[#allocation40_spill] sm:$0xff] }
 0x1ce   :  { %8584 = vst [vmem:[#allocation58_spill] sm:$0xff] %v6164_v15  ;;  %v1418_v42 = vadd.f32 1.0, %v3882_v37  ;;  %3883 = vrcp.f32 %v6164_v15  ;;  %v6181_v51 = vrot.slane %v6164_v15, 6  ;;  %v1169_v37 = vmul.f32 0.044715, %v6172_v1 }
 0x1cf   :  { %8590 = vst [vmem:[#allocation39_spill] sm:$0xff] %v6189_v8  ;;  %v1171_v10 = vmul.f32 0.044715, %v6203_v22  ;;  %vm1994_vm2 = vweird.f32 %v6164_v15 }
 0x1d0   :  { %2318 = vperm.xlu1 %3760, %v8585_v30   ;;  %v1458_v30 = vmul.f32 %v1418_v42, %v1138_v38  ;;  %3885 = vrcp.f32 %v6181_v51  ;;  %v8591_v38 = vperm.slane %v5140_v40, 2  ;;  %vm2084_vm13 = vweird.f32 %v6181_v51 }
 0x1d1   :  { %3887 = vtanh.f32 %v1339_v53  ;;  %v6205_v53 = vpop.f32.mrf.mxu0 }
 0x1d2   :  { %2448 = vperm.xlu2 %3762, %v8586_v19   ;;  %v6187_v11 = vmul.f32 %v2378_v16, %v1458_v30  ;;  %v1209_v16 = vmul.f32 %v1169_v37, %v6172_v1  ;;  %v6199_v25 = vpop.f32.mrf.mxu2  ;;  %v1061_v34 = vpop.f32.mrf.mxu1 }
 0x1d4   :  { %8589 = vst [vmem:[#allocation64_spill] sm:$0xff] %v6187_v11  ;;  %v3884_v45 = vpop.eup %3883  ;;  %v6209_v43 = vpop.permute.xlu2 %2299  ;;  %v1249_v37 = vmul.f32 %v1209_v16, %v6172_v1  ;;  %v1139_v11 = vmul.f32 0.5, %v1059_v7  ;;  %v1998_v16 = vand.u32 2147483647, %v6164_v15  ;;  %v2000_v7 = vand.u32 2147483648, %v6164_v15 }
 0x1d5   :  { %v1990_v42 = vmul.f32 %v3884_v45, %v6164_v15  ;;  %vm1995_vm6 = vweird.f32 %v3884_v45 }
 0x1d6   :  { %vm6226_vm7 = vmor %vm1994_vm2, %vm1995_vm6  ;;  %vm1999_vm11 = vcmp.eq.f32.partialorder %v1998_v16, 8.507059e+37 }
 0x1d7   :  { %v1503_v31 = vpop.permute.xlu0 %1502  ;;  %v1991_v5 = vsub.f32 1.0, %v1990_v42 }
 0x1d8   :  { %2331 = vperm.xlu1 %3760, %v8591_v38   ;;  %v1752_v46 = vmul.f32 %v1503_v31, %v6189_v8  ;;  %v6207_v38 = vpop.eup %3885 }
 0x1d9   :  { %v1992_v12 = vmul.f32 %v3884_v45, %v1991_v5  ;;  %v3888_v31 = vpop.eup %3887  ;;  %vm2085_vm12 = vweird.f32 %v6207_v38 }
 0x1da   :  { %v1791_v19 = vadd.f32 %v1752_v46, %v1751_v24  ;;  %3763 = vset.pattern.permute.xlu2 %v8592_v54  ;;  %v1419_v24 = vadd.f32 1.0, %v3888_v31  ;;  %v2080_v46 = vmul.f32 %v6207_v38, %v6181_v51  ;;  %v1763_v31 = vmul.f32 %v6068_v27, %v1458_v30  ;;  %vm2086_vm14 = vmor %vm2084_vm13, %vm2085_vm12 }
 0x1db   :  { %v1993_v14 = vadd.f32 %v3884_v45, %v1992_v12  ;;  %v8594_v12 = vperm.slane %v5220_v39, 2  ;;  %v2001_v30 = vor.u32 1.1754944e-38, %v2000_v7 }
 0x1dc   :  { %v1792_v58 = vrot.slane %v1791_v19, 4  ;;  %v6216_v5 = vmul.f32 %v1419_v24, %v1139_v11  ;;  %v2081_v52 = vsub.f32 1.0, %v2080_v46  ;;  %v1211_v46 = vmul.f32 %v1171_v10, %v6203_v22 }
 0x1dd   :  { %v1997_v0 = vsel %vm6226_vm7, %v3884_v45, %v1993_v14 }
 0x1de   :  { %v1793_v35 = vadd.f32 %v1792_v58, %v1791_v19  ;;  %8593 = vst [vmem:[#allocation29_spill] sm:$0xff] %v6216_v5  ;;  %v1289_v19 = vadd.f32 %v1249_v37, %v6172_v1  ;;  %v2082_v14 = vmul.f32 %v6207_v38, %v2081_v52  ;;  %v2090_v52 = vand.u32 2147483648, %v6181_v51 }
 0x1e0   :  { %v1794_v62 = vrot.slane %v1793_v35, 2  ;;  %3764 = vset.pattern.permute.xlu1 %v8592_v54  ;;  %v1329_v45 = vmul.f32 0.7978846, %v1289_v19  ;;  %v2083_v33 = vadd.f32 %v6207_v38, %v2082_v14  ;;  %v2088_v19 = vand.u32 2147483647, %v6181_v51 }
 0x1e1   :  { %v1581_v42 = vpop.permute.xlu0 %1580  ;;  %v2091_v14 = vor.u32 1.1754944e-38, %v2090_v52 }
 0x1e2   :  { %v1795_v58 = vadd.f32 %v1794_v62, %v1793_v35  ;;  %v1764_v17 = vmul.f32 %v1581_v42, %v6216_v5  ;;  %2455 = vperm.xlu2 %3763, %v8594_v12   ;;  %v1081_v56 = vpop.f32.mrf.mxu2  ;;  %v6235_v62 = vld [vmem:[%s8124_s3 + $0x40] sm:$0xff]  ;;  %v1043_v35 = vpop.f32.mrf.mxu0  ;;  %3889 = vtanh.f32 %v1329_v45  ;;  %vm2089_vm15 = vcmp.eq.f32.partialorder %v2088_v19, 8.507059e+37 }
 0x1e3   :  { %v2333_v27 = vperm.slane %v6235_v62, 3  ;;  %v6245_v5 = vpop.xlane.xlu1 %1943  ;;  %v6254_v10 = vadd.f32 %v6048_v2, %v1081_v56 }
 0x1e4   :  { %v1796_v24 = vrot.slane %v1795_v58, 1  ;;  %v1833_v8 = vadd.f32 %v1764_v17, %v1763_v31  ;;  %v2002_v17 = vsel %vm1999_vm11, %v2001_v30, %v1997_v0  ;;  %v1251_v31 = vmul.f32 %v1211_v46, %v6203_v22 }
 0x1e5   :  { %v6238_v37 = vpop.xlane.xlu2 %2735  ;;  %v2087_v30 = vsel %vm2086_vm14, %v6207_v38, %v2083_v33 }
 0x1e6   :  { %v1797_v42 = vadd.f32 %v1796_v24, %v1795_v58  ;;  %v1834_v12 = vrot.slane %v1833_v8, 4  ;;  %v1291_v16 = vadd.f32 %v1251_v31, %v6203_v22  ;;  %v2424_v58 = vperm.slane %v6003_v36, 0 }
 0x1e7   :  { %v6267_v31 = vadd.f32 %v6048_v2, %v6205_v53 }
 0x1e8   :  { %v6243_v11 = vmul.f32 %v2002_v17, %v1797_v42  ;;  %v1835_v9 = vadd.f32 %v1834_v12, %v1833_v8  ;;  %2338 = vperm.xlu1 %3764, %v2333_v27   ;;  %v1331_v0 = vmul.f32 0.7978846, %v1291_v16  ;;  %v3890_v45 = vpop.eup %3889  ;;  %v1188_v17 = vmul.f32 0.044715, %v6254_v10 }
 0x1ea   :  { %8597 = vst [vmem:[#allocation69_spill] sm:$0xff] %v6243_v11  ;;  %v1836_v7 = vrot.slane %v1835_v9, 2  ;;  %3765 = vset.pattern.permute.xlu2 %v5659_v57  ;;  %v1083_v46 = vpop.f32.mrf.mxu2  ;;  %3891 = vtanh.f32 %v1331_v0  ;;  %v1046_v12 = vpop.f32.mrf.mxu0  ;;  %v6277_v0 = vadd.f32 1e-06, %v5917_v41  ;;  %v1228_v53 = vmul.f32 %v1188_v17, %v6254_v10 }
 0x1eb   :  { %v6263_v51 = vadd.f32 %v6048_v2, %v1083_v46  ;;  %v6270_v33 = vadd.f32 %v6048_v2, %v1046_v12  ;;  %v6274_v16 = vpop.xlane.xlu1 %2741  ;;  %v6291_v46 = vadd.f32 %v6048_v2, %v1043_v35 }
 0x1ec   :  { %v1837_v8 = vadd.f32 %v1836_v7, %v1835_v9  ;;  %v2092_v9 = vsel %vm2089_vm15, %v2091_v14, %v2087_v30  ;;  %v1409_v7 = vadd.f32 1.0, %v3890_v45  ;;  %8600 = vst [vmem:[#allocation60_spill] sm:$0xff] %v6277_v0  ;;  %v6287_v30 = vrot.slane %v6164_v15, 1 }
 0x1ed   :  { %v6259_v42 = vpop.xlane.xlu2 %2744  ;;  %v1189_v19 = vmul.f32 0.044715, %v6263_v51  ;;  %v1174_v41 = vmul.f32 0.044715, %v6270_v33  ;;  %v6298_v14 = vrot.slane %v6164_v15, 2  ;;  %v6307_v35 = vrot.slane %v6277_v0, 1 }
 0x1ee   :  { %v1838_v24 = vrot.slane %v1837_v8, 1  ;;  %8598 = vst [vmem:[#allocation28_spill] sm:$0xff] %v6259_v42  ;;  %3893 = vrcp.f32 %v6287_v30  ;;  %v1131_v45 = vmul.f32 0.5, %v6203_v22  ;;  %v1173_v11 = vmul.f32 0.044715, %v6291_v46 }
 0x1ef   :  { %8602 = vst [vmem:[#allocation63_spill] sm:$0xff] %v6307_v35  ;;  %3895 = vrcp.f32 %v6277_v0  ;;  %v6330_v22 = vadd.f32 1e-06, %v5695_v50  ;;  %v6344_v50 = vadd.f32 %v6048_v2, %v1061_v34  ;;  %v2015_v59 = vand.u32 2147483648, %v6287_v30 }
 0x1f0   :  { %v1839_v56 = vadd.f32 %v1838_v24, %v1837_v8  ;;  %2429 = vperm.xlu1 %3764, %v2424_v58   ;;  %v3892_v52 = vpop.eup %3891  ;;  %v6281_v8 = vadd.f32 %v6048_v2, %v6096_v44  ;;  %v1129_v24 = vmul.f32 0.5, %v6172_v1  ;;  %v6303_v1 = vld [vmem:[%s8124_s3 + $0x48] sm:$0x3]  ;;  %3897 = vrcp.f32 %v6298_v14 }
 0x1f1   :  { %v1411_v44 = vadd.f32 1.0, %v3892_v52  ;;  %v1229_v52 = vmul.f32 %v1189_v19, %v6263_v51  ;;  %v1214_v19 = vmul.f32 %v1174_v41, %v6270_v33  ;;  %3899 = vrcp.f32 %v6307_v35  ;;  %8604 = vst [vmem:[#allocation62_spill] sm:$0xff] %v6330_v22 }
 0x1f2   :  { %v6272_v38 = vmul.f32 %v2092_v9, %v1839_v56  ;;  %2344 = vperm.xlu2 %3765, %v2333_v27   ;;  %v1172_v27 = vmul.f32 0.044715, %v6267_v31  ;;  %v6294_v12 = vmul.f32 %v1409_v7, %v1129_v24  ;;  %v1176_v17 = vmul.f32 0.044715, %v6281_v8  ;;  %v1048_v7 = vpop.f32.mrf.mxu0 }
 0x1f3   :  { %v1268_v56 = vmul.f32 %v1228_v53, %v6254_v10  ;;  %v1753_v24 = vmul.f32 %v6007_v29, %v6098_v47  ;;  %v6322_v53 = vadd.f32 %v6048_v2, %v6166_v32  ;;  %v6325_v47 = vmul.f32 %v1411_v44, %v1131_v45 }
 0x1f4   :  { %8599 = vst [vmem:[#allocation68_spill] sm:$0xff] %v6272_v38  ;;  %v1212_v38 = vmul.f32 %v1172_v27, %v6267_v31  ;;  %v6333_v27 = vadd.f32 %v6048_v2, %v1048_v7  ;;  %vm2009_vm3 = vweird.f32 %v6287_v30  ;;  %vm2024_vm8 = vweird.f32 %v6298_v14 }
 0x1f5   :  { %8601 = vst [vmem:[#allocation23_spill] sm:$0xff] %v6294_v12  ;;  %v1516_v9 = vpop.permute.xlu2 %1515  ;;  %v1308_v32 = vadd.f32 %v1268_v56, %v6254_v10  ;;  %v1254_v56 = vmul.f32 %v1214_v19, %v6270_v33 }
 0x1f6   :  { %v1754_v42 = vmul.f32 %v1516_v9, %v6294_v12  ;;  %8603 = vst [vmem:[#allocation22_spill] sm:$0xff] %v6325_v47  ;;  %v3894_v9 = vpop.eup %3893  ;;  %v1252_v45 = vmul.f32 %v1212_v38, %v6267_v31  ;;  %v6355_v38 = vrot.slane %v6330_v22, 1  ;;  %v1063_v22 = vpop.f32.mrf.mxu1 }
 0x1f7   :  { %v2005_v7 = vmul.f32 %v3894_v9, %v6287_v30  ;;  %v6351_v12 = vpop.eup %3895  ;;  %vm2010_vm1 = vweird.f32 %v3894_v9 }
 0x1f8   :  { %3766 = vset.pattern.permute.xlu1 %v5659_v57  ;;  %v1798_v29 = vadd.f32 %v1754_v42, %v1753_v24  ;;  %v1269_v42 = vmul.f32 %v1229_v52, %v6263_v51  ;;  %v1186_v24 = vmul.f32 0.044715, %v6322_v53  ;;  %v1213_v52 = vmul.f32 %v1173_v11, %v6291_v46  ;;  %8605 = vst [vmem:[#allocation36_spill] sm:$0xff] %v6351_v12  ;;  %v3898_v40 = vpop.eup %3897  ;;  %vm2011_vm4 = vmor %vm2009_vm3, %vm2010_vm1 }
 0x1f9   :  { %v2006_v34 = vsub.f32 1.0, %v2005_v7  ;;  %v6361_v11 = vpop.eup %3899  ;;  %v2020_v60 = vmul.f32 %v3898_v40, %v6298_v14  ;;  %vm2025_vm9 = vweird.f32 %v3898_v40  ;;  %3901 = vrcp.f32 %v6355_v38 }
 0x1fa   :  { %v1529_v13 = vpop.permute.xlu1 %1528  ;;  %2435 = vperm.xlu2 %3765, %v2424_v58   ;;  %v6337_v58 = vmul.f32 %v1176_v17, %v6281_v8  ;;  %v1799_v41 = vrot.slane %v1798_v29, 4  ;;  %v1755_v17 = vmul.f32 %v6017_v48, %v6133_v6  ;;  %v1309_v19 = vadd.f32 %v1269_v42, %v6263_v51  ;;  %8607 = vst [vmem:[#allocation42_spill] sm:$0xff] %v6361_v11  ;;  %vm6390_vm10 = vmor %vm2024_vm8, %vm2025_vm9 }
 0x1fb   :  { %v1756_v44 = vmul.f32 %v1529_v13, %v6325_v47  ;;  %v1175_v13 = vmul.f32 0.044715, %v6333_v27  ;;  %v1348_v47 = vmul.f32 0.7978846, %v1308_v32  ;;  %v2013_v48 = vand.u32 2147483647, %v6287_v30 }
 0x1fc   :  { %v1800_v35 = vadd.f32 %v1799_v41, %v1798_v29  ;;  %v2007_v41 = vmul.f32 %v3894_v9, %v2006_v34  ;;  %v1292_v42 = vadd.f32 %v1252_v45, %v6267_v31  ;;  %v1349_v34 = vmul.f32 0.7978846, %v1309_v19 }
 0x1fd   :  { %v1805_v6 = vadd.f32 %v1756_v44, %v1755_v17  ;;  %v2021_v44 = vsub.f32 1.0, %v2020_v60  ;;  %v6370_v17 = vrot.slane %v6164_v15, 4  ;;  %v1215_v18 = vmul.f32 %v1175_v13, %v6333_v27 }
 0x1fe   :  { %v1801_v29 = vrot.slane %v1800_v35, 2  ;;  %v2008_v39 = vadd.f32 %v3894_v9, %v2007_v41  ;;  %vm2014_vm5 = vcmp.eq.f32.partialorder %v2013_v48, 8.507059e+37  ;;  %v2030_v41 = vand.u32 2147483648, %v6298_v14 }
 0x1ff   :  { %v1806_v7 = vrot.slane %v1805_v6, 4  ;;  %v1294_v19 = vadd.f32 %v1254_v56, %v6270_v33  ;;  %v2028_v13 = vand.u32 2147483647, %v6298_v14  ;;  %v1180_v48 = vmul.f32 0.044715, %v6344_v50 }
 0x200   :  { %2474 = vperm.xlu1 %3766, %v8606_v28   ;;  %v1802_v32 = vadd.f32 %v1801_v29, %v1800_v35  ;;  %v1253_v28 = vmul.f32 %v1213_v52, %v6291_v46  ;;  %v2012_v61 = vsel %vm2011_vm4, %v3894_v9, %v2008_v39  ;;  %v2016_v35 = vor.u32 1.1754944e-38, %v2015_v59 }
 0x201   :  { %v1807_v49 = vadd.f32 %v1806_v7, %v1805_v6  ;;  %v2022_v29 = vmul.f32 %v3898_v40, %v2021_v44  ;;  %v1255_v59 = vmul.f32 %v1215_v18, %v6333_v27  ;;  %v1226_v9 = vmul.f32 %v1186_v24, %v6322_v53 }
 0x202   :  { %3767 = vset.pattern.permute.xlu2 %v8592_v54  ;;  %v1803_v11 = vrot.slane %v1802_v32, 1  ;;  %v2017_v30 = vsel %vm2014_vm5, %v2016_v35, %v2012_v61  ;;  %v6384_v61 = vadd.f32 %v6048_v2, %v6199_v25  ;;  %3903 = vtanh.f32 %v1349_v34 }
 0x203   :  { %v1808_v45 = vrot.slane %v1807_v49, 2  ;;  %v2023_v60 = vadd.f32 %v3898_v40, %v2022_v29  ;;  %v1293_v6 = vadd.f32 %v1253_v28, %v6291_v46  ;;  %3905 = vtanh.f32 %v1348_v47 }
 0x204   :  { %v1804_v52 = vadd.f32 %v1803_v11, %v1802_v32  ;;  %v2031_v25 = vor.u32 1.1754944e-38, %v2030_v41  ;;  %v1295_v11 = vadd.f32 %v1255_v59, %v6333_v27  ;;  %v1334_v32 = vmul.f32 0.7978846, %v1294_v19 }
 0x205   :  { %v1809_v39 = vadd.f32 %v1808_v45, %v1807_v49  ;;  %v6394_v49 = vpop.f32.mrf.mxu3  ;;  %v2027_v18 = vsel %vm6390_vm10, %v3898_v40, %v2023_v60  ;;  %vm2029_vm6 = vcmp.eq.f32.partialorder %v2028_v13, 8.507059e+37  ;;  %3907 = vrcp.f32 %v6370_v17 }
 0x206   :  { %v6376_v23 = vmul.f32 %v2017_v30, %v1804_v52  ;;  %v1332_v7 = vmul.f32 0.7978846, %v1292_v42  ;;  %v6403_v44 = vadd.f32 %v6048_v2, %v6122_v20  ;;  %v2032_v34 = vsel %vm2029_vm6, %v2031_v25, %v2027_v18  ;;  %v6409_v52 = vpop.eup %3901  ;;  %v1066_v18 = vpop.f32.mrf.mxu1 }
 0x207   :  { %v1810_v24 = vrot.slane %v1809_v39, 1  ;;  %v1335_v35 = vmul.f32 0.7978846, %v1295_v11  ;;  %3909 = vtanh.f32 %v1334_v32  ;;  %v1266_v40 = vmul.f32 %v1226_v9, %v6322_v53 }
 0x208   :  { %8608 = vst [vmem:[#allocation35_spill] sm:$0xff] %v6376_v23  ;;  %v1220_v47 = vmul.f32 %v1180_v48, %v6344_v50  ;;  %v1333_v29 = vmul.f32 0.7978846, %v1293_v6  ;;  %v1187_v45 = vmul.f32 0.044715, %v6384_v61  ;;  %v6416_v20 = vrot.slane %v6164_v15, 3  ;;  %v3904_v30 = vpop.eup %3903 }
 0x209   :  { %v1811_v14 = vadd.f32 %v1810_v24, %v1809_v39  ;;  %v6413_v42 = vadd.f32 1e-06, %v6245_v5  ;;  %3911 = vtanh.f32 %v1335_v35  ;;  %v6421_v41 = vmul.f32 %v6351_v12, %v6277_v0  ;;  %v3906_v13 = vpop.eup %3905  ;;  %v6444_v24 = vpop.f32.mrf.mxu2 }
 0x20a   :  { %v6424_v19 = vadd.f32 %v6048_v2, %v1063_v22  ;;  %3913 = vtanh.f32 %v1332_v7  ;;  %v6429_v5 = vmul.f32 %v6209_v43, %v6183_v3  ;;  %v6433_v59 = vmul.f32 %v6337_v58, %v6281_v8  ;;  %v1555_v12 = vpop.permute.xlu2 %1554 }
 0x20b   :  { %v6407_v28 = vmul.f32 %v2032_v34, %v1811_v14  ;;  %8612 = vst [vmem:[#allocation33_spill] sm:$0xff] %v6413_v42  ;;  %3915 = vtanh.f32 %v1333_v29  ;;  %v6435_v9 = vpop.eup %3907  ;;  %v1177_v48 = vmul.f32 0.044715, %v6403_v44  ;;  %v6439_v22 = vadd.f32 %v1266_v40, %v6322_v53 }
 0x20c   :  { %8613 = vst [vmem:[#allocation37_spill] sm:$0xff] %v6421_v41  ;;  %v6442_v56 = vmul.f32 %v1220_v47, %v6344_v50  ;;  %3917 = vrcp.f32 %v6416_v20  ;;  %v6448_v58 = vmul.f32 %v1187_v45, %v6384_v61  ;;  %v2155_v6 = vmul.f32 %v6409_v52, %v6355_v38 }
 0x20d   :  { %8611 = vst [vmem:[#allocation41_spill] sm:$0xff] %v6407_v28  ;;  %v3910_v43 = vpop.eup %3909  ;;  %3919 = vrcp.f32 %v6413_v42  ;;  %v1429_v25 = vadd.f32 1.0, %v3904_v30  ;;  %v6454_v11 = vmul.f32 0.044715, %v6424_v19  ;;  %v6456_v32 = vpop.f32.mrf.mxu3  ;;  %v1134_v7 = vmul.f32 0.5, %v6270_v33 }
 0x20e   :  { %v1414_v34 = vadd.f32 1.0, %v3910_v43  ;;  %v2165_v40 = vand.u32 2147483648, %v6355_v38  ;;  %v1149_v47 = vmul.f32 0.5, %v6263_v51  ;;  %v1428_v29 = vadd.f32 1.0, %v3906_v13 }
 0x20f   :  { %v3912_v35 = vpop.eup %3911  ;;  %v2050_v45 = vmul.f32 %v6435_v9, %v6370_v17  ;;  %v1148_v39 = vmul.f32 0.5, %v6254_v10  ;;  %v1135_v60 = vmul.f32 0.5, %v6333_v27  ;;  %v2156_v33 = vsub.f32 1.0, %v2155_v6 }
 0x210   :  { %v3914_v30 = vpop.eup %3913  ;;  %v1415_v3 = vadd.f32 1.0, %v3912_v35  ;;  %v6466_v0 = vmul.f32 %v1414_v34, %v1134_v7  ;;  %v6468_v43 = vmul.f32 %v1429_v25, %v1149_v47  ;;  %v1132_v28 = vmul.f32 0.5, %v6267_v31  ;;  %v1542_v35 = vpop.permute.xlu1 %1541 }
 0x211   :  { %v3916_v14 = vpop.eup %3915  ;;  %v1412_v51 = vadd.f32 1.0, %v3914_v30  ;;  %v6474_v41 = vadd.f32 1e-06, %v6274_v16  ;;  %v1133_v10 = vmul.f32 0.5, %v6291_v46  ;;  %v6481_v34 = vmul.f32 %v1428_v29, %v1148_v39  ;;  %v1646_v16 = vpop.permute.xlu0 %1645 }
 0x212   :  { %8614 = vst [vmem:[#allocation32_spill] sm:$0xff] %v6466_v0  ;;  %v6471_v13 = vpop.eup %3917  ;;  %v6476_v23 = vmul.f32 %v1415_v3, %v1135_v60  ;;  %v1413_v27 = vadd.f32 1.0, %v3916_v14  ;;  %v2051_v6 = vsub.f32 1.0, %v2050_v45  ;;  %v6487_v47 = vor.u32 1.1754944e-38, %v2165_v40  ;;  %v6502_v40 = vpop.f32.mrf.mxu1 }
 0x213   :  { %v6479_v7 = vpop.eup %3919  ;;  %v6483_v25 = vmul.f32 %v1412_v51, %v1132_v28  ;;  %v2035_v31 = vmul.f32 %v6471_v13, %v6416_v20  ;;  %v1759_v3 = vmul.f32 %v5862_v55, %v6466_v0  ;;  %v6495_v39 = vadd.f32 %v6048_v2, %v1066_v18  ;;  %v1088_v45 = vpop.f32.mrf.mxu2 }
 0x214   :  { %8615 = vst [vmem:[#allocation73_spill] sm:$0xff] %v6476_v23  ;;  %v1760_v46 = vmul.f32 %v1555_v12, %v6476_v23  ;;  %v6492_v60 = vmul.f32 %v1413_v27, %v1133_v10  ;;  %v6498_v28 = vmul.f32 %v6409_v52, %v2156_v33  ;;  %v1774_v14 = vmul.f32 %v1646_v16, %v6468_v43 }
 0x215   :  { %8616 = vst [vmem:[#allocation55_spill] sm:$0xff] %v6479_v7  ;;  %v1217_v29 = vmul.f32 %v1177_v48, %v6403_v44  ;;  %v1757_v55 = vmul.f32 %v6060_v21, %v6483_v25  ;;  %v2036_v12 = vsub.f32 1.0, %v2035_v31  ;;  %v1773_v18 = vmul.f32 %v6113_v63, %v6481_v34  ;;  %v1106_v27 = vpop.f32.mrf.mxu3 }
 0x216   :  { %8617 = vst [vmem:[#allocation27_spill] sm:$0xff] %v6483_v25  ;;  %v1819_v30 = vadd.f32 %v1760_v46, %v1759_v3  ;;  %v1758_v51 = vmul.f32 %v1542_v35, %v6492_v60  ;;  %v2052_v33 = vmul.f32 %v6435_v9, %v2051_v6  ;;  %v1296_v48 = vadd.f32 %v6433_v59, %v6281_v8 }
 0x217   :  { %8618 = vst [vmem:[#allocation67_spill] sm:$0xff] %v6492_v60  ;;  %v1257_v10 = vmul.f32 %v1217_v29, %v6403_v44  ;;  %v6514_v3 = vrot.slane %v6164_v15, 5  ;;  %v2346_v21 = vperm.slane %v6235_v62, 4  ;;  %v6517_v31 = vadd.f32 %v1774_v14, %v1773_v18 }
 0x218   :  { %v1820_v16 = vrot.slane %v1819_v30, 4  ;;  %v1812_v7 = vadd.f32 %v1758_v51, %v1757_v55  ;;  %v6520_v35 = vadd.f32 %v6048_v2, %v1088_v45  ;;  %v1336_v6 = vmul.f32 0.7978846, %v1296_v48 }
 0x219   :  { %v1297_v63 = vadd.f32 %v1257_v10, %v6403_v44  ;;  %v2037_v29 = vmul.f32 %v6471_v13, %v2036_v12  ;;  %3921 = vrcp.f32 %v6514_v3  ;;  %2357 = vperm.xlu1 %3766, %v2346_v21   ;;  %2351 = vperm.xlu2 %3767, %v2346_v21   ;;  %vm2054_vm2 = vweird.f32 %v6370_v17 }
 0x21a   :  { %v1821_v46 = vadd.f32 %v1820_v16, %v1819_v30  ;;  %v1813_v59 = vrot.slane %v1812_v7, 4  ;;  %v2058_v55 = vand.u32 2147483647, %v6370_v17  ;;  %3923 = vtanh.f32 %v1336_v6 }
 0x21b   :  { %v1337_v14 = vmul.f32 0.7978846, %v1297_v63  ;;  %vm2159_vm7 = vweird.f32 %v6355_v38  ;;  %vm2160_vm11 = vweird.f32 %v6409_v52  ;;  %v2053_v30 = vadd.f32 %v6435_v9, %v2052_v33 }
 0x21c   :  { %v1822_v45 = vrot.slane %v1821_v46, 2  ;;  %vm2055_vm12 = vweird.f32 %v6435_v9  ;;  %v1814_v12 = vadd.f32 %v1813_v59, %v1812_v7  ;;  %v2060_v51 = vand.u32 2147483648, %v6370_v17  ;;  %vm6620_vm8 = vmor %vm2159_vm7, %vm2160_vm11 }
 0x21d   :  { %v2043_v18 = vand.u32 2147483647, %v6416_v20  ;;  %v2045_v10 = vand.u32 2147483648, %v6416_v20  ;;  %3925 = vtanh.f32 %v1337_v14  ;;  %v2038_v16 = vadd.f32 %v6471_v13, %v2037_v29  ;;  %vm6543_vm14 = vmor %vm2054_vm2, %vm2055_vm12  ;;  %v1071_v29 = vpop.f32.mrf.mxu1 }
 0x21e   :  { %v1823_v48 = vadd.f32 %v1822_v45, %v1821_v46  ;;  %vm2040_vm13 = vweird.f32 %v6471_v13  ;;  %v1815_v21 = vrot.slane %v1814_v12, 2  ;;  %v1869_v63 = vrot.slane %v6517_v31, 4 }
 0x21f   :  { %v1191_v33 = vmul.f32 0.044715, %v6520_v35  ;;  %v6539_v6 = vadd.f32 %v6048_v2, %v1106_v27  ;;  %v1136_v46 = vmul.f32 0.5, %v6281_v8  ;;  %v6548_v59 = vpop.eup %3921  ;;  %v2057_v45 = vsel %vm6543_vm14, %v6435_v9, %v2053_v30 }
 0x220   :  { %v1824_v14 = vrot.slane %v1823_v48, 1  ;;  %vm2039_vm15 = vweird.f32 %v6416_v20  ;;  %v1816_v2 = vadd.f32 %v1815_v21, %v1814_v12  ;;  %v3924_v27 = vpop.eup %3923  ;;  %vm2059_vm1 = vcmp.eq.f32.partialorder %v2058_v55, 8.507059e+37  ;;  %v1108_v20 = vpop.f32.mrf.mxu3 }
 0x221   :  { %v2061_v17 = vor.u32 1.1754944e-38, %v2060_v51  ;;  %vm6556_vm3 = vmor %vm2039_vm15, %vm2040_vm13  ;;  %vm6560_vm4 = vcmp.eq.f32.partialorder %v2043_v18, 8.507059e+37  ;;  %v2046_v15 = vor.u32 1.1754944e-38, %v2045_v10  ;;  %v8625_v7 = vand.u32 2147483647, %v6355_v38  ;;  %3768 = vset.pattern.permute.xlu1 %v8592_v54 }
 0x222   :  { %v1825_v55 = vadd.f32 %v1824_v14, %v1823_v48  ;;  %v2042_v30 = vsel %vm6556_vm3, %v6471_v13, %v2038_v16  ;;  %v1817_v12 = vrot.slane %v1816_v2, 1  ;;  %v1416_v51 = vadd.f32 1.0, %v3924_v27  ;;  %v6581_v14 = vpop.f32.mrf.mxu2 }
 0x223   :  { %vm6566_vm5 = vcmp.eq.f32.partialorder %v8625_v7, 8.507059e+37  ;;  %v8628_v18 = vperm.slane %v6003_v36, 4  ;;  %v3926_v10 = vpop.eup %3925  ;;  %v2062_v21 = vsel %vm2059_vm1, %v2061_v17, %v2057_v45  ;;  %v1137_v7 = vmul.f32 0.5, %v6403_v44  ;;  %v6591_v44 = vld [vmem:[%s8123_s2] ss:$0 sm:$0xff] }
 0x224   :  { %v2065_v23 = vmul.f32 %v6548_v59, %v6514_v3  ;;  %v1221_v48 = vmul.f32 %v6454_v11, %v6424_v19  ;;  %v6583_v42 = vmul.f32 %v2062_v21, %v1825_v55  ;;  %v1818_v13 = vadd.f32 %v1817_v12, %v1816_v2  ;;  %v1568_v2 = vpop.permute.xlu2 %1567 }
 0x225   :  { %2481 = vperm.xlu2 %3767, %v8628_v18   ;;  %v1417_v16 = vadd.f32 1.0, %v3926_v10  ;;  %v6585_v27 = vmul.f32 %v1416_v51, %v1136_v46  ;;  %v1182_v18 = vmul.f32 0.044715, %v6495_v39  ;;  %v6595_v45 = vadd.f32 %v6591_v44, %v6394_v49 }
 0x226   :  { %8629 = vst [vmem:[#allocation26_spill] sm:$0xff] %v6583_v42  ;;  %v1870_v11 = vadd.f32 %v1869_v63, %v6517_v31  ;;  %v2047_v17 = vsel %vm6560_vm4, %v2046_v15, %v2042_v30  ;;  %v2158_v46 = vadd.f32 %v6409_v52, %v6498_v28  ;;  %v6603_v55 = vadd.f32 %v6591_v44, %v1108_v20 }
 0x227   :  { %8630 = vst [vmem:[#allocation66_spill] sm:$0xff] %v6585_v27  ;;  %v6605_v12 = vmul.f32 %v2047_v17, %v1818_v13  ;;  %v6607_v51 = vmul.f32 %v1417_v16, %v1137_v7  ;;  %v6611_v49 = vadd.f32 %v6591_v44, %v6502_v40  ;;  %v6614_v31 = vadd.f32 %v6591_v44, %v1071_v29 }
 0x228   :  { %v1198_v28 = vmul.f32 0.044715, %v6539_v6  ;;  %v1231_v63 = vmul.f32 %v1191_v33, %v6520_v35  ;;  %v1761_v8 = vmul.f32 %v6055_v26, %v6585_v27  ;;  %v2066_v20 = vsub.f32 1.0, %v2065_v23  ;;  %v1073_v23 = vpop.f32.mrf.mxu1  ;;  %v1111_v17 = vpop.f32.mrf.mxu3 }
 0x229   :  { %8631 = vst [vmem:[#allocation34_spill] sm:$0xff] %v6605_v12  ;;  %v1762_v40 = vmul.f32 %v1568_v2, %v6607_v51  ;;  %v1261_v29 = vmul.f32 %v1221_v48, %v6424_v19  ;;  %v6631_v30 = vmul.f32 %v1182_v18, %v6495_v39  ;;  %v1196_v38 = vmul.f32 0.044715, %v6595_v45 }
 0x22a   :  { %8632 = vst [vmem:[#allocation76_spill] sm:$0xff] %v6607_v51  ;;  %v6635_v10 = vadd.f32 1e-06, %v6238_v37  ;;  %v1871_v21 = vrot.slane %v1870_v11, 2  ;;  %v6639_v33 = vadd.f32 %v6591_v44, %v6444_v24  ;;  %v2162_v26 = vsel %vm6620_vm8, %v6409_v52, %v2158_v46  ;;  %v1093_v51 = vpop.f32.mrf.mxu2 }
 0x22b   :  { %v1199_v7 = vmul.f32 0.044715, %v6603_v55  ;;  %v1826_v48 = vadd.f32 %v1762_v40, %v1761_v8  ;;  %v1184_v13 = vmul.f32 0.044715, %v6614_v31  ;;  %v1238_v37 = vmul.f32 %v1198_v28, %v6539_v6 }
 0x22c   :  { %v1271_v16 = vmul.f32 %v1231_v63, %v6520_v35  ;;  %v1300_v24 = vadd.f32 %v6442_v56, %v6344_v50  ;;  %v6652_v18 = vmul.f32 0.044715, %v6611_v49  ;;  %v2067_v2 = vmul.f32 %v6548_v59, %v2066_v20 }
 0x22d   :  { %3769 = vset.pattern.permute.xlu2 %v5659_v57  ;;  %v1827_v52 = vrot.slane %v1826_v48, 4  ;;  %v1301_v46 = vadd.f32 %v1261_v29, %v6424_v19  ;;  %v1236_v15 = vmul.f32 %v1196_v38, %v6595_v45  ;;  %v2167_v28 = vsel %vm6566_vm5, %v6487_v47, %v2162_v26 }
 0x22e   :  { %v1872_v8 = vadd.f32 %v1871_v21, %v1870_v11  ;;  %v6661_v63 = vadd.f32 %v6591_v44, %v1073_v23  ;;  %v1190_v56 = vmul.f32 0.044715, %v6639_v33  ;;  %v6666_v40 = vadd.f32 %v6591_v44, %v6456_v32 }
 0x22f   :  { %v1828_v20 = vadd.f32 %v1827_v52, %v1826_v48  ;;  %v1239_v29 = vmul.f32 %v1199_v7, %v6603_v55  ;;  %v1224_v38 = vmul.f32 %v1184_v13, %v6614_v31  ;;  %v1278_v27 = vmul.f32 %v1238_v37, %v6539_v6 }
 0x230   :  { %v1311_v47 = vadd.f32 %v1271_v16, %v6520_v35  ;;  %v1340_v9 = vmul.f32 0.7978846, %v1300_v24  ;;  %v2068_v21 = vadd.f32 %v6548_v59, %v2067_v2  ;;  %vm2070_vm9 = vweird.f32 %v6548_v59  ;;  %v6697_v12 = vpop.f32.mrf.mxu3 }
 0x231   :  { %v1829_v11 = vrot.slane %v1828_v20, 2  ;;  %v1341_v26 = vmul.f32 0.7978846, %v1301_v46  ;;  %v1873_v23 = vrot.slane %v1872_v8, 1  ;;  %v1185_v32 = vmul.f32 0.044715, %v6661_v63 }
 0x232   :  { %v2075_v48 = vand.u32 2147483648, %v6514_v3  ;;  %v1279_v7 = vmul.f32 %v1239_v29, %v6603_v55  ;;  %v6679_v13 = vadd.f32 %v6591_v44, %v6581_v14  ;;  %vm2069_vm10 = vweird.f32 %v6514_v3 }
 0x233   :  { %v1830_v37 = vadd.f32 %v1829_v11, %v1828_v20  ;;  %v2073_v16 = vand.u32 2147483647, %v6514_v3  ;;  %v1264_v24 = vmul.f32 %v1224_v38, %v6614_v31  ;;  %v1351_v52 = vmul.f32 0.7978846, %v1311_v47  ;;  %vm6684_vm6 = vmor %vm2069_vm10, %vm2070_vm9 }
 0x234   :  { %3927 = vtanh.f32 %v1340_v9  ;;  %v1267_v46 = vmul.f32 %v6448_v58, %v6384_v61  ;;  %v1318_v29 = vadd.f32 %v1278_v27, %v6539_v6  ;;  %v2072_v20 = vsel %vm6684_vm6, %v6548_v59, %v2068_v21 }
 0x235   :  { %v1831_v14 = vrot.slane %v1830_v37, 1  ;;  %3929 = vtanh.f32 %v1341_v26  ;;  %v1230_v3 = vmul.f32 %v1190_v56, %v6639_v33  ;;  %v1874_v38 = vadd.f32 %v1873_v23, %v1872_v8  ;;  %v1096_v23 = vpop.f32.mrf.mxu2 }
 0x236   :  { %v2076_v47 = vor.u32 1.1754944e-38, %v2075_v48  ;;  %v1319_v11 = vadd.f32 %v1279_v7, %v6603_v55  ;;  %v1192_v42 = vmul.f32 0.044715, %v6679_v13  ;;  %vm2074_vm2 = vcmp.eq.f32.partialorder %v2073_v16, 8.507059e+37 }
 0x237   :  { %v1832_v9 = vadd.f32 %v1831_v14, %v1830_v37  ;;  %v1225_v58 = vmul.f32 %v1185_v32, %v6661_v63  ;;  %3931 = vtanh.f32 %v1351_v52  ;;  %v6701_v27 = vadd.f32 %v6591_v44, %v1111_v17 }
 0x238   :  { %v2077_v59 = vsel %vm2074_vm2, %v2076_v47, %v2072_v20  ;;  %v1307_v21 = vadd.f32 %v1267_v46, %v6384_v61  ;;  %v1262_v8 = vmul.f32 %v6631_v30, %v6495_v39  ;;  %v1358_v56 = vmul.f32 0.7978846, %v1318_v29 }
 0x239   :  { %v6706_v26 = vmul.f32 %v2077_v59, %v1832_v9  ;;  %v1304_v48 = vadd.f32 %v1264_v24, %v6614_v31  ;;  %v6710_v37 = vmul.f32 %v1236_v15, %v6595_v45  ;;  %v6713_v32 = vmul.f32 0.044715, %v6666_v40  ;;  %v6738_v9 = vpop.permute.xlu0 %1710 }
 0x23a   :  { %v3928_v7 = vpop.eup %3927  ;;  %v6715_v17 = vmul.f32 %v2167_v28, %v1874_v38  ;;  %v1359_v16 = vmul.f32 0.7978846, %v1319_v11  ;;  %v1270_v2 = vmul.f32 %v1230_v3, %v6639_v33  ;;  %v1265_v30 = vmul.f32 %v1225_v58, %v6661_v63 }
 0x23b   :  { %8637 = vst [vmem:[#allocation14_spill] sm:$0xff] %v6706_v26  ;;  %v3930_v52 = vpop.eup %3929  ;;  %v1223_v46 = vmul.f32 %v6652_v18, %v6611_v49  ;;  %v1346_v24 = vmul.f32 0.7978846, %v6439_v22  ;;  %v1232_v29 = vmul.f32 %v1192_v42, %v6679_v13  ;;  %v1200_v15 = vmul.f32 0.044715, %v6701_v27 }
 0x23c   :  { %8638 = vst [vmem:[#allocation51_spill] sm:$0xff] %v6715_v17  ;;  %v1347_v14 = vmul.f32 0.7978846, %v1307_v21  ;;  %v2359_v20 = vperm.slane %v6235_v62, 5  ;;  %3933 = vtanh.f32 %v1358_v56  ;;  %v6726_v28 = vadd.f32 %v6591_v44, %v1093_v51  ;;  %v1594_v56 = vpop.permute.xlu1 %1593 }
 0x23d   :  { %v1344_v38 = vmul.f32 0.7978846, %v1304_v48  ;;  %v1302_v3 = vadd.f32 %v1262_v8, %v6495_v39  ;;  %v3932_v47 = vpop.eup %3931  ;;  %v6731_v18 = vmul.f32 %v6715_v17, %v6715_v17  ;;  %v1420_v22 = vadd.f32 1.0, %v3928_v7 }
 0x23e   :  { %v1421_v11 = vadd.f32 1.0, %v3930_v52  ;;  %3935 = vtanh.f32 %v1359_v16  ;;  %2364 = vperm.xlu1 %3768, %v2359_v20   ;;  %2370 = vperm.xlu2 %3769, %v2359_v20   ;;  %v6734_v42 = vadd.f32 %v6591_v44, %v1096_v23  ;;  %v1305_v62 = vadd.f32 %v1265_v30, %v6661_v63  ;;  %v1116_v23 = vpop.f32.mrf.mxu3  ;;  %v1098_v20 = vpop.f32.mrf.mxu2 }
 0x23f   :  { %8639 = vst [vmem:[#allocation47_spill] sm:$0xff] %v6731_v18  ;;  %v1263_v51 = vmul.f32 %v1223_v46, %v6611_v49  ;;  %3937 = vtanh.f32 %v1346_v24  ;;  %v1240_v58 = vmul.f32 %v1200_v15, %v6701_v27  ;;  %v1140_v59 = vmul.f32 0.5, %v6344_v50  ;;  %v6752_v50 = vpop.permute.xlu2 %1619 }
 0x240   :  { %v1141_v21 = vmul.f32 0.5, %v6424_v19  ;;  %3939 = vtanh.f32 %v1347_v14  ;;  %v1431_v8 = vadd.f32 1.0, %v3932_v47  ;;  %v1342_v48 = vmul.f32 0.7978846, %v1302_v3 }
 0x241   :  { %3941 = vtanh.f32 %v1344_v38  ;;  %v1310_v7 = vadd.f32 %v1270_v2, %v6639_v33  ;;  %v6745_v16 = vmul.f32 %v1232_v29, %v6679_v13  ;;  %v1151_v52 = vmul.f32 0.5, %v6520_v35  ;;  %v2462_v26 = vpop.permute.xlu0 %2461 }
 0x242   :  { %v6748_v30 = vmul.f32 %v1420_v22, %v1140_v59  ;;  %v6750_v46 = vmul.f32 %v1421_v11, %v1141_v21  ;;  %v3934_v19 = vpop.eup %3933  ;;  %v6755_v24 = vmul.f32 0.044715, %v6726_v28  ;;  %v1194_v15 = vmul.f32 0.044715, %v6734_v42  ;;  %v8642_v21 = vld [vmem:[#allocation21_spill] sm:$0xff] }
 0x243   :  { %v1345_v14 = vmul.f32 0.7978846, %v1305_v62  ;;  %v1303_v2 = vadd.f32 %v1263_v51, %v6611_v49  ;;  %v6761_v35 = vmul.f32 %v1240_v58, %v6701_v27  ;;  %v6765_v47 = vadd.f32 %v6591_v44, %v1116_v23 }
 0x244   :  { %8640 = vst [vmem:[#allocation48_spill] sm:$0xff] %v6748_v30  ;;  %v3936_v29 = vpop.eup %3935  ;;  %v1766_v3 = vmul.f32 %v1594_v56, %v6750_v46  ;;  %v6767_v11 = vmul.f32 %v1431_v8, %v1151_v52  ;;  %3943 = vtanh.f32 %v1342_v48  ;;  %v1146_v62 = vmul.f32 0.5, %v6322_v53 }
 0x245   :  { %8641 = vst [vmem:[#allocation74_spill] sm:$0xff] %v6750_v46  ;;  %v3938_v22 = vpop.eup %3937  ;;  %v1350_v59 = vmul.f32 0.7978846, %v1310_v7  ;;  %v1765_v17 = vmul.f32 %v8642_v21, %v6748_v30  ;;  %v6774_v58 = vadd.f32 %v6591_v44, %v6697_v12  ;;  %v6777_v56 = vadd.f32 %v6591_v44, %v1098_v20  ;;  %v8643_v46 = vld [vmem:[#allocation62_spill] sm:$0xff] }
 0x246   :  { %v3940_v51 = vpop.eup %3939  ;;  %v1147_v23 = vmul.f32 0.5, %v6384_v61  ;;  %v1234_v8 = vmul.f32 %v1194_v15, %v6734_v42  ;;  %3945 = vtanh.f32 %v1345_v14  ;;  %v1343_v48 = vmul.f32 0.7978846, %v1303_v2 }
 0x247   :  { %v3942_v38 = vpop.eup %3941  ;;  %v1438_v53 = vadd.f32 1.0, %v3934_v19  ;;  %v1840_v7 = vadd.f32 %v1766_v3, %v1765_v17  ;;  %v1202_v52 = vmul.f32 0.044715, %v6765_v47  ;;  %3947 = vrcp.f32 %v8643_v46 }
 0x248   :  { %v6784_v21 = vrot.slane %v8643_v46, 2  ;;  %v1439_v12 = vadd.f32 1.0, %v3936_v29  ;;  %v1426_v30 = vadd.f32 1.0, %v3938_v22  ;;  %v1427_v20 = vadd.f32 1.0, %v3940_v51  ;;  %v6796_v29 = vpop.permute.xlu1 %1606 }
 0x249   :  { %3949 = vtanh.f32 %v1350_v59  ;;  %v1144_v61 = vmul.f32 0.5, %v6614_v31  ;;  %v1424_v0 = vadd.f32 1.0, %v3942_v38  ;;  %v1158_v15 = vmul.f32 0.5, %v6539_v6  ;;  %v1633_v38 = vpop.permute.xlu2 %1632 }
 0x24a   :  { %v1195_v19 = vmul.f32 0.044715, %v6777_v56  ;;  %v3944_v17 = vpop.eup %3943  ;;  %v6790_v14 = vmul.f32 %v2462_v26, %v6767_v11  ;;  %v1274_v2 = vmul.f32 %v1234_v8, %v6734_v42  ;;  %v6794_v3 = vmul.f32 0.044715, %v6774_v58 }
 0x24b   :  { %v1159_v22 = vmul.f32 0.5, %v6603_v55  ;;  %v1841_v59 = vrot.slane %v1840_v7, 4  ;;  %3951 = vtanh.f32 %v1343_v48  ;;  %v6799_v31 = vmul.f32 %v1438_v53, %v1158_v15 }
 0x24c   :  { %v1242_v6 = vmul.f32 %v1202_v52, %v6765_v47  ;;  %v3946_v51 = vpop.eup %3945  ;;  %v6804_v26 = vmul.f32 %v1426_v30, %v1146_v62  ;;  %v6806_v8 = vmul.f32 %v1427_v20, %v1147_v23  ;;  %3953 = vrcp.f32 %v6784_v21  ;;  %v8650_v20 = vld [vmem:[#allocation18_spill] sm:$0xff] }
 0x24d   :  { %8644 = vst [vmem:[#allocation50_spill] sm:$0xff] %v6799_v31  ;;  %v6802_v60 = vmul.f32 %v1439_v12, %v1159_v22  ;;  %v6809_v25 = vpop.eup %3947  ;;  %v1145_v55 = vmul.f32 0.5, %v6661_v63  ;;  %v6812_v18 = vmul.f32 %v1424_v0, %v1144_v61  ;;  %v1422_v48 = vadd.f32 1.0, %v3944_v17 }
 0x24e   :  { %8646 = vst [vmem:[#allocation72_spill] sm:$0xff] %v6804_v26  ;;  %v1235_v53 = vmul.f32 %v1195_v19, %v6777_v56  ;;  %v1142_v15 = vmul.f32 0.5, %v6495_v39  ;;  %v1143_v12 = vmul.f32 0.5, %v6611_v49  ;;  %v1772_v30 = vmul.f32 %v1633_v38, %v6806_v8  ;;  %v8651_v49 = vld [vmem:[#allocation20_spill] sm:$0xff] }
 0x24f   :  { %8645 = vst [vmem:[#allocation31_spill] sm:$0xff] %v6802_v60  ;;  %v3950_v52 = vpop.eup %3949  ;;  %v1314_v62 = vadd.f32 %v1274_v2, %v6734_v42  ;;  %v6819_v23 = vadd.f32 %v1841_v59, %v1840_v7  ;;  %v1783_v22 = vmul.f32 %v8650_v20, %v6799_v31  ;;  %v6824_v0 = vmul.f32 %v1242_v6, %v6765_v47  ;;  %v8652_v2 = vld [vmem:[#allocation53_spill] sm:$0xff]  ;;  %v4072_v31 = vld [vmem:[%s8124_s3 + $0x50] sm:$0xff] }
 0x250   :  { %8647 = vst [vmem:[#allocation56_spill] sm:$0xff] %v6806_v8  ;;  %v1275_v63 = vmul.f32 %v1235_v53, %v6777_v56  ;;  %v1425_v61 = vadd.f32 1.0, %v3946_v51  ;;  %v1784_v39 = vmul.f32 %v6738_v9, %v6802_v60  ;;  %v1771_v19 = vmul.f32 %v8651_v49, %v6804_v26 }
 0x251   :  { %8648 = vst [vmem:[#allocation44_spill] sm:$0xff] %v6812_v18  ;;  %v2140_v17 = vmul.f32 %v6809_v25, %v8643_v46  ;;  %v3952_v7 = vpop.eup %3951  ;;  %v6835_v59 = vmul.f32 %v8652_v2, %v6812_v18  ;;  %v6837_v38 = vmul.f32 %v1422_v48, %v1142_v15  ;;  %v1430_v6 = vadd.f32 1.0, %v3950_v52  ;;  %v1659_v18 = vpop.permute.xlu1 %1658 }
 0x252   :  { %8649 = vst [vmem:[#allocation30_spill] sm:$0xff] %v6819_v23  ;;  %v1315_v53 = vadd.f32 %v1275_v63, %v6777_v56  ;;  %v6840_v51 = vpop.eup %3953  ;;  %v1861_v20 = vadd.f32 %v1772_v30, %v1771_v19  ;;  %vm2144_vm7 = vweird.f32 %v8643_v46  ;;  %v2148_v9 = vand.u32 2147483647, %v8643_v46  ;;  %v6857_v26 = vpop.permute.xlu2 %1684 }
 0x253   :  { %8653 = vst [vmem:[#allocation38_spill] sm:$0xff] %v6835_v59  ;;  %v1354_v49 = vmul.f32 0.7978846, %v1314_v62  ;;  %v2489_v60 = vperm.slane %v4072_v31, 5  ;;  %v2150_v2 = vand.u32 2147483648, %v8643_v46  ;;  %v1150_v48 = vmul.f32 0.5, %v6639_v33 }
 0x254   :  { %8654 = vst [vmem:[#allocation46_spill] sm:$0xff] %v6837_v38  ;;  %v1355_v52 = vmul.f32 0.7978846, %v1315_v53  ;;  %v1233_v15 = vmul.f32 %v6755_v24, %v6726_v28  ;;  %v1423_v63 = vadd.f32 1.0, %v3952_v7  ;;  %v1903_v30 = vadd.f32 %v1784_v39, %v1783_v22 }
 0x255   :  { %v2141_v19 = vsub.f32 1.0, %v2140_v17  ;;  %2494 = vperm.xlu1 %3768, %v2489_v60   ;;  %v1312_v62 = vadd.f32 %v6745_v16, %v6679_v13  ;;  %2500 = vperm.xlu2 %3769, %v2489_v60   ;;  %v6853_v59 = vmul.f32 %v1430_v6, %v1150_v48  ;;  %v2170_v31 = vmul.f32 %v6840_v51, %v6784_v21  ;;  %v8656_v16 = vld [vmem:[#allocation59_spill] sm:$0xff] }
 0x256   :  { %3955 = vtanh.f32 %v1355_v52  ;;  %v1273_v33 = vmul.f32 %v1233_v15, %v6726_v28  ;;  %v6860_v24 = vmul.f32 %v1425_v61, %v1145_v55  ;;  %v1862_v22 = vrot.slane %v1861_v20, 4  ;;  %v8659_v61 = vld [vmem:[#allocation65_spill] sm:$0xff] }
 0x257   :  { %3957 = vtanh.f32 %v1354_v49  ;;  %v1352_v39 = vmul.f32 0.7978846, %v1312_v62  ;;  %v6865_v60 = vmul.f32 %v8656_v16, %v6837_v38  ;;  %v1776_v7 = vmul.f32 %v1659_v18, %v6767_v11 }
 0x258   :  { %8655 = vst [vmem:[#allocation49_spill] sm:$0xff] %v6860_v24  ;;  %v1313_v6 = vadd.f32 %v1273_v33, %v6726_v28  ;;  %v1904_v53 = vrot.slane %v1903_v30, 4  ;;  %v2142_v48 = vmul.f32 %v6809_v25, %v2141_v19  ;;  %v6870_v52 = vor.u32 1.1754944e-38, %v2150_v2 }
 0x259   :  { %8657 = vst [vmem:[#allocation43_spill] sm:$0xff] %v6865_v60  ;;  %3959 = vtanh.f32 %v1352_v39  ;;  %v6872_v55 = vmul.f32 %v1423_v63, %v1143_v12  ;;  %v1775_v49 = vmul.f32 %v8659_v61, %v6853_v59  ;;  %v2171_v15 = vsub.f32 1.0, %v2170_v31 }
 0x25a   :  { %v1353_v62 = vmul.f32 0.7978846, %v1313_v6  ;;  %v6878_v16 = vmul.f32 %v6752_v50, %v6860_v24  ;;  %v1863_v18 = vadd.f32 %v1862_v22, %v1861_v20  ;;  %vm2145_vm11 = vweird.f32 %v6809_v25 }
 0x25b   :  { %8658 = vst [vmem:[#allocation21_spill] sm:$0xff] %v6872_v55  ;;  %v1237_v11 = vmul.f32 %v6713_v32, %v6666_v40  ;;  %v6885_v12 = vmul.f32 %v6796_v29, %v6872_v55  ;;  %v1875_v63 = vadd.f32 %v1776_v7, %v1775_v49  ;;  %v6888_v19 = vrot.slane %v8643_v46, 4  ;;  %vm6899_vm13 = vmor %vm2144_vm7, %vm2145_vm11  ;;  %v1672_v49 = vpop.permute.xlu1 %1671  ;;  %v6918_v55 = vpop.permute.xlu2 %1697 }
 0x25c   :  { %8660 = vst [vmem:[#allocation62_spill] sm:$0xff] %v6878_v16  ;;  %v3956_v2 = vpop.eup %3955  ;;  %3961 = vtanh.f32 %v1353_v62  ;;  %v1905_v33 = vadd.f32 %v1904_v53, %v1903_v30  ;;  %v6891_v50 = vadd.f32 %v6809_v25, %v2142_v48  ;;  %vm2174_vm12 = vweird.f32 %v6784_v21  ;;  %v1118_v48 = vpop.f32.mrf.mxu3 }
 0x25d   :  { %8661 = vst [vmem:[#allocation18_spill] sm:$0xff] %v6885_v12  ;;  %v3958_v31 = vpop.eup %3957  ;;  %v1277_v20 = vmul.f32 %v1237_v11, %v6666_v40  ;;  %3770 = vset.pattern.permute.xlu1 %v5659_v57  ;;  %3771 = vset.pattern.permute.xlu2 %v8592_v54  ;;  %vm6903_vm14 = vcmp.eq.f32.partialorder %v2148_v9, 8.507059e+37  ;;  %v2172_v30 = vmul.f32 %v6840_v51, %v2171_v15  ;;  %v2178_v22 = vand.u32 2147483647, %v6784_v21 }
 0x25e   :  { %v2180_v39 = vand.u32 2147483648, %v6784_v21  ;;  %v1435_v7 = vadd.f32 1.0, %v3956_v2  ;;  %v1864_v53 = vrot.slane %v1863_v18, 2  ;;  %v6911_v61 = vrot.slane %v8643_v46, 3  ;;  %v8670_v21 = vld [vmem:[#allocation45_spill] sm:$0xff] }
 0x25f   :  { %v3960_v6 = vpop.eup %3959  ;;  %v1316_v9 = vadd.f32 %v6710_v37, %v6595_v45  ;;  %v1317_v62 = vadd.f32 %v1277_v20, %v6666_v40  ;;  %v1876_v11 = vrot.slane %v1875_v63, 4  ;;  %v1155_v15 = vmul.f32 0.5, %v6777_v56 }
 0x260   :  { %v1434_v17 = vadd.f32 1.0, %v3958_v31  ;;  %3963 = vrcp.f32 %v6888_v19  ;;  %v1906_v2 = vrot.slane %v1905_v33, 2  ;;  %v2147_v38 = vsel %vm6899_vm13, %v6809_v25, %v6891_v50 }
 0x261   :  { %vm2175_vm15 = vweird.f32 %v6840_v51  ;;  %v1356_v24 = vmul.f32 0.7978846, %v1316_v9  ;;  %v1154_v20 = vmul.f32 0.5, %v6734_v42  ;;  %v6926_v23 = vmul.f32 %v1435_v7, %v1155_v15 }
 0x262   :  { %v3962_v37 = vpop.eup %3961  ;;  %v1432_v56 = vadd.f32 1.0, %v3960_v6  ;;  %v1357_v31 = vmul.f32 0.7978846, %v1317_v62  ;;  %v1865_v12 = vadd.f32 %v1864_v53, %v1863_v18  ;;  %v2173_v60 = vadd.f32 %v6840_v51, %v2172_v30  ;;  %vm6932_vm1 = vmor %vm2174_vm12, %vm2175_vm15 }
 0x263   :  { %v1433_v16 = vadd.f32 1.0, %v3962_v37  ;;  %3965 = vrcp.f32 %v6911_v61  ;;  %v1877_v50 = vadd.f32 %v1876_v11, %v1875_v63  ;;  %v6936_v32 = vmul.f32 %v1434_v17, %v1154_v20  ;;  %v8673_v11 = vld [vmem:[#allocation71_spill] sm:$0xff]  ;;  %v6982_v20 = vpop.permute.xlu1 %1723 }
 0x264   :  { %v1152_v42 = vmul.f32 0.5, %v6679_v13  ;;  %v1153_v7 = vmul.f32 0.5, %v6726_v28  ;;  %vm6940_vm3 = vcmp.eq.f32.partialorder %v2178_v22, 8.507059e+37  ;;  %v2181_v30 = vor.u32 1.1754944e-38, %v2180_v39 }
 0x265   :  { %v6945_v6 = vadd.f32 %v6591_v44, %v1118_v48  ;;  %3967 = vtanh.f32 %v1356_v24  ;;  %v8671_v53 = vperm.slane %v8670_v21, 6  ;;  %v8672_v63 = vperm.slane %v6303_v1, 1 }
 0x266   :  { %v6951_v17 = vpop.eup %3963  ;;  %v1780_v13 = vmul.f32 %v6857_v26, %v6926_v23  ;;  %v6955_v28 = vmul.f32 %v1432_v56, %v1152_v42  ;;  %v6957_v22 = vmul.f32 %v1433_v16, %v1153_v7  ;;  %3969 = vtanh.f32 %v1357_v31  ;;  %v8674_v56 = vld [vmem:[#allocation52_spill] sm:$0xff] }
 0x267   :  { %2383 = vperm.xlu1 %3770, %v8671_v53   ;;  %2416 = vperm.xlu2 %3771, %v8672_v63   ;;  %v6959_v39 = vadd.f32 %v1906_v2, %v1905_v33  ;;  %v1866_v48 = vrot.slane %v1865_v12, 1  ;;  %v2177_v24 = vsel %vm6932_vm1, %v6840_v51, %v2173_v60  ;;  %v1241_v9 = vmul.f32 %v6794_v3, %v6774_v58  ;;  %v1121_v60 = vpop.f32.mrf.mxu3 }
 0x268   :  { %v1878_v62 = vrot.slane %v1877_v50, 2  ;;  %v1779_v15 = vmul.f32 %v8673_v11, %v6936_v32  ;;  %v1778_v26 = vmul.f32 %v1672_v49, %v6957_v22  ;;  %v1320_v16 = vadd.f32 %v6761_v35, %v6701_v27 }
 0x269   :  { %v6971_v37 = vpop.eup %3965  ;;  %v2152_v33 = vsel %vm6903_vm14, %v6870_v52, %v2147_v38  ;;  %v2200_v51 = vmul.f32 %v6951_v17, %v6888_v19  ;;  %v6979_v3 = vrot.slane %v8643_v46, 5  ;;  %v1281_v2 = vmul.f32 %v1241_v9, %v6774_v58  ;;  %v6989_v38 = vpop.permute.xlu2 %1749 }
 0x26a   :  { %v6985_v49 = vmul.f32 0.044715, %v6945_v6  ;;  %v1889_v35 = vadd.f32 %v1780_v13, %v1779_v15  ;;  %v1777_v31 = vmul.f32 %v8674_v56, %v6955_v28  ;;  %v1360_v29 = vmul.f32 0.7978846, %v1320_v16 }
 0x26b   :  { %v3968_v52 = vpop.eup %3967  ;;  %v1867_v42 = vadd.f32 %v1866_v48, %v1865_v12  ;;  %v6994_v7 = vsel %vm6940_vm3, %v2181_v30, %v2177_v24  ;;  %v1321_v21 = vadd.f32 %v1281_v2, %v6774_v58  ;;  %v1879_v63 = vadd.f32 %v1878_v62, %v1877_v50 }
 0x26c   :  { %v3970_v53 = vpop.eup %3969  ;;  %v2208_v13 = vand.u32 2147483647, %v6888_v19  ;;  %v2185_v9 = vmul.f32 %v6971_v37, %v6911_v61  ;;  %v1882_v11 = vadd.f32 %v1778_v26, %v1777_v31  ;;  %v2201_v15 = vsub.f32 1.0, %v2200_v51 }
 0x26d   :  { %v7001_v16 = vadd.f32 %v6591_v44, %v1121_v60  ;;  %3971 = vrcp.f32 %v6979_v3  ;;  %v1361_v12 = vmul.f32 0.7978846, %v1321_v21  ;;  %v8675_v18 = vperm.slane %v6303_v1, 1 }
 0x26e   :  { %v8676_v30 = vperm.slane %v6003_v36, 6  ;;  %v1890_v50 = vrot.slane %v1889_v35, 4  ;;  %v2210_v48 = vand.u32 2147483648, %v6888_v19  ;;  %v1436_v24 = vadd.f32 1.0, %v3968_v52 }
 0x26f   :  { %2422 = vperm.xlu1 %3770, %v8675_v18   ;;  %3973 = vtanh.f32 %v1360_v29  ;;  %v7009_v62 = vmul.f32 %v2152_v33, %v1867_v42  ;;  %v1156_v26 = vmul.f32 0.5, %v6595_v45  ;;  %v1437_v51 = vadd.f32 1.0, %v3970_v53 }
 0x270   :  { %2507 = vperm.xlu2 %3771, %v8676_v30   ;;  %3975 = vtanh.f32 %v1361_v12  ;;  %v1880_v60 = vrot.slane %v1879_v63, 1  ;;  %v2186_v2 = vsub.f32 1.0, %v2185_v9  ;;  %v2195_v56 = vand.u32 2147483648, %v6911_v61 }
 0x271   :  { %8677 = vst [vmem:[#allocation20_spill] sm:$0xff] %v7009_v62  ;;  %v1883_v31 = vrot.slane %v1882_v11, 4  ;;  %v2202_v21 = vmul.f32 %v6951_v17, %v2201_v15  ;;  %v2193_v36 = vand.u32 2147483647, %v6911_v61  ;;  %v1204_v18 = vmul.f32 0.044715, %v7001_v16  ;;  %v7034_v15 = vpop.permute.xlu1 %1736 }
 0x272   :  { %v1157_v52 = vmul.f32 0.5, %v6666_v40  ;;  %v1891_v29 = vadd.f32 %v1890_v50, %v1889_v35  ;;  %vm2204_vm4 = vweird.f32 %v6888_v19  ;;  %v2211_v33 = vor.u32 1.1754944e-38, %v2210_v48  ;;  %v1123_v35 = vpop.f32.mrf.mxu3  ;;  %8682 = vst [vmem:[#allocation65_spill] sm:$0xff] %v7034_v15  ;;  %v8696_v19 = vld [vmem:[#allocation39_spill] sm:$0xff] }
 0x273   :  { %v7018_v45 = vmul.f32 %v1436_v24, %v1156_v26  ;;  %v7020_v42 = vpop.eup %3971  ;;  %v7024_v53 = vmul.f32 %v7009_v62, %v7009_v62  ;;  %vm2205_vm5 = vweird.f32 %v6951_v17  ;;  %vm7027_vm8 = vcmp.eq.f32.partialorder %v2208_v13, 8.507059e+37  ;;  %v2449_v26 = vpop.permute.xlu2 %2448 }
 0x274   :  { %vm2189_vm9 = vweird.f32 %v6911_v61  ;;  %v7032_v40 = vmul.f32 %v1437_v51, %v1157_v52  ;;  %v1881_v30 = vadd.f32 %v1880_v60, %v1879_v63  ;;  %v2187_v50 = vmul.f32 %v6971_v37, %v2186_v2  ;;  %vm7059_vm2 = vmor %vm2204_vm4, %vm2205_vm5 }
 0x275   :  { %8678 = vst [vmem:[#allocation53_spill] sm:$0xff] %v7018_v45  ;;  %v3974_v12 = vpop.eup %3973  ;;  %v2196_v48 = vor.u32 1.1754944e-38, %v2195_v56  ;;  %v1884_v24 = vadd.f32 %v1883_v31, %v1882_v11  ;;  %v2203_v13 = vadd.f32 %v6951_v17, %v2202_v21  ;;  %vm2190_vm10 = vweird.f32 %v6971_v37  ;;  %v8685_v11 = vld [vmem:[#allocation78_spill] sm:$0xff] }
 0x276   :  { %8681 = vst [vmem:[#allocation59_spill] sm:$0xff] %v7032_v40  ;;  %v3976_v25 = vpop.eup %3975  ;;  %vm7039_vm6 = vcmp.eq.f32.partialorder %v2193_v36, 8.507059e+37  ;;  %v1244_v51 = vmul.f32 %v1204_v18, %v7001_v16  ;;  %v1782_v52 = vmul.f32 %v6918_v55, %v7032_v40  ;;  %v1892_v63 = vrot.slane %v1891_v29, 2  ;;  %v8688_v36 = vld [vmem:[#allocation61_spill] sm:$0xff]  ;;  %vm7077_vm7 = vmor %vm2189_vm9, %vm2190_vm10 }
 0x277   :  { %3772 = vset.pattern.permute.xlu1 %v8592_v54  ;;  %v1781_v60 = vmul.f32 %v8685_v11, %v7018_v45  ;;  %v2215_v2 = vmul.f32 %v7020_v42, %v6979_v3  ;;  %v7052_v56 = vadd.f32 %v6591_v44, %v1123_v35  ;;  %v1440_v31 = vadd.f32 1.0, %v3974_v12 }
 0x278   :  { %3773 = vset.pattern.permute.xlu2 %v5659_v57  ;;  %v1441_v21 = vadd.f32 1.0, %v3976_v25  ;;  %v2576_v18 = vmul.f32 %v8688_v36, %v6481_v34  ;;  %v2577_v11 = vmul.f32 %v2449_v26, %v6468_v43  ;;  %v7067_v44 = vmul.f32 %v6994_v7, %v1881_v30 }
 0x279   :  { %v2188_v35 = vadd.f32 %v6971_v37, %v2187_v50  ;;  %v1885_v40 = vrot.slane %v1884_v24, 2  ;;  %v7071_v45 = vrot.slane %v6474_v41, 1  ;;  %v1896_v34 = vadd.f32 %v1782_v52, %v1781_v60  ;;  %v2306_v60 = vpop.permute.xlu1 %2305 }
 0x27a   :  { %v1160_v43 = vmul.f32 0.5, %v6701_v27  ;;  %v1161_v25 = vmul.f32 0.5, %v6774_v58  ;;  %v2671_v7 = vadd.f32 %v2577_v11, %v2576_v18  ;;  %v1893_v12 = vadd.f32 %v1892_v63, %v1891_v29 }
 0x27b   :  { %v2207_v30 = vsel %vm7059_vm2, %v6951_v17, %v2203_v13  ;;  %v1284_v50 = vmul.f32 %v1244_v51, %v7001_v16  ;;  %v2216_v26 = vsub.f32 1.0, %v2215_v2  ;;  %v1205_v15 = vmul.f32 0.044715, %v7052_v56 }
 0x27c   :  { %v7087_v36 = vmul.f32 %v1440_v31, %v1160_v43  ;;  %v7089_v61 = vmul.f32 %v1441_v21, %v1161_v25  ;;  %v2672_v52 = vrot.slane %v2671_v7, 4  ;;  %v7094_v27 = vmul.f32 %v7067_v44, %v7067_v44 }
 0x27d   :  { %v2192_v58 = vsel %vm7077_vm7, %v6971_v37, %v2188_v35  ;;  %v1886_v29 = vadd.f32 %v1885_v40, %v1884_v24  ;;  %3977 = vrcp.f32 %v7071_v45  ;;  %v1897_v17 = vrot.slane %v1896_v34, 4 }
 0x27e   :  { %8691 = vst [vmem:[#allocation45_spill] sm:$0xff] %v7087_v36  ;;  %v2225_v13 = vand.u32 2147483648, %v6979_v3  ;;  %v1786_v51 = vmul.f32 %v6982_v20, %v7089_v61  ;;  %v2673_v63 = vadd.f32 %v2672_v52, %v2671_v7  ;;  %v8693_v2 = vperm.slane %v5875_v4, 1  ;;  %v8695_v20 = vld [vmem:[#allocation57_spill] sm:$0xff] }
 0x27f   :  { %8692 = vst [vmem:[#allocation71_spill] sm:$0xff] %v7089_v61  ;;  %v1894_v55 = vrot.slane %v1893_v12, 1  ;;  %v7107_v31 = vsel %vm7027_vm8, %v2211_v33, %v2207_v30  ;;  %v1324_v37 = vadd.f32 %v1284_v50, %v7001_v16  ;;  %3979 = vrcp.f32 %v6635_v10 }
 0x280   :  { %2546 = vperm.xlu1 %3772, %v8693_v2   ;;  %v8694_v40 = vmov %v8693_v2  ;;  %v2217_v24 = vmul.f32 %v7020_v42, %v2216_v26  ;;  %vm2219_vm11 = vweird.f32 %v6979_v3  ;;  %v1785_v21 = vmul.f32 %v8695_v20, %v7087_v36  ;;  %v2456_v26 = vpop.permute.xlu2 %2455 }
 0x281   :  { %2552 = vperm.xlu2 %3773, %v8694_v40   ;;  %v1245_v18 = vmul.f32 %v1205_v15, %v7052_v56  ;;  %v2674_v11 = vrot.slane %v2673_v63, 2  ;;  %v7120_v33 = vsel %vm7039_vm6, %v2196_v48, %v2192_v58  ;;  %v1887_v9 = vrot.slane %v1886_v29, 1 }
 0x282   :  { %v2223_v35 = vand.u32 2147483647, %v6979_v3  ;;  %v2555_v43 = vmul.f32 %v2306_v60, %v8696_v19  ;;  %v1898_v25 = vadd.f32 %v1897_v17, %v1896_v34  ;;  %v7124_v7 = vor.u32 1.1754944e-38, %v2225_v13 }
 0x283   :  { %v1910_v30 = vadd.f32 %v1786_v51, %v1785_v21  ;;  %v2675_v50 = vadd.f32 %v2674_v11, %v2673_v63  ;;  %v3978_v52 = vpop.eup %3977  ;;  %v7126_v2 = vadd.f32 %v1894_v55, %v1893_v12  ;;  %vm2220_vm12 = vweird.f32 %v7020_v42 }
 0x284   :  { %v7129_v15 = vmul.f32 0.7978846, %v1324_v37  ;;  %v2594_v62 = vadd.f32 %v2555_v43, %v6429_v5  ;;  %v7133_v48 = vadd.f32 %v7020_v42, %v2217_v24  ;;  %v7136_v58 = vmul.f32 %v1245_v18, %v7052_v56  ;;  %vm7162_vm3 = vmor %vm2219_vm11, %vm2220_vm12 }
 0x285   :  { %v1322_v34 = vadd.f32 %v6824_v0, %v6765_v47  ;;  %v2956_v17 = vmul.f32 %v3978_v52, %v7071_v45  ;;  %v3980_v13 = vpop.eup %3979  ;;  %v1888_v12 = vadd.f32 %v1887_v9, %v1886_v29  ;;  %v1243_v51 = vmul.f32 %v6985_v49, %v6945_v6  ;;  %v8701_v29 = vld [vmem:[#allocation23_spill] sm:$0xff] }
 0x286   :  { %v2595_v63 = vrot.slane %v2594_v62, 4  ;;  %v2578_v60 = vmul.f32 %v2456_v26, %v6853_v59  ;;  %v1899_v5 = vrot.slane %v1898_v25, 2  ;;  %v1911_v55 = vrot.slane %v1910_v30, 4 }
 0x287   :  { %v2676_v37 = vrot.slane %v2675_v50, 1  ;;  %vm2960_vm13 = vweird.f32 %v7071_v45  ;;  %v2957_v40 = vsub.f32 1.0, %v2956_v17  ;;  %v2964_v24 = vand.u32 2147483647, %v7071_v45 }
 0x288   :  { %v2966_v0 = vand.u32 2147483648, %v7071_v45  ;;  %v2791_v20 = vmul.f32 %v3980_v13, %v6635_v10  ;;  %vm7148_vm14 = vcmp.eq.f32.partialorder %v2223_v35, 8.507059e+37  ;;  %vm2795_vm15 = vweird.f32 %v6635_v10 }
 0x289   :  { %v2801_v59 = vand.u32 2147483648, %v6635_v10  ;;  %v2596_v49 = vadd.f32 %v2595_v63, %v2594_v62  ;;  %v2678_v21 = vadd.f32 %v6790_v14, %v2578_v60  ;;  %v2958_v18 = vmul.f32 %v3978_v52, %v2957_v40 }
 0x28a   :  { %vm2961_vm1 = vweird.f32 %v3978_v52  ;;  %v2792_v11 = vsub.f32 1.0, %v2791_v20  ;;  %v7156_v9 = vrot.slane %v6474_v41, 2  ;;  %v1912_v43 = vadd.f32 %v1911_v55, %v1910_v30 }
 0x28b   :  { %v2677_v26 = vadd.f32 %v2676_v37, %v2675_v50  ;;  %v2597_v17 = vrot.slane %v2596_v49, 2  ;;  %v2679_v35 = vrot.slane %v2678_v21, 4  ;;  %v2959_v62 = vadd.f32 %v3978_v52, %v2958_v18  ;;  %vm2962_vm5 = vmor %vm2960_vm13, %vm2961_vm1 }
 0x28c   :  { %v2793_v14 = vmul.f32 %v3980_v13, %v2792_v11  ;;  %vm2796_vm4 = vweird.f32 %v3980_v13  ;;  %3981 = vrcp.f32 %v7156_v9  ;;  %v2967_v30 = vor.u32 1.1754944e-38, %v2966_v0 }
 0x28d   :  { %v2799_v50 = vand.u32 2147483647, %v6635_v10  ;;  %v2598_v63 = vadd.f32 %v2597_v17, %v2596_v49  ;;  %v2680_v60 = vadd.f32 %v2679_v35, %v2678_v21  ;;  %v2963_v55 = vsel %vm2962_vm5, %v3978_v52, %v2959_v62  ;;  %vm2797_vm9 = vmor %vm2795_vm15, %vm2796_vm4 }
 0x28e   :  { %vm2965_vm8 = vcmp.eq.f32.partialorder %v2964_v24, 8.507059e+37  ;;  %v2794_v3 = vadd.f32 %v3980_v13, %v2793_v14  ;;  %v2802_v37 = vor.u32 1.1754944e-38, %v2801_v59  ;;  %v1900_v40 = vadd.f32 %v1899_v5, %v1898_v25 }
 0x28f   :  { %v2222_v20 = vsel %vm7162_vm3, %v7020_v42, %v7133_v48  ;;  %v2968_v18 = vsel %vm2965_vm8, %v2967_v30, %v2963_v55  ;;  %v2599_v45 = vrot.slane %v2598_v63, 1  ;;  %v1913_v0 = vrot.slane %v1912_v43, 2 }
 0x290   :  { %v7176_v11 = vmul.f32 %v2968_v18, %v2677_v26  ;;  %v2798_v49 = vsel %vm2797_vm9, %v3980_v13, %v2794_v3  ;;  %v2681_v21 = vrot.slane %v2680_v60, 2  ;;  %v7179_v52 = vmul.f32 %v7120_v33, %v1888_v12  ;;  %v2319_v12 = vpop.permute.xlu1 %2318  ;;  %v8702_v18 = vld [vmem:[#allocation25_spill] sm:$0xff] }
 0x291   :  { %v1283_v25 = vmul.f32 %v1243_v51, %v6945_v6  ;;  %vm2800_vm10 = vcmp.eq.f32.partialorder %v2799_v50, 8.507059e+37  ;;  %v2600_v5 = vadd.f32 %v2599_v45, %v2598_v63  ;;  %v7185_v19 = vmul.f32 %v7107_v31, %v7126_v2 }
 0x292   :  { %v3982_v24 = vpop.eup %3981  ;;  %v2803_v48 = vsel %vm2800_vm10, %v2802_v37, %v2798_v49  ;;  %v2682_v59 = vadd.f32 %v2681_v21, %v2680_v60  ;;  %3983 = vtanh.f32 %v7129_v15  ;;  %v7188_v13 = vmul.f32 0.7978846, %v1322_v34 }
 0x293   :  { %v7190_v26 = vmul.f32 %v2803_v48, %v2600_v5  ;;  %v2971_v33 = vmul.f32 %v3982_v24, %v7156_v9  ;;  %v1901_v51 = vrot.slane %v1900_v40, 1  ;;  %v2227_v17 = vsel %vm7148_vm14, %v7124_v7, %v2222_v20 }
 0x294   :  { %v1914_v35 = vadd.f32 %v1913_v0, %v1912_v43  ;;  %v7198_v31 = vadd.f32 %v7136_v58, %v7052_v56  ;;  %v7202_v2 = vmul.f32 %v7179_v52, %v7179_v52  ;;  %v7205_v15 = vadd.f32 %v1283_v25, %v6945_v6 }
 0x295   :  { %v2683_v34 = vrot.slane %v2682_v59, 1  ;;  %v2972_v62 = vsub.f32 1.0, %v2971_v33  ;;  %v2979_v14 = vand.u32 2147483647, %v7156_v9  ;;  %v2981_v30 = vand.u32 2147483648, %v7156_v9 }
 0x296   :  { %v7210_v7 = vrot.slane %v6635_v10, 1  ;;  %v2557_v43 = vmul.f32 %v2319_v12, %v8701_v29  ;;  %vm2976_vm6 = vweird.f32 %v3982_v24  ;;  %v7214_v50 = vrot.slane %v8643_v46, 6 }
 0x297   :  { %v2973_v58 = vmul.f32 %v3982_v24, %v2972_v62  ;;  %v7217_v63 = vrot.slane %v8643_v46, 7  ;;  %v1902_v60 = vadd.f32 %v1901_v51, %v1900_v40  ;;  %v1915_v55 = vrot.slane %v1914_v35, 1 }
 0x298   :  { %vm2975_vm2 = vweird.f32 %v7156_v9  ;;  %3985 = vrcp.f32 %v7210_v7  ;;  %v7221_v3 = vpop.eup %3983  ;;  %v2684_v37 = vadd.f32 %v2683_v34, %v2682_v59  ;;  %v2601_v45 = vadd.f32 %v2557_v43, %v8702_v18 }
 0x299   :  { %v2974_v20 = vadd.f32 %v3982_v24, %v2973_v58  ;;  %3987 = vrcp.f32 %v7214_v50  ;;  %vm2977_vm7 = vmor %vm2975_vm2, %vm2976_vm6  ;;  %vm2980_vm11 = vcmp.eq.f32.partialorder %v2979_v14, 8.507059e+37  ;;  %v2982_v46 = vor.u32 1.1754944e-38, %v2981_v30  ;;  %v7243_v14 = vpop.permute.xlu2 %2344 }
 0x29a   :  { %v2814_v40 = vand.u32 2147483647, %v7210_v7  ;;  %v2816_v9 = vand.u32 2147483648, %v7210_v7  ;;  %v2602_v21 = vrot.slane %v2601_v45, 4  ;;  %3989 = vrcp.f32 %v7217_v63 }
 0x29b   :  { %v2978_v49 = vsel %vm2977_vm7, %v3982_v24, %v2974_v20  ;;  %v7229_v25 = vmul.f32 %v2227_v17, %v1902_v60  ;;  %v2238_v48 = vand.u32 2147483647, %v7214_v50  ;;  %v2240_v59 = vand.u32 2147483648, %v7214_v50  ;;  %v2332_v20 = vpop.permute.xlu1 %2331 }
 0x29c   :  { %v2983_v5 = vsel %vm2980_vm11, %v2982_v46, %v2978_v49  ;;  %v7233_v33 = vadd.f32 %v1915_v55, %v1914_v35  ;;  %v2603_v51 = vadd.f32 %v2602_v21, %v2601_v45  ;;  %v2253_v34 = vand.u32 2147483647, %v7217_v63 }
 0x29d   :  { %8703 = vst [vmem:[#allocation52_spill] sm:$0xff] %v7229_v25  ;;  %v7235_v12 = vmul.f32 %v2983_v5, %v2684_v37  ;;  %vm2810_vm12 = vweird.f32 %v7210_v7  ;;  %v8704_v62 = vrot.slane %v6959_v39, 1  ;;  %vm2234_vm13 = vweird.f32 %v7214_v50 }
 0x29e   :  { %v3986_v24 = vpop.eup %3985  ;;  %vm3139_vm14 = vcmask 1041409   ;;  %vm7250_vm15 = vcmp.eq.f32.partialorder %v2814_v40, 8.507059e+37  ;;  %v2817_v58 = vor.u32 1.1754944e-38, %v2816_v9  ;;  %vm2249_vm1 = vweird.f32 %v7217_v63 }
 0x29f   :  { %v1909_v17 = vadd.f32 %v8704_v62, %v6959_v39  ;;  %v3988_v30 = vpop.eup %3987  ;;  %v7247_v35 = vmul.f32 %v7235_v12, %v7067_v44  ;;  %v2806_v29 = vmul.f32 %v3986_v24, %v7210_v7  ;;  %v2604_v39 = vrot.slane %v2603_v51, 2 }
 0x2a0   :  { %v2230_v60 = vmul.f32 %v3988_v30, %v7214_v50  ;;  %vm7256_vm3 = vcmp.eq.f32.partialorder %v2238_v48, 8.507059e+37  ;;  %v2241_v37 = vor.u32 1.1754944e-38, %v2240_v59  ;;  %v3990_v44 = vpop.eup %3989  ;;  %vm7260_vm4 = vcmp.eq.f32.partialorder %v2253_v34, 8.507059e+37  ;;  %v8723_v50 = vld [vmem:[#allocation27_spill] sm:$0xff] }
 0x2a1   :  { %v2807_v18 = vsub.f32 1.0, %v2806_v29  ;;  %v2255_v46 = vand.u32 2147483648, %v7217_v63  ;;  %vm3229_vm5 = vcmask 1042434   ;;  %v2605_v40 = vadd.f32 %v2604_v39, %v2603_v51  ;;  %v7278_v0 = vpop.permute.xlu2 %2435 }
 0x2a2   :  { %v2231_v49 = vsub.f32 1.0, %v2230_v60  ;;  %vm2235_vm8 = vweird.f32 %v3988_v30  ;;  %v2245_v9 = vmul.f32 %v3990_v44, %v7217_v63  ;;  %vm2811_vm9 = vweird.f32 %v3986_v24 }
 0x2a3   :  { %v2808_v21 = vmul.f32 %v3986_v24, %v2807_v18  ;;  %vm3232_vm10 = vcmask 1043459   ;;  %v3293_v5 = vmul.f32 %v7185_v19, %v7185_v19  ;;  %v2606_v48 = vrot.slane %v2605_v40, 1  ;;  %vm7270_vm2 = vmor %vm2234_vm13, %vm2235_vm8 }
 0x2a4   :  { %v2232_v59 = vmul.f32 %v3988_v30, %v2231_v49  ;;  %v2246_v34 = vsub.f32 1.0, %v2245_v9  ;;  %vm2250_vm6 = vweird.f32 %v3990_v44  ;;  %v2256_v51 = vor.u32 1.1754944e-38, %v2255_v46  ;;  %vm2812_vm11 = vmor %vm2810_vm12, %vm2811_vm9  ;;  %v8715_v46 = vld [vmem:[#allocation47_spill] sm:$0xff] }
 0x2a5   :  { %v2809_v62 = vadd.f32 %v3986_v24, %v2808_v21  ;;  %vm3235_vm7 = vcmask 1044484   ;;  %v3294_v39 = vmul.f32 %v7229_v25, %v7229_v25  ;;  %v2607_v60 = vadd.f32 %v2606_v48, %v2605_v40  ;;  %vm7282_vm13 = vmor %vm2249_vm1, %vm2250_vm6  ;;  %v8717_v40 = vld [vmem:[#allocation22_spill] sm:$0xff] }
 0x2a6   :  { %v2233_v18 = vadd.f32 %v3988_v30, %v2232_v59  ;;  %v2247_v49 = vmul.f32 %v3990_v44, %v2246_v34  ;;  %v3341_v9 = vrot.slane %v3293_v5, 4  ;;  %v8716_v42 = vrot.slane %v8715_v46, 7 }
 0x2a7   :  { %v2813_v21 = vsel %vm2812_vm11, %v3986_v24, %v2809_v62  ;;  %v7291_v7 = vrot.slane %v6635_v10, 2  ;;  %v2559_v48 = vmul.f32 %v2332_v20, %v8717_v40  ;;  %v8718_v59 = vrot.slane %v7094_v27, 6  ;;  %v2339_v62 = vpop.permute.xlu1 %2338 }
 0x2a8   :  { %v3336_v25 = vsel %vm3139_vm14, %v8716_v42, %v7024_v53  ;;  %v2818_v5 = vsel %vm7250_vm15, %v2817_v58, %v2813_v21  ;;  %v2237_v63 = vsel %vm7270_vm2, %v3988_v30, %v2233_v18  ;;  %v2248_v24 = vadd.f32 %v3990_v44, %v2247_v49 }
 0x2a9   :  { %v3338_v34 = vsel %vm3229_vm5, %v8718_v59, %v3336_v25  ;;  %v7301_v46 = vmul.f32 %v2818_v5, %v2607_v60  ;;  %v2242_v53 = vsel %vm7256_vm3, %v2241_v37, %v2237_v63  ;;  %v8719_v42 = vrot.slane %v7202_v2, 5  ;;  %v8721_v2 = vld [vmem:[#allocation16_spill] sm:$0xff]  ;;  %v7333_v18 = vpop.permute.xlu2 %2351 }
 0x2aa   :  { %3991 = vrcp.f32 %v7291_v7  ;;  %v1365_v43 = vmul.f32 0.7978846, %v7198_v31  ;;  %v7310_v30 = vmul.f32 %v2242_v53, %v1909_v17  ;;  %v2252_v27 = vsel %vm7282_vm13, %v3990_v44, %v2248_v24  ;;  %v8724_v24 = vld [vmem:[#allocation67_spill] sm:$0xff] }
 0x2ab   :  { %v3340_v20 = vsel %vm3232_vm10, %v8719_v42, %v3338_v34  ;;  %3993 = vtanh.f32 %v7188_v13  ;;  %v2257_v58 = vsel %vm7260_vm4, %v2256_v51, %v2252_v27  ;;  %v3343_v55 = vrot.slane %v3294_v39, 3 }
 0x2ac   :  { %8720 = vst [vmem:[#allocation78_spill] sm:$0xff] %v7310_v30  ;;  %v3342_v25 = vsel %vm3235_vm7, %v3341_v9, %v3340_v20  ;;  %v2608_v37 = vadd.f32 %v2559_v48, %v8721_v2  ;;  %v1363_v29 = vmul.f32 0.7978846, %v7205_v15  ;;  %v7321_v60 = vmul.f32 %v2257_v58, %v7233_v33  ;;  %v4073_v15 = vld [vmem:[%s8124_s3 + $0x40] sm:$0xff] }
 0x2ad   :  { %vm3238_vm12 = vcmask 1045509   ;;  %v3295_v31 = vmul.f32 %v7310_v30, %v7310_v30  ;;  %vm3241_vm15 = vcmask 1046534   ;;  %v2829_v13 = vand.u32 2147483647, %v7291_v7  ;;  %v8758_v30 = vld [vmem:[#allocation31_spill] sm:$0xff] }
 0x2ae   :  { %8722 = vst [vmem:[#allocation61_spill] sm:$0xff] %v7321_v60  ;;  %v3344_v17 = vsel %vm3238_vm12, %v3343_v55, %v3342_v25  ;;  %v2609_v44 = vrot.slane %v2608_v37, 4  ;;  %v3296_v45 = vmul.f32 %v7321_v60, %v7321_v60  ;;  %v2831_v39 = vand.u32 2147483648, %v7291_v7 }
 0x2af   :  { %v3345_v51 = vrot.slane %v3295_v31, 2  ;;  %v2385_v33 = vperm.slane %v4073_v15, 7  ;;  %v7336_v21 = vrot.slane %v6635_v10, 3  ;;  %v2560_v40 = vmul.f32 %v2339_v62, %v8723_v50  ;;  %v2430_v25 = vpop.permute.xlu1 %2429 }
 0x2b0   :  { %v3992_v49 = vpop.eup %3991  ;;  %v2610_v9 = vadd.f32 %v2609_v44, %v2608_v37  ;;  %3995 = vrcp.f32 %v6474_v41  ;;  %v3347_v5 = vrot.slane %v3296_v45, 1  ;;  %v2561_v59 = vmul.f32 %v7243_v14, %v8724_v24 }
 0x2b1   :  { %v3346_v48 = vsel %vm3241_vm15, %v3345_v51, %v3344_v17  ;;  %v2821_v63 = vmul.f32 %v3992_v49, %v7291_v7  ;;  %2390 = vperm.xlu1 %3772, %v2385_v33   ;;  %2396 = vperm.xlu2 %3773, %v2385_v33   ;;  %v7344_v34 = vpop.eup %3993  ;;  %v7347_v53 = vmul.f32 0.5, %v7052_v56  ;;  %vm3244_vm1 = vcmask 1047559   ;;  %v2482_v15 = vpop.permute.xlu2 %2481 }
 0x2b2   :  { %v2611_v42 = vrot.slane %v2610_v9, 2  ;;  %3997 = vrcp.f32 %v7336_v21  ;;  %v3348_v62 = vsel %vm3244_vm1, %v3347_v5, %v3346_v48  ;;  %v2615_v27 = vadd.f32 %v2561_v59, %v2560_v40  ;;  %v2488_v48 = vpop.permute.xlu0 %2487 }
 0x2b3   :  { %3999 = vtanh.f32 %v1365_v43  ;;  %v2822_v20 = vsub.f32 1.0, %v2821_v63  ;;  %3360 = vadd.xlane.f32.xlu0 %v3348_v62  ;;  %vm2825_vm3 = vweird.f32 %v7291_v7  ;;  %vm7352_vm4 = vcmp.eq.f32.partialorder %v2829_v13, 8.507059e+37 }
 0x2b4   :  { %4001 = vtanh.f32 %v1363_v29  ;;  %v2612_v56 = vadd.f32 %v2611_v42, %v2610_v9  ;;  %vm2826_vm8 = vweird.f32 %v3992_v49  ;;  %v2832_v55 = vor.u32 1.1754944e-38, %v2831_v39  ;;  %v8727_v29 = vld [vmem:[#allocation72_spill] sm:$0xff] }
 0x2b5   :  { %v2823_v58 = vmul.f32 %v3992_v49, %v2822_v20  ;;  %v2616_v2 = vrot.slane %v2615_v27, 4  ;;  %v2575_v31 = vmul.f32 %v7278_v0, %v6806_v8  ;;  %vm2840_vm9 = vweird.f32 %v7336_v21  ;;  %vm2827_vm6 = vmor %vm2825_vm3, %vm2826_vm8 }
 0x2b6   :  { %v7356_v37 = vpop.eup %3995  ;;  %v2613_v43 = vrot.slane %v2612_v56, 1  ;;  %v2574_v17 = vmul.f32 %v2430_v25, %v8727_v29  ;;  %v2844_v13 = vand.u32 2147483647, %v7336_v21  ;;  %v2846_v9 = vand.u32 2147483648, %v7336_v21 }
 0x2b7   :  { %v2824_v44 = vadd.f32 %v3992_v49, %v2823_v58  ;;  %v2617_v45 = vadd.f32 %v2616_v2, %v2615_v27  ;;  %v2941_v51 = vmul.f32 %v7356_v37, %v6474_v41  ;;  %v2582_v50 = vmul.f32 %v2482_v15, %v6936_v32 }
 0x2b8   :  { %v3998_v39 = vpop.eup %3997  ;;  %v2614_v33 = vadd.f32 %v2613_v43, %v2612_v56  ;;  %v2664_v0 = vadd.f32 %v2575_v31, %v2574_v17  ;;  %vm2945_vm2 = vweird.f32 %v6474_v41  ;;  %v2583_v32 = vmul.f32 %v2488_v48, %v6926_v23  ;;  %v2475_v31 = vpop.permute.xlu1 %2474 }
 0x2b9   :  { %v4000_v40 = vpop.eup %3999  ;;  %v2828_v5 = vsel %vm2827_vm6, %v3992_v49, %v2824_v44  ;;  %3775 = vset.pattern.permute.xlu1 %v5659_v57  ;;  %v2836_v63 = vmul.f32 %v3998_v39, %v7336_v21  ;;  %v2618_v24 = vrot.slane %v2617_v45, 2  ;;  %3776 = vset.pattern.permute.xlu2 %v8592_v54  ;;  %v2942_v42 = vsub.f32 1.0, %v2941_v51 }
 0x2ba   :  { %v4002_v7 = vpop.eup %4001  ;;  %v2833_v59 = vsel %vm7352_vm4, %v2832_v55, %v2828_v5  ;;  %v2665_v62 = vrot.slane %v2664_v0, 4  ;;  %v7379_v25 = vrot.slane %v6474_v41, 4  ;;  %vm2946_vm11 = vweird.f32 %v7356_v37 }
 0x2bb   :  { %v7376_v20 = vmul.f32 %v2833_v59, %v2614_v33  ;;  %v2837_v49 = vsub.f32 1.0, %v2836_v63  ;;  %v2619_v27 = vadd.f32 %v2618_v24, %v2617_v45  ;;  %v2943_v56 = vmul.f32 %v7356_v37, %v2942_v42  ;;  %vm7390_vm3 = vmor %vm2945_vm2, %vm2946_vm11  ;;  %v8730_v24 = vld [vmem:[#allocation15_spill] sm:$0xff] }
 0x2bc   :  { %v2666_v58 = vadd.f32 %v2665_v62, %v2664_v0  ;;  %v2692_v2 = vadd.f32 %v2583_v32, %v2582_v50  ;;  %vm2841_vm13 = vweird.f32 %v3998_v39  ;;  %v2847_v14 = vor.u32 1.1754944e-38, %v2846_v9 }
 0x2bd   :  { %v2838_v43 = vmul.f32 %v3998_v39, %v2837_v49  ;;  %v2620_v55 = vrot.slane %v2619_v27, 1  ;;  %v2944_v23 = vadd.f32 %v7356_v37, %v2943_v56  ;;  %4003 = vrcp.f32 %v7379_v25  ;;  %vm2842_vm4 = vmor %vm2840_vm9, %vm2841_vm13 }
 0x2be   :  { %v2667_v17 = vrot.slane %v2666_v58, 2  ;;  %v2693_v44 = vrot.slane %v2692_v2, 4  ;;  %v1444_v45 = vadd.f32 1.0, %v7221_v3  ;;  %v2951_v9 = vand.u32 2147483648, %v6474_v41 }
 0x2bf   :  { %v2839_v51 = vadd.f32 %v3998_v39, %v2838_v43  ;;  %v2621_v15 = vadd.f32 %v2620_v55, %v2619_v27  ;;  %v1442_v0 = vadd.f32 1.0, %v7344_v34  ;;  %v2949_v50 = vand.u32 2147483647, %v6474_v41  ;;  %v8733_v55 = vld [vmem:[#allocation77_spill] sm:$0xff] }
 0x2c0   :  { %v2668_v3 = vadd.f32 %v2667_v17, %v2666_v58  ;;  %v2694_v48 = vadd.f32 %v2693_v44, %v2692_v2  ;;  %v1445_v5 = vadd.f32 1.0, %v4000_v40  ;;  %vm2845_vm8 = vcmp.eq.f32.partialorder %v2844_v13, 8.507059e+37  ;;  %v2358_v33 = vpop.permute.xlu1 %2357 }
 0x2c1   :  { %v2843_v63 = vsel %vm2842_vm4, %v3998_v39, %v2839_v51  ;;  %v8731_v59 = vperm.slane %v8730_v24, 7  ;;  %v2948_v42 = vsel %vm7390_vm3, %v7356_v37, %v2944_v23  ;;  %v8732_v62 = vperm.slane %v6303_v1, 0  ;;  %v8737_v1 = vld [vmem:[#allocation73_spill] sm:$0xff] }
 0x2c2   :  { %v2848_v34 = vsel %vm2845_vm8, %v2847_v14, %v2843_v63  ;;  %v2669_v21 = vrot.slane %v2668_v3, 1  ;;  %v2695_v32 = vrot.slane %v2694_v48, 2  ;;  %v7407_v49 = vrot.slane %v6474_v41, 3  ;;  %v8736_v63 = vld [vmem:[#allocation32_spill] sm:$0xff] }
 0x2c3   :  { %2526 = vperm.xlu1 %3775, %v8731_v59   ;;  %2403 = vperm.xlu2 %3776, %v8732_v62   ;;  %v1443_v27 = vadd.f32 1.0, %v4002_v7  ;;  %v7409_v40 = vmul.f32 %v2848_v34, %v2621_v15  ;;  %v2952_v13 = vor.u32 1.1754944e-38, %v2951_v9  ;;  %v2581_v39 = vmul.f32 %v2475_v31, %v6957_v22  ;;  %v4004_v56 = vpop.eup %4003 }
 0x2c4   :  { %vm2950_vm9 = vcmp.eq.f32.partialorder %v2949_v50, 8.507059e+37  ;;  %v2670_v58 = vadd.f32 %v2669_v21, %v2668_v3  ;;  %v2696_v2 = vadd.f32 %v2695_v32, %v2694_v48  ;;  %4005 = vrcp.f32 %v7407_v49  ;;  %v8738_v21 = vld [vmem:[#allocation65_spill] sm:$0xff] }
 0x2c5   :  { %v1164_v37 = vmul.f32 0.5, %v7001_v16  ;;  %v2953_v43 = vsel %vm2950_vm9, %v2952_v13, %v2948_v42  ;;  %v3001_v14 = vmul.f32 %v4004_v56, %v7379_v25  ;;  %v2580_v23 = vmul.f32 %v8733_v55, %v6955_v28 }
 0x2c6   :  { %v7418_v7 = vmul.f32 %v1445_v5, %v7347_v53  ;;  %v1162_v17 = vmul.f32 0.5, %v6765_v47  ;;  %v1163_v22 = vmul.f32 0.5, %v6945_v6  ;;  %v7422_v31 = vmul.f32 %v2953_v43, %v2670_v58 }
 0x2c7   :  { %v7424_v44 = vmul.f32 %v1444_v45, %v1164_v37  ;;  %v2697_v51 = vrot.slane %v2696_v2, 1  ;;  %v3002_v15 = vsub.f32 1.0, %v3001_v14  ;;  %v2685_v16 = vadd.f32 %v2581_v39, %v2580_v23  ;;  %v8739_v23 = vld [vmem:[#allocation38_spill] sm:$0xff] }
 0x2c8   :  { %v7426_v9 = vmul.f32 %v1442_v0, %v1162_v17  ;;  %v7428_v50 = vmul.f32 %v1443_v27, %v1163_v22  ;;  %v3009_v28 = vand.u32 2147483647, %v7379_v25  ;;  %v3011_v53 = vand.u32 2147483648, %v7379_v25  ;;  %v8740_v17 = vld [vmem:[#allocation62_spill] sm:$0xff]  ;;  %v7516_v36 = vpop.permute.xlu1 %2364 }
 0x2c9   :  { %v8734_v47 = vmov %v8732_v62  ;;  %v3003_v6 = vmul.f32 %v4004_v56, %v3002_v15  ;;  %vm3006_vm6 = vweird.f32 %v4004_v56  ;;  %v2686_v3 = vrot.slane %v2685_v16, 4  ;;  %v8742_v15 = vld [vmem:[#allocation18_spill] sm:$0xff] }
 0x2ca   :  { %v8735_v45 = vperm.slane %v5875_v4, 0  ;;  %v7437_v48 = vrot.slane %v6635_v10, 4  ;;  %v4006_v0 = vpop.eup %4005  ;;  %v1790_v5 = vmul.f32 %v6989_v38, %v7418_v7  ;;  %v2562_v24 = vmul.f32 %v7333_v18, %v8736_v63 }
 0x2cb   :  { %2409 = vperm.xlu1 %3775, %v8734_v47   ;;  %vm3005_vm2 = vweird.f32 %v7379_v25  ;;  %v2563_v59 = vmul.f32 %v2358_v33, %v8737_v1  ;;  %v2698_v42 = vadd.f32 %v2697_v51, %v2696_v2  ;;  %v3004_v62 = vadd.f32 %v4004_v56, %v3003_v6  ;;  %v8741_v51 = vld [vmem:[#allocation43_spill] sm:$0xff] }
 0x2cc   :  { %2533 = vperm.xlu2 %3776, %v8735_v45   ;;  %v2986_v34 = vmul.f32 %v4006_v0, %v7407_v49  ;;  %v2687_v4 = vadd.f32 %v2686_v3, %v2685_v16  ;;  %v1788_v32 = vmul.f32 %v8738_v21, %v7428_v50  ;;  %vm3007_vm11 = vmor %vm3005_vm2, %vm3006_vm6  ;;  %vm3010_vm13 = vcmp.eq.f32.partialorder %v3009_v28, 8.507059e+37  ;;  %v8743_v16 = vld [vmem:[#allocation70_spill] sm:$0xff]  ;;  %v8744_v28 = vld [vmem:[#allocation75_spill] sm:$0xff] }
 0x2cd   :  { %v3012_v27 = vor.u32 1.1754944e-38, %v3011_v53  ;;  %4007 = vrcp.f32 %v7437_v48  ;;  %v3008_v38 = vsel %vm3007_vm11, %v4004_v56, %v3004_v62  ;;  %v2622_v39 = vadd.f32 %v2563_v59, %v2562_v24 }
 0x2ce   :  { %v2987_v13 = vsub.f32 1.0, %v2986_v34  ;;  %v2688_v18 = vrot.slane %v2687_v4, 2  ;;  %vm2991_vm3 = vweird.f32 %v4006_v0  ;;  %v2994_v58 = vand.u32 2147483647, %v7407_v49 }
 0x2cf   :  { %v3013_v25 = vsel %vm3010_vm13, %v3012_v27, %v3008_v38  ;;  %v2996_v2 = vand.u32 2147483648, %v7407_v49  ;;  %v2623_v55 = vrot.slane %v2622_v39, 4  ;;  %v1854_v22 = vadd.f32 %v8740_v17, %v8739_v23  ;;  %v7469_v27 = vpop.permute.xlu2 %2370 }
 0x2d0   :  { %v7451_v37 = vmul.f32 %v3013_v25, %v2698_v42  ;;  %v2988_v43 = vmul.f32 %v4006_v0, %v2987_v13  ;;  %v2689_v14 = vadd.f32 %v2688_v18, %v2687_v4  ;;  %v1847_v56 = vadd.f32 %v8742_v15, %v8741_v51  ;;  %v8749_v15 = vld [vmem:[#allocation37_spill] sm:$0xff] }
 0x2d1   :  { %v1789_v33 = vmul.f32 %v8743_v16, %v7424_v44  ;;  %v1787_v53 = vmul.f32 %v8744_v28, %v7426_v9  ;;  %vm2990_vm4 = vweird.f32 %v7407_v49  ;;  %v2997_v1 = vor.u32 1.1754944e-38, %v2996_v2  ;;  %v8746_v49 = vld [vmem:[#allocation58_spill] sm:$0xff] }
 0x2d2   :  { %v7463_v47 = vmul.f32 %v7451_v37, %v7185_v19  ;;  %v2989_v6 = vadd.f32 %v4006_v0, %v2988_v43  ;;  %v2690_v3 = vrot.slane %v2689_v14, 1  ;;  %vm2992_vm8 = vmor %vm2990_vm4, %vm2991_vm3  ;;  %v2624_v59 = vadd.f32 %v2623_v55, %v2622_v39  ;;  %v8747_v43 = vld [vmem:[#allocation33_spill] sm:$0xff]  ;;  %v8748_v55 = vld [vmem:[#allocation35_spill] sm:$0xff] }
 0x2d3   :  { %v4008_v45 = vpop.eup %4007  ;;  %v1924_v63 = vadd.f32 %v1790_v5, %v1789_v33  ;;  %v1917_v24 = vadd.f32 %v1788_v32, %v1787_v53  ;;  %vm2995_vm9 = vcmp.eq.f32.partialorder %v2994_v58, 8.507059e+37  ;;  %v2861_v19 = vand.u32 2147483648, %v7437_v48  ;;  %v8750_v33 = vld [vmem:[#allocation55_spill] sm:$0xff]  ;;  %v8751_v53 = vld [vmem:[#allocation30_spill] sm:$0xff] }
 0x2d4   :  { %8745 = vst [vmem:[#allocation57_spill] sm:$0xff] %v7463_v47  ;;  %v2993_v42 = vsel %vm2992_vm8, %v4006_v0, %v2989_v6  ;;  %v2691_v62 = vadd.f32 %v2690_v3, %v2689_v14  ;;  %v2851_v34 = vmul.f32 %v4008_v45, %v7437_v48  ;;  %v2625_v21 = vrot.slane %v2624_v59, 2  ;;  %v8754_v16 = vld [vmem:[#allocation34_spill] sm:$0xff] }
 0x2d5   :  { %v2998_v4 = vsel %vm2995_vm9, %v2997_v1, %v2993_v42  ;;  %v7472_v38 = vrot.slane %v8746_v49, 7  ;;  %v1855_v5 = vrot.slane %v1854_v22, 4  ;;  %v1848_v32 = vrot.slane %v1847_v56, 4 }
 0x2d6   :  { %v7474_v13 = vmul.f32 %v2998_v4, %v2691_v62  ;;  %v2852_v18 = vsub.f32 1.0, %v2851_v34  ;;  %v1925_v39 = vrot.slane %v1924_v63, 4  ;;  %v1918_v0 = vrot.slane %v1917_v24, 4  ;;  %v8753_v34 = vld [vmem:[#allocation41_spill] sm:$0xff] }
 0x2d7   :  { %v2626_v25 = vadd.f32 %v2625_v21, %v2624_v59  ;;  %4009 = vrcp.f32 %v7472_v38  ;;  %vm2855_vm6 = vweird.f32 %v7437_v48  ;;  %vm2856_vm2 = vweird.f32 %v4008_v45 }
 0x2d8   :  { %v2853_v58 = vmul.f32 %v4008_v45, %v2852_v18  ;;  %v2859_v2 = vand.u32 2147483647, %v7437_v48  ;;  %v7480_v14 = vrot.slane %v8747_v43, 1  ;;  %v3280_v23 = vmul.f32 %v8748_v55, %v8748_v55  ;;  %vm2857_vm11 = vmor %vm2855_vm6, %vm2856_vm2 }
 0x2d9   :  { %v2862_v17 = vor.u32 1.1754944e-38, %v2861_v19  ;;  %v2627_v51 = vrot.slane %v2626_v25, 1  ;;  %v2260_v28 = vmul.f32 %v8750_v33, %v8747_v43  ;;  %v8752_v6 = vrot.slane %v8751_v53, 2 }
 0x2da   :  { %v2854_v1 = vadd.f32 %v4008_v45, %v2853_v58  ;;  %v1856_v59 = vadd.f32 %v1855_v5, %v1854_v22  ;;  %v1849_v48 = vadd.f32 %v1848_v32, %v1847_v56  ;;  %v1926_v42 = vadd.f32 %v1925_v39, %v1924_v63  ;;  %v8755_v5 = vld [vmem:[#allocation69_spill] sm:$0xff] }
 0x2db   :  { %v1844_v3 = vadd.f32 %v8752_v6, %v8751_v53  ;;  %v2628_v62 = vadd.f32 %v2627_v51, %v2626_v25  ;;  %v3281_v4 = vmul.f32 %v8753_v34, %v8753_v34  ;;  %v1919_v19 = vadd.f32 %v1918_v0, %v1917_v24  ;;  %v7500_v0 = vpop.permute.xlu2 %2500  ;;  %v2514_v51 = vpop.permute.xlu0 %2513 }
 0x2dc   :  { %v2858_v21 = vsel %vm2857_vm11, %v4008_v45, %v2854_v1  ;;  %vm2860_vm13 = vcmp.eq.f32.partialorder %v2859_v2, 8.507059e+37  ;;  %4011 = vrcp.f32 %v7480_v14  ;;  %v3319_v18 = vrot.slane %v3280_v23, 7  ;;  %v8756_v2 = vld [vmem:[#allocation26_spill] sm:$0xff] }
 0x2dd   :  { %v4010_v49 = vpop.eup %4009  ;;  %v3282_v29 = vmul.f32 %v8754_v16, %v8754_v16  ;;  %v2863_v53 = vsel %vm2860_vm13, %v2862_v17, %v2858_v21  ;;  %v2261_v58 = vsub.f32 1.0, %v2260_v28  ;;  %v1845_v22 = vrot.slane %v1844_v3, 1 }
 0x2de   :  { %v7495_v56 = vmul.f32 %v2863_v53, %v2628_v62  ;;  %v2095_v63 = vmul.f32 %v4010_v49, %v7472_v38  ;;  %v3279_v32 = vmul.f32 %v8755_v5, %v8755_v5  ;;  %v1857_v24 = vrot.slane %v1856_v59, 2  ;;  %v8757_v62 = vld [vmem:[#allocation14_spill] sm:$0xff] }
 0x2df   :  { %v1850_v45 = vrot.slane %v1849_v48, 2  ;;  %v1927_v39 = vrot.slane %v1926_v42, 2  ;;  %v3321_v25 = vrot.slane %v3281_v4, 6  ;;  %v3283_v23 = vmul.f32 %v8756_v2, %v8756_v2 }
 0x2e0   :  { %v1920_v17 = vrot.slane %v1919_v19, 2  ;;  %v2096_v28 = vsub.f32 1.0, %v2095_v63  ;;  %v3323_v6 = vrot.slane %v3282_v29, 5  ;;  %v2105_v1 = vand.u32 2147483648, %v7472_v38 }
 0x2e1   :  { %v3284_v21 = vmul.f32 %v8757_v62, %v8757_v62  ;;  %v3320_v53 = vsel %vm3139_vm14, %v3319_v18, %v3279_v32  ;;  %v1846_v8 = vadd.f32 %v1845_v22, %v1844_v3  ;;  %vm2100_vm3 = vweird.f32 %v4010_v49 }
 0x2e2   :  { %v2097_v54 = vmul.f32 %v4010_v49, %v2096_v28  ;;  %v2103_v57 = vand.u32 2147483647, %v7472_v38  ;;  %v7509_v4 = vpop.eup %4011  ;;  %v7511_v60 = vadd.f32 %v1857_v24, %v1856_v59  ;;  %v1851_v47 = vadd.f32 %v1850_v45, %v1849_v48 }
 0x2e3   :  { %v7514_v63 = vmul.f32 %v2514_v51, %v8758_v30  ;;  %v1928_v29 = vadd.f32 %v1927_v39, %v1926_v42  ;;  %v1921_v61 = vadd.f32 %v1920_v17, %v1919_v19  ;;  %vm2099_vm4 = vweird.f32 %v7472_v38  ;;  %v8759_v30 = vld [vmem:[#allocation68_spill] sm:$0xff]  ;;  %v7525_v38 = vpop.permute.xlu2 %2416 }
 0x2e4   :  { %v2098_v62 = vadd.f32 %v4010_v49, %v2097_v54  ;;  %v3322_v3 = vsel %vm3229_vm5, %v3321_v25, %v3320_v53  ;;  %vm2101_vm8 = vmor %vm2099_vm4, %vm2100_vm3  ;;  %v2106_v18 = vor.u32 1.1754944e-38, %v2105_v1  ;;  %v3327_v32 = vrot.slane %v3284_v21, 3 }
 0x2e5   :  { %v3324_v22 = vsel %vm3232_vm10, %v3323_v6, %v3322_v3  ;;  %v2262_v59 = vmul.f32 %v8750_v33, %v2261_v58  ;;  %vm2104_vm9 = vcmp.eq.f32.partialorder %v2103_v57, 8.507059e+37  ;;  %v3285_v42 = vmul.f32 %v8759_v30, %v8759_v30 }
 0x2e6   :  { %v2102_v48 = vsel %vm2101_vm8, %v4010_v49, %v2098_v62  ;;  %v3325_v19 = vrot.slane %v3283_v23, 4  ;;  %v1859_v24 = vrot.slane %v7511_v60, 1  ;;  %v1852_v54 = vrot.slane %v1851_v47, 1 }
 0x2e7   :  { %v2107_v45 = vsel %vm2104_vm9, %v2106_v18, %v2102_v48  ;;  %v2275_v39 = vmul.f32 %v7509_v4, %v7480_v14  ;;  %v1929_v25 = vrot.slane %v1928_v29, 1  ;;  %v1922_v51 = vrot.slane %v1921_v61, 1 }
 0x2e8   :  { %v7529_v17 = vmul.f32 %v2107_v45, %v1846_v8  ;;  %v3326_v49 = vsel %vm3235_vm7, %v3325_v19, %v3324_v22  ;;  %v2263_v58 = vadd.f32 %v8750_v33, %v2262_v59  ;;  %vm2265_vm6 = vweird.f32 %v8750_v33  ;;  %v7557_v45 = vpop.permute.xlu1 %2494 }
 0x2e9   :  { %v3328_v57 = vsel %vm3238_vm12, %v3327_v32, %v3326_v49  ;;  %v2276_v23 = vsub.f32 1.0, %v2275_v39  ;;  %v3329_v6 = vrot.slane %v3285_v42, 2  ;;  %v2270_v1 = vand.u32 2147483648, %v8747_v43 }
 0x2ea   :  { %v3286_v28 = vmul.f32 %v7529_v17, %v7529_v17  ;;  %v2283_v62 = vand.u32 2147483647, %v7480_v14  ;;  %vm2264_vm2 = vweird.f32 %v8747_v43  ;;  %vm2280_vm11 = vweird.f32 %v7509_v4 }
 0x2eb   :  { %v2277_v8 = vmul.f32 %v7509_v4, %v2276_v23  ;;  %v2285_v21 = vand.u32 2147483648, %v7480_v14  ;;  %v1930_v53 = vadd.f32 %v1929_v25, %v1928_v29  ;;  %v1923_v3 = vadd.f32 %v1922_v51, %v1921_v61  ;;  %vm7544_vm13 = vmor %vm2264_vm2, %vm2265_vm6  ;;  %v8763_v29 = vld [vmem:[#allocation36_spill] sm:$0xff]  ;;  %v8772_v23 = vld [vmem:[#allocation29_spill] sm:$0xff] }
 0x2ec   :  { %v3330_v18 = vsel %vm3241_vm15, %v3329_v6, %v3328_v57  ;;  %v2268_v32 = vand.u32 2147483647, %v8747_v43  ;;  %v2267_v59 = vsel %vm7544_vm13, %v8750_v33, %v2263_v58  ;;  %vm2279_vm3 = vweird.f32 %v7480_v14  ;;  %v8764_v33 = vld [vmem:[#allocation60_spill] sm:$0xff]  ;;  %v8769_v6 = vld [vmem:[#allocation42_spill] sm:$0xff] }
 0x2ed   :  { %v2278_v48 = vadd.f32 %v7509_v4, %v2277_v8  ;;  %v8762_v42 = vsub.f32 1.0, %v8749_v15  ;;  %v3331_v19 = vrot.slane %v3286_v28, 1  ;;  %v2271_v39 = vor.u32 1.1754944e-38, %v2270_v1  ;;  %vm2281_vm4 = vmor %vm2279_vm3, %vm2280_vm11  ;;  %v8768_v28 = vld [vmem:[#allocation63_spill] sm:$0xff] }
 0x2ee   :  { %vm2284_vm8 = vcmp.eq.f32.partialorder %v2283_v62, 8.507059e+37  ;;  %v2286_v25 = vor.u32 1.1754944e-38, %v2285_v21  ;;  %vm2114_vm9 = vweird.f32 %v8764_v33  ;;  %vm2115_vm6 = vweird.f32 %v8763_v29  ;;  %v2508_v62 = vpop.permute.xlu2 %2507 }
 0x2ef   :  { %v2112_v61 = vmul.f32 %v8763_v29, %v8762_v42  ;;  %v2282_v43 = vsel %vm2281_vm4, %v7509_v4, %v2278_v48  ;;  %v1853_v14 = vadd.f32 %v1852_v54, %v1851_v47  ;;  %vm2269_vm2 = vcmp.eq.f32.partialorder %v2268_v32, 8.507059e+37  ;;  %vm7566_vm13 = vmor %vm2114_vm9, %vm2115_vm6 }
 0x2f0   :  { %v2287_v15 = vsel %vm2284_vm8, %v2286_v25, %v2282_v43  ;;  %v2118_v49 = vand.u32 2147483647, %v8764_v33  ;;  %v2272_v57 = vsel %vm2269_vm2, %v2271_v39, %v2267_v59  ;;  %v2120_v4 = vand.u32 2147483648, %v8764_v33 }
 0x2f1   :  { %v2113_v51 = vadd.f32 %v8763_v29, %v2112_v61  ;;  %v7564_v58 = vmul.f32 %v2287_v15, %v1930_v53  ;;  %v2125_v1 = vmul.f32 %v8769_v6, %v8768_v28  ;;  %v3332_v8 = vsel %vm3244_vm1, %v3331_v19, %v3330_v18  ;;  %v8770_v18 = vld [vmem:[#allocation50_spill] sm:$0xff] }
 0x2f2   :  { %v7574_v47 = vmul.f32 %v2272_v57, %v1923_v3  ;;  %vm2119_vm11 = vcmp.eq.f32.partialorder %v2118_v49, 8.507059e+37  ;;  %v2121_v53 = vor.u32 1.1754944e-38, %v2120_v4  ;;  %vm2129_vm3 = vweird.f32 %v8768_v28 }
 0x2f3   :  { %8765 = vst [vmem:[#allocation23_spill] sm:$0xff] %v7564_v58  ;;  %v2117_v54 = vsel %vm7566_vm13, %v8763_v29, %v2113_v51  ;;  %v3298_v21 = vmul.f32 %v7564_v58, %v7564_v58  ;;  %v2126_v22 = vsub.f32 1.0, %v2125_v1  ;;  %vm2130_vm4 = vweird.f32 %v8769_v6  ;;  %v2384_v51 = vpop.permute.xlu1 %2383 }
 0x2f4   :  { %v2133_v32 = vand.u32 2147483647, %v8768_v28  ;;  %v2135_v3 = vand.u32 2147483648, %v8768_v28  ;;  %v2586_v59 = vmul.f32 %v2508_v62, %v8770_v18  ;;  %v2122_v42 = vsel %vm2119_vm11, %v2121_v53, %v2117_v54  ;;  %vm2131_vm8 = vmor %vm2129_vm3, %vm2130_vm4 }
 0x2f5   :  { %3355 = vadd.xlane.f32.xlu1 %v3332_v8  ;;  %v3349_v48 = vrot.slane %v3298_v21, 7  ;;  %v2127_v29 = vmul.f32 %v8769_v6, %v2126_v22  ;;  %v7588_v61 = vrot.slane %v6474_v41, 6  ;;  %v3297_v19 = vmul.f32 %v7574_v47, %v7574_v47  ;;  %v8774_v8 = vld [vmem:[#allocation28_spill] sm:$0xff] }
 0x2f6   :  { %v7592_v39 = vmul.f32 %v2122_v42, %v1853_v14  ;;  %v2136_v25 = vor.u32 1.1754944e-38, %v2135_v3  ;;  %v2706_v43 = vadd.f32 %v7514_v63, %v2586_v59  ;;  %v1860_v33 = vadd.f32 %v1859_v24, %v7511_v60  ;;  %v8773_v24 = vld [vmem:[#allocation17_spill] sm:$0xff]  ;;  %v8776_v22 = vld [vmem:[#allocation64_spill] sm:$0xff] }
 0x2f7   :  { %v2128_v15 = vadd.f32 %v8769_v6, %v2127_v29  ;;  %4013 = vrcp.f32 %v7588_v61  ;;  %v3350_v49 = vsel %vm3139_vm14, %v3349_v48, %v3297_v19  ;;  %vm2134_vm9 = vcmp.eq.f32.partialorder %v2133_v32, 8.507059e+37  ;;  %v8777_v29 = vld [vmem:[#allocation66_spill] sm:$0xff] }
 0x2f8   :  { %8771 = vst [vmem:[#allocation25_spill] sm:$0xff] %v7592_v39  ;;  %v2707_v14 = vrot.slane %v2706_v43, 4  ;;  %v7607_v63 = vrot.slane %v6635_v10, 6  ;;  %v2567_v60 = vmul.f32 %v2384_v51, %v8772_v23  ;;  %v7611_v4 = vadd.f32 1e-06, %v8773_v24  ;;  %v8778_v51 = vld [vmem:[#allocation76_spill] sm:$0xff] }
 0x2f9   :  { %v2132_v57 = vsel %vm2131_vm8, %v8769_v6, %v2128_v15  ;;  %vm3270_vm6 = vcmask 1041408   ;;  %v7614_v54 = vadd.f32 1e-06, %v8774_v8  ;;  %v7621_v6 = vrot.slane %v6635_v10, 5 }
 0x2fa   :  { %v2137_v1 = vsel %vm2134_vm9, %v2136_v25, %v2132_v57  ;;  %v2708_v62 = vadd.f32 %v2707_v14, %v2706_v43  ;;  %v3362_v28 = vsel %vm3270_vm6, %v3350_v49, 0.0  ;;  %4015 = vrcp.f32 %v7607_v63 }
 0x2fb   :  { %v7617_v21 = vmul.f32 %v2137_v1, %v1860_v33  ;;  %v2636_v32 = vadd.f32 %v2567_v60, %v8776_v22  ;;  %v3287_v18 = vmul.f32 %v7592_v39, %v7592_v39  ;;  %4017 = vrcp.f32 %v7611_v4  ;;  %v2423_v22 = vpop.permute.xlu1 %2422 }
 0x2fc   :  { %v2709_v53 = vrot.slane %v2708_v62, 2  ;;  %4019 = vrcp.f32 %v7614_v54  ;;  %v2564_v19 = vmul.f32 %v7516_v36, %v8777_v29  ;;  %v2565_v33 = vmul.f32 %v7469_v27, %v8778_v51 }
 0x2fd   :  { %8775 = vst [vmem:[#allocation47_spill] sm:$0xff] %v7617_v21  ;;  %3363 = vadd.xlane.f32.xlu1 %v3362_v28  ;;  %v4014_v3 = vpop.eup %4013  ;;  %v3288_v59 = vmul.f32 %v7617_v21, %v7617_v21  ;;  %v2637_v43 = vrot.slane %v2636_v32, 4  ;;  %4021 = vrcp.f32 %v7621_v6  ;;  %v3039_v23 = vand.u32 2147483647, %v7588_v61 }
 0x2fe   :  { %v2710_v48 = vadd.f32 %v2709_v53, %v2708_v62  ;;  %v3031_v42 = vmul.f32 %v4014_v3, %v7588_v61  ;;  %v3041_v60 = vand.u32 2147483648, %v7588_v61  ;;  %vm3036_vm2 = vweird.f32 %v4014_v3 }
 0x2ff   :  { %v3333_v25 = vrot.slane %v3288_v59, 7  ;;  %v2638_v24 = vadd.f32 %v2637_v43, %v2636_v32  ;;  %v2629_v8 = vadd.f32 %v2565_v33, %v2564_v19  ;;  %v7642_v27 = vrot.slane %v6474_v41, 5 }
 0x300   :  { %v2711_v15 = vrot.slane %v2710_v48, 1  ;;  %v3032_v49 = vsub.f32 1.0, %v3031_v42  ;;  %v4016_v14 = vpop.eup %4015  ;;  %v2891_v28 = vand.u32 2147483648, %v7607_v63  ;;  %vm3035_vm13 = vweird.f32 %v7588_v61 }
 0x301   :  { %v3334_v57 = vsel %vm3139_vm14, %v3333_v25, %v3287_v18  ;;  %v2881_v62 = vmul.f32 %v4016_v14, %v7607_v63  ;;  %v2639_v53 = vrot.slane %v2638_v24, 2  ;;  %v7645_v18 = vpop.eup %4017  ;;  %vm3037_vm11 = vmor %vm3035_vm13, %vm3036_vm2  ;;  %vm3040_vm3 = vcmp.eq.f32.partialorder %v3039_v23, 8.507059e+37 }
 0x302   :  { %v3357_v1 = vsel %vm3270_vm6, %v3334_v57, 0.0  ;;  %v3033_v36 = vmul.f32 %v4014_v3, %v3032_v49  ;;  %v2712_v59 = vadd.f32 %v2711_v15, %v2710_v48  ;;  %v7648_v29 = vpop.eup %4019  ;;  %v3042_v19 = vor.u32 1.1754944e-38, %v3041_v60  ;;  %v8780_v60 = vld [vmem:[#allocation59_spill] sm:$0xff] }
 0x303   :  { %3358 = vadd.xlane.f32.xlu2 %v3357_v1  ;;  %v2882_v32 = vsub.f32 1.0, %v2881_v62  ;;  %vm2885_vm4 = vweird.f32 %v7607_v63  ;;  %v2640_v25 = vadd.f32 %v2639_v53, %v2638_v24  ;;  %v7651_v43 = vpop.eup %4021  ;;  %vm2886_vm8 = vweird.f32 %v4016_v14  ;;  %v8779_v1 = vld [vmem:[#allocation53_spill] sm:$0xff] }
 0x304   :  { %v3034_v42 = vadd.f32 %v4014_v3, %v3033_v36  ;;  %v2889_v49 = vand.u32 2147483647, %v7607_v63  ;;  %v2630_v48 = vrot.slane %v2629_v8, 4  ;;  %v2892_v57 = vor.u32 1.1754944e-38, %v2891_v28  ;;  %vm2887_vm9 = vmor %vm2885_vm4, %vm2886_vm8 }
 0x305   :  { %v2883_v33 = vmul.f32 %v4016_v14, %v2882_v32  ;;  %v2641_v61 = vrot.slane %v2640_v25, 1  ;;  %v2584_v36 = vmul.f32 %v7557_v45, %v8779_v1  ;;  %4023 = vrcp.f32 %v7642_v27 }
 0x306   :  { %v3038_v51 = vsel %vm3037_vm11, %v4014_v3, %v3034_v42  ;;  %v2585_v24 = vmul.f32 %v7500_v0, %v8780_v60  ;;  %v2866_v53 = vmul.f32 %v7651_v43, %v7621_v6  ;;  %vm2890_vm2 = vcmp.eq.f32.partialorder %v2889_v49, 8.507059e+37  ;;  %v2553_v42 = vpop.permute.xlu2 %2552  ;;  %v8782_v49 = vld [vmem:[#allocation44_spill] sm:$0xff] }
 0x307   :  { %v3043_v15 = vsel %vm3040_vm3, %v3042_v19, %v3038_v51  ;;  %v2884_v23 = vadd.f32 %v4016_v14, %v2883_v33  ;;  %v2642_v3 = vadd.f32 %v2641_v61, %v2640_v25  ;;  %v2631_v32 = vadd.f32 %v2630_v48, %v2629_v8  ;;  %v8781_v33 = vld [vmem:[#allocation49_spill] sm:$0xff]  ;;  %v8783_v61 = vld [vmem:[#allocation51_spill] sm:$0xff] }
 0x308   :  { %v7656_v62 = vmul.f32 %v3043_v15, %v2712_v59  ;;  %v2547_v59 = vpop.permute.xlu1 %2546  ;;  %v2699_v19 = vadd.f32 %v2585_v24, %v2584_v36  ;;  %v2573_v15 = vmul.f32 %v2423_v22, %v8781_v33  ;;  %v7669_v63 = vrot.slane %v7611_v4, 1 }
 0x309   :  { %v2888_v28 = vsel %vm2887_vm9, %v4016_v14, %v2884_v23  ;;  %v7673_v0 = vmul.f32 %v7645_v18, %v7611_v4  ;;  %v7676_v25 = vrot.slane %v7614_v54, 1  ;;  %v2867_v14 = vsub.f32 1.0, %v2866_v53  ;;  %v2540_v23 = vpop.permute.xlu0 %2539 }
 0x30a   :  { %v2893_v45 = vsel %vm2890_vm2, %v2892_v57, %v2888_v28  ;;  %v2572_v8 = vmul.f32 %v7525_v38, %v8782_v49  ;;  %v2592_v48 = vmul.f32 %v2547_v59, %v7424_v44  ;;  %v7685_v22 = vmul.f32 %v7648_v29, %v7614_v54 }
 0x30b   :  { %v7665_v51 = vmul.f32 %v2893_v45, %v2642_v3  ;;  %v7681_v57 = vpop.eup %4023  ;;  %v7689_v1 = vmul.f32 %v7176_v11, %v8783_v61  ;;  %v2632_v36 = vrot.slane %v2631_v32, 2  ;;  %v7693_v3 = vmul.f32 %v7176_v11, %v7176_v11 }
 0x30c   :  { %v2700_v60 = vrot.slane %v2699_v19, 4  ;;  %v2657_v38 = vadd.f32 %v2573_v15, %v2572_v8  ;;  %v2593_v44 = vmul.f32 %v2553_v42, %v7418_v7  ;;  %4025 = vrcp.f32 %v7669_v63 }
 0x30d   :  { %4027 = vrcp.f32 %v7676_v25  ;;  %v2868_v53 = vmul.f32 %v7651_v43, %v2867_v14  ;;  %v3016_v28 = vmul.f32 %v7681_v57, %v7642_v27  ;;  %v7704_v11 = vmul.f32 %v2540_v23, %v7428_v50 }
 0x30e   :  { %v2727_v45 = vadd.f32 %v2593_v44, %v2592_v48  ;;  %v2633_v7 = vadd.f32 %v2632_v36, %v2631_v32  ;;  %v7710_v15 = vmul.f32 %v7235_v12, %v7235_v12  ;;  %v2701_v49 = vadd.f32 %v2700_v60, %v2699_v19  ;;  %v7712_v8 = vpop.permute.xlu2 %2396 }
 0x30f   :  { %v2658_v14 = vrot.slane %v2657_v38, 4  ;;  %v7716_v48 = vmul.f32 %v7301_v46, %v8748_v55  ;;  %v7720_v50 = vmul.f32 %v7301_v46, %v7301_v46  ;;  %vm2870_vm13 = vweird.f32 %v7621_v6 }
 0x310   :  { %v2876_v32 = vand.u32 2147483648, %v7621_v6  ;;  %v2869_v61 = vadd.f32 %v7651_v43, %v2868_v53  ;;  %vm2871_vm11 = vweird.f32 %v7651_v43  ;;  %v3017_v12 = vsub.f32 1.0, %v3016_v28 }
 0x311   :  { %v2728_v19 = vrot.slane %v2727_v45, 4  ;;  %v7730_v55 = vmul.f32 %v7190_v26, %v8755_v5  ;;  %v3365_v46 = vmul.f32 %v7190_v26, %v7190_v26  ;;  %v7736_v23 = vmul.f32 %v7376_v20, %v8753_v34  ;;  %vm7750_vm3 = vmor %vm2870_vm13, %vm2871_vm11 }
 0x312   :  { %v7726_v36 = vpop.eup %4025  ;;  %v2634_v60 = vrot.slane %v2633_v7, 1  ;;  %v3367_v53 = vmul.f32 %v7376_v20, %v7376_v20  ;;  %v2874_v28 = vand.u32 2147483647, %v7621_v6  ;;  %v2702_v24 = vrot.slane %v2701_v49, 2 }
 0x313   :  { %v7738_v44 = vpop.eup %4027  ;;  %v2659_v33 = vadd.f32 %v2658_v14, %v2657_v38  ;;  %v2877_v59 = vor.u32 1.1754944e-38, %v2876_v32  ;;  %v3405_v20 = vrot.slane %v7720_v50, 7  ;;  %v2873_v38 = vsel %vm7750_vm3, %v7651_v43, %v2869_v61 }
 0x314   :  { %v3018_v14 = vmul.f32 %v7681_v57, %v3017_v12  ;;  %v2729_v5 = vadd.f32 %v2728_v19, %v2727_v45  ;;  %v7762_v42 = vmul.f32 %v7409_v40, %v8754_v16  ;;  %v3368_v6 = vmul.f32 %v7409_v40, %v7409_v40  ;;  %v8786_v19 = vld [vmem:[#allocation20_spill] sm:$0xff] }
 0x315   :  { %v2635_v21 = vadd.f32 %v2634_v60, %v2633_v7  ;;  %v3407_v32 = vrot.slane %v3367_v53, 6  ;;  %vm2875_vm4 = vcmp.eq.f32.partialorder %v2874_v28, 8.507059e+37  ;;  %v2703_v50 = vadd.f32 %v2702_v24, %v2701_v49 }
 0x316   :  { %v2660_v39 = vrot.slane %v2659_v33, 2  ;;  %v7768_v43 = vmul.f32 %v7474_v13, %v7179_v52  ;;  %v7772_v45 = vmul.f32 %v7474_v13, %v7474_v13  ;;  %v2878_v61 = vsel %vm2875_vm4, %v2877_v59, %v2873_v38 }
 0x317   :  { %v3024_v16 = vand.u32 2147483647, %v7642_v27  ;;  %v3019_v12 = vadd.f32 %v7681_v57, %v3018_v14  ;;  %vm3021_vm8 = vweird.f32 %v7681_v57  ;;  %v3026_v40 = vand.u32 2147483648, %v7642_v27 }
 0x318   :  { %v2730_v24 = vrot.slane %v2729_v5, 2  ;;  %v3409_v49 = vrot.slane %v3368_v6, 5  ;;  %v7781_v52 = vmul.f32 %v7422_v31, %v8786_v19  ;;  %v7783_v60 = vmul.f32 %v2878_v61, %v2635_v21 }
 0x319   :  { %v3369_v13 = vmul.f32 %v7495_v56, %v7495_v56  ;;  %vm3020_vm9 = vweird.f32 %v7642_v27  ;;  %v2704_v59 = vrot.slane %v2703_v50, 1  ;;  %v2661_v53 = vadd.f32 %v2660_v39, %v2659_v33 }
 0x31a   :  { %v7790_v28 = vmul.f32 %v7422_v31, %v7422_v31  ;;  %v7794_v34 = vmul.f32 %v7451_v37, %v7451_v37  ;;  %vm7800_vm2 = vmor %vm3020_vm9, %vm3021_vm8  ;;  %vm7807_vm13 = vcmp.eq.f32.partialorder %v3024_v16, 8.507059e+37  ;;  %v3027_v37 = vor.u32 1.1754944e-38, %v3026_v40  ;;  %v8791_v40 = vld [vmem:[#allocation74_spill] sm:$0xff] }
 0x31b   :  { %v3023_v39 = vsel %vm7800_vm2, %v7681_v57, %v3019_v12  ;;  %v2731_v27 = vadd.f32 %v2730_v24, %v2729_v5  ;;  %v7812_v33 = vrot.slane %v6635_v10, 7  ;;  %v3370_v6 = vmul.f32 %v7783_v60, %v7783_v60  ;;  %v8792_v10 = vld [vmem:[#allocation48_spill] sm:$0xff] }
 0x31c   :  { %v3371_v61 = vmul.f32 %v7665_v51, %v7665_v51  ;;  %v3406_v19 = vsel %vm3139_vm14, %v3405_v20, %v3365_v46  ;;  %v2705_v7 = vadd.f32 %v2704_v59, %v2703_v50  ;;  %v2662_v14 = vrot.slane %v2661_v53, 1 }
 0x31d   :  { %v2404_v58 = vpop.permute.xlu2 %2403  ;;  %v3408_v12 = vsel %vm3229_vm5, %v3407_v32, %v3406_v19  ;;  %v3411_v26 = vrot.slane %v3369_v13, 4  ;;  %v2569_v5 = vmul.f32 %v7712_v8, %v8791_v40  ;;  %4029 = vrcp.f32 %v7812_v33 }
 0x31e   :  { %v3028_v21 = vsel %vm7807_vm13, %v3027_v37, %v3023_v39  ;;  %v2732_v46 = vrot.slane %v2731_v27, 1  ;;  %v3410_v20 = vsel %vm3232_vm10, %v3409_v49, %v3408_v12  ;;  %v3413_v50 = vrot.slane %v3370_v6, 3 }
 0x31f   :  { %v3412_v13 = vsel %vm3235_vm7, %v3411_v26, %v3410_v20  ;;  %v3415_v19 = vrot.slane %v3371_v61, 2  ;;  %v7832_v8 = vmul.f32 %v7495_v56, %v8756_v2  ;;  %v7838_v31 = vadd.f32 %v2662_v14, %v2661_v53  ;;  %v8793_v26 = vld [vmem:[#allocation46_spill] sm:$0xff]  ;;  %v8794_v56 = vld [vmem:[#allocation45_spill] sm:$0xff]  ;;  %v8795_v2 = vld [vmem:[#allocation19_spill] sm:$0xff] }
 0x320   :  { %v3414_v39 = vsel %vm3238_vm12, %v3413_v50, %v3412_v13  ;;  %vm2900_vm11 = vweird.f32 %v7812_v33  ;;  %v8796_v53 = vsub.f32 1.0, %v7685_v22  ;;  %vm3065_vm4 = vweird.f32 %v7614_v54 }
 0x321   :  { %v7841_v6 = vsel %vm3241_vm15, %v3415_v19, %v3414_v39  ;;  %vm3066_vm8 = vweird.f32 %v7648_v29  ;;  %v3071_v22 = vand.u32 2147483648, %v7614_v54  ;;  %v3076_v50 = vmul.f32 %v7738_v44, %v7676_v25 }
 0x322   :  { %v3063_v14 = vmul.f32 %v7648_v29, %v8796_v53  ;;  %vm7867_vm2 = vmor %vm3065_vm4, %vm3066_vm8  ;;  %vm3080_vm4 = vweird.f32 %v7676_v25  ;;  %vm3081_vm8 = vweird.f32 %v7738_v44  ;;  %v3381_v40 = vmul.f32 %v7656_v62, %v7656_v62 }
 0x323   :  { %v2391_v57 = vpop.permute.xlu1 %2390  ;;  %v4030_v61 = vpop.eup %4029 }
 0x324   :  { %v2568_v24 = vmul.f32 %v2391_v57, %v8792_v10  ;;  %v2904_v57 = vand.u32 2147483647, %v7812_v33  ;;  %vm2901_vm9 = vweird.f32 %v4030_v61 }
 0x326   :  { %v2534_v16 = vpop.permute.xlu2 %2533  ;;  %v2643_v59 = vadd.f32 %v2569_v5, %v2568_v24  ;;  %vm7856_vm3 = vcmp.eq.f32.partialorder %v2904_v57, 8.507059e+37  ;;  %v3064_v24 = vadd.f32 %v7648_v29, %v3063_v14  ;;  %v3072_v57 = vor.u32 1.1754944e-38, %v3071_v22 }
 0x327   :  { %v2590_v38 = vmul.f32 %v2534_v16, %v7426_v9  ;;  %v7834_v9 = vmul.f32 %v3028_v21, %v2705_v7  ;;  %v2588_v7 = vmul.f32 %v8795_v2, %v8794_v56  ;;  %v2906_v21 = vand.u32 2147483648, %v7812_v33 }
 0x328   :  { %v2644_v49 = vrot.slane %v2643_v59, 4  ;;  %v3086_v2 = vand.u32 2147483648, %v7676_v25 }
 0x329   :  { %v2720_v32 = vadd.f32 %v7704_v11, %v2590_v38  ;;  %v7843_v11 = vadd.f32 %v2732_v46, %v2731_v27  ;;  %v7846_v38 = vmul.f32 %v2404_v58, %v8793_v26  ;;  %v2896_v27 = vmul.f32 %v4030_v61, %v7812_v33 }
 0x32a   :  { %v2645_v16 = vadd.f32 %v2644_v49, %v2643_v59  ;;  %v3069_v58 = vand.u32 2147483647, %v7614_v54  ;;  %v2907_v20 = vor.u32 1.1754944e-38, %v2906_v21  ;;  %v3068_v54 = vsel %vm7867_vm2, %v7648_v29, %v3064_v24  ;;  %vm2902_vm2 = vmor %vm2900_vm11, %vm2901_vm9  ;;  %v8803_v24 = vld [vmem:[#allocation71_spill] sm:$0xff] }
 0x32b   :  { %v2721_v37 = vrot.slane %v2720_v32, 4  ;;  %v2897_v46 = vsub.f32 1.0, %v2896_v27  ;;  %v3077_v49 = vsub.f32 1.0, %v3076_v50  ;;  %v3087_v27 = vor.u32 1.1754944e-38, %v3086_v2  ;;  %vm3082_vm11 = vmor %vm3080_vm4, %vm3081_vm8 }
 0x32c   :  { %v2646_v5 = vrot.slane %v2645_v16, 2  ;;  %vm7871_vm13 = vcmp.eq.f32.partialorder %v3069_v58, 8.507059e+37  ;;  %v3380_v33 = vmul.f32 %v7834_v9, %v7834_v9  ;;  %vm2915_vm4 = vweird.f32 %v7611_v4 }
 0x32d   :  { %v2722_v12 = vadd.f32 %v2721_v37, %v2720_v32  ;;  %v2898_v39 = vmul.f32 %v4030_v61, %v2897_v46  ;;  %v3084_v37 = vand.u32 2147483647, %v7676_v25  ;;  %v3073_v29 = vsel %vm7871_vm13, %v3072_v57, %v3068_v54 }
 0x32e   :  { %v2647_v59 = vadd.f32 %v2646_v5, %v2645_v16  ;;  %v3078_v16 = vmul.f32 %v7738_v44, %v3077_v49  ;;  %vm2916_vm8 = vweird.f32 %v7645_v18 }
 0x32f   :  { %v2723_v10 = vrot.slane %v2722_v12, 2  ;;  %v2899_v21 = vadd.f32 %v4030_v61, %v2898_v39  ;;  %vm3085_vm0 = vcmp.eq.f32.partialorder %v3084_v37, 8.507059e+37 }
 0x330   :  { %v2648_v26 = vrot.slane %v2647_v59, 1 }
 0x331   :  { %v2724_v32 = vadd.f32 %v2723_v10, %v2722_v12  ;;  %v7884_v12 = vrot.slane %v6474_v41, 7  ;;  %v2903_v5 = vsel %vm2902_vm2, %v4030_v61, %v2899_v21  ;;  %v3079_v10 = vadd.f32 %v7738_v44, %v3078_v16  ;;  %vm7972_vm2 = vmor %vm2915_vm4, %vm2916_vm8 }
 0x332   :  { %v2649_v53 = vadd.f32 %v2648_v26, %v2647_v59  ;;  %v2908_v22 = vsel %vm7856_vm3, %v2907_v20, %v2903_v5  ;;  %v3427_v26 = vrot.slane %v7794_v34, 4  ;;  %v8806_v16 = vrot.slane %v7772_v45, 5  ;;  %v8809_v5 = vld [vmem:[#allocation52_spill] sm:$0xff] }
 0x333   :  { %v2725_v56 = vrot.slane %v2724_v32, 1  ;;  %4031 = vrcp.f32 %v7884_v12  ;;  %v3083_v50 = vsel %vm3082_vm11, %v7738_v44, %v3079_v10  ;;  %v3056_v59 = vand.u32 2147483648, %v7884_v12 }
 0x334   :  { %v7904_v61 = vmul.f32 %v2908_v22, %v2649_v53  ;;  %v3054_v25 = vand.u32 2147483647, %v7884_v12  ;;  %v8804_v44 = vrot.slane %v7693_v3, 7  ;;  %v3201_v10 = vmul.f32 %v7834_v9, %v8809_v5 }
 0x335   :  { %v2726_v14 = vadd.f32 %v2725_v56, %v2724_v32  ;;  %v2527_v58 = vpop.permute.xlu1 %2526  ;;  %v3088_v32 = vsel %vm3085_vm0, %v3087_v27, %v3083_v50  ;;  %v3057_v39 = vor.u32 1.1754944e-38, %v3056_v59  ;;  %vm3050_vm0 = vweird.f32 %v7884_v12 }
 0x336   :  { %v2589_v41 = vmul.f32 %v2527_v58, %v8803_v24  ;;  %v3372_v19 = vmul.f32 %v7904_v61, %v7904_v61  ;;  %v7916_v57 = vmul.f32 %v3088_v32, %v7843_v11  ;;  %v3422_v54 = vsel %vm3139_vm14, %v8804_v44, %v7790_v28 }
 0x337   :  { %v7896_v46 = vmul.f32 %v3073_v29, %v2726_v14  ;;  %v3429_v56 = vrot.slane %v3380_v33, 3  ;;  %v3431_v28 = vrot.slane %v3381_v40, 2  ;;  %vm7933_vm9 = vcmp.eq.f32.partialorder %v3054_v25, 8.507059e+37  ;;  %v8811_v40 = vld [vmem:[#allocation78_spill] sm:$0xff]  ;;  %v8813_v25 = vld [vmem:[#allocation57_spill] sm:$0xff] }
 0x338   :  { %v2713_v20 = vadd.f32 %v2589_v41, %v2588_v7  ;;  %v8805_v7 = vrot.slane %v7710_v15, 6  ;;  %v3417_v21 = vrot.slane %v3372_v19, 1  ;;  %v3384_v11 = vmul.f32 %v7916_v57, %v7916_v57  ;;  %v8810_v41 = vld [vmem:[#allocation21_spill] sm:$0xff] }
 0x339   :  { %v3383_v13 = vmul.f32 %v7896_v46, %v7896_v46  ;;  %v4032_v2 = vpop.eup %4031  ;;  %v3254_v19 = vrot.slane %v8813_v25, 4 }
 0x33a   :  { %v2714_v49 = vrot.slane %v2713_v20, 4  ;;  %v3424_v37 = vsel %vm3229_vm5, %v8805_v7, %v3422_v54  ;;  %v3046_v14 = vmul.f32 %v4032_v2, %v7884_v12  ;;  %vm3051_vm3 = vweird.f32 %v4032_v2 }
 0x33b   :  { %v3426_v3 = vsel %vm3232_vm10, %v8806_v16, %v3424_v37  ;;  %v3418_v29 = vsel %vm3244_vm1, %v3417_v21, %v7841_v6  ;;  %v3435_v58 = vrot.slane %v3384_v11, 7  ;;  %v8812_v6 = vrot.slane %v7689_v1, 7  ;;  %vm3052_vm13 = vmor %vm3050_vm0, %vm3051_vm3 }
 0x33c   :  { %v2715_v53 = vadd.f32 %v2714_v49, %v2713_v20  ;;  %v3428_v34 = vsel %vm3235_vm7, %v3427_v26, %v3426_v3  ;;  %3441 = vadd.xlane.f32.xlu2 %v3418_v29  ;;  %v3047_v33 = vsub.f32 1.0, %v3046_v14  ;;  %v3202_v20 = vmul.f32 %v7656_v62, %v8811_v40 }
 0x33d   :  { %v2410_v27 = vpop.permute.xlu1 %2409  ;;  %v3430_v45 = vsel %vm3238_vm12, %v3429_v56, %v3428_v34  ;;  %v3436_v59 = vsel %vm3139_vm14, %v3435_v58, %v3383_v13  ;;  %v3249_v32 = vsel %vm3139_vm14, %v8812_v6, %v7781_v52  ;;  %v8814_v7 = vrot.slane %v7247_v35, 6 }
 0x33e   :  { %v2716_v24 = vrot.slane %v2715_v53, 2  ;;  %v2571_v22 = vmul.f32 %v2410_v27, %v8810_v41  ;;  %v3432_v50 = vsel %vm3241_vm15, %v3431_v28, %v3430_v45  ;;  %v3448_v54 = vsel %vm3270_vm6, %v3436_v59, 0.0 }
 0x33f   :  { %v3048_v49 = vmul.f32 %v4032_v2, %v3047_v33  ;;  %3449 = vadd.xlane.f32.xlu0 %v3448_v54  ;;  %v3251_v13 = vsel %vm3229_vm5, %v8814_v7, %v3249_v32  ;;  %v3256_v37 = vrot.slane %v3201_v10, 3  ;;  %v3258_v62 = vrot.slane %v3202_v20, 2  ;;  %v8819_v10 = vld [vmem:[#allocation61_spill] sm:$0xff]  ;;  %v8822_v33 = vld [vmem:[#allocation14_spill] sm:$0xff] }
 0x340   :  { %v2717_v9 = vadd.f32 %v2716_v24, %v2715_v53  ;;  %v2650_v44 = vadd.f32 %v2571_v22, %v7846_v38  ;;  %v8815_v26 = vsub.f32 1.0, %v7673_v0  ;;  %v8816_v11 = vrot.slane %v7768_v43, 5 }
 0x341   :  { %v3049_v21 = vadd.f32 %v4032_v2, %v3048_v49  ;;  %v2919_v29 = vand.u32 2147483647, %v7611_v4  ;;  %v2926_v45 = vmul.f32 %v7726_v36, %v7669_v63  ;;  %vm2930_vm0 = vweird.f32 %v7669_v63 }
 0x342   :  { %v2913_v1 = vmul.f32 %v7645_v18, %v8815_v26  ;;  %v2718_v52 = vrot.slane %v2717_v9, 1  ;;  %v2651_v56 = vrot.slane %v2650_v44, 4  ;;  %v3253_v38 = vsel %vm3232_vm10, %v8816_v11, %v3251_v13 }
 0x343   :  { %v3255_v35 = vsel %vm3235_vm7, %v3254_v19, %v3253_v38  ;;  %v3053_v28 = vsel %vm3052_vm13, %v4032_v2, %v3049_v21  ;;  %v2921_v2 = vand.u32 2147483648, %v7611_v4  ;;  %vm2920_vm11 = vcmp.eq.f32.partialorder %v2919_v29, 8.507059e+37 }
 0x344   :  { %v2914_v16 = vadd.f32 %v7645_v18, %v2913_v1  ;;  %v2719_v0 = vadd.f32 %v2718_v52, %v2717_v9  ;;  %v2652_v3 = vadd.f32 %v2651_v56, %v2650_v44  ;;  %v3257_v53 = vsel %vm3238_vm12, %v3256_v37, %v3255_v35  ;;  %v8828_v56 = vld [vmem:[#allocation23_spill] sm:$0xff] }
 0x345   :  { %v3058_v12 = vsel %vm7933_vm9, %v3057_v39, %v3053_v28  ;;  %v3259_v14 = vsel %vm3241_vm15, %v3258_v62, %v3257_v53  ;;  %vm2931_vm3 = vweird.f32 %v7726_v36  ;;  %v2934_v39 = vand.u32 2147483647, %v7669_v63 }
 0x346   :  { %v2918_v34 = vsel %vm7972_vm2, %v7645_v18, %v2914_v16  ;;  %v2653_v27 = vrot.slane %v2652_v3, 2  ;;  %v3059_v58 = vmul.f32 %v3058_v12, %v2719_v0  ;;  %v2922_v24 = vor.u32 1.1754944e-38, %v2921_v2  ;;  %vm8008_vm13 = vmor %vm2930_vm0, %vm2931_vm3 }
 0x347   :  { %v2927_v41 = vsub.f32 1.0, %v2926_v45  ;;  %vm7990_vm9 = vcmp.eq.f32.partialorder %v2934_v39, 8.507059e+37  ;;  %v2936_v4 = vand.u32 2147483648, %v7669_v63  ;;  %v3191_v59 = vmul.f32 %v7783_v60, %v8822_v33 }
 0x348   :  { %v2654_v15 = vadd.f32 %v2653_v27, %v2652_v3  ;;  %v3382_v5 = vmul.f32 %v3059_v58, %v3059_v58  ;;  %v3203_v18 = vmul.f32 %v3059_v58, %v8819_v10  ;;  %v2923_v32 = vsel %vm2920_vm11, %v2922_v24, %v2918_v34  ;;  %v8829_v3 = vld [vmem:[#allocation25_spill] sm:$0xff]  ;;  %v3361_v27 = vpop.xlane.xlu0 %3360 }
 0x349   :  { %v2928_v25 = vmul.f32 %v7726_v36, %v2927_v41  ;;  %v2937_v19 = vor.u32 1.1754944e-38, %v2936_v4  ;;  %v3192_v9 = vmul.f32 %v7665_v51, %v8759_v30  ;;  %v3193_v44 = vmul.f32 %v7904_v61, %v7529_v17 }
 0x34a   :  { %v2655_v40 = vrot.slane %v2654_v15, 1  ;;  %v3433_v20 = vrot.slane %v3382_v5, 1  ;;  %v3260_v6 = vrot.slane %v3203_v18, 1  ;;  %v8825_v13 = vrot.slane %v7716_v48, 7 }
 0x34b   :  { %v2929_v17 = vadd.f32 %v7726_v36, %v2928_v25  ;;  %v8826_v51 = vrot.slane %v7736_v23, 6  ;;  %v3237_v63 = vrot.slane %v3191_v59, 3  ;;  %v8827_v62 = vrot.slane %v7762_v42, 5 }
 0x34c   :  { %v2656_v54 = vadd.f32 %v2655_v40, %v2654_v15  ;;  %v3434_v49 = vsel %vm3244_vm1, %v3433_v20, %v3432_v50  ;;  %v3261_v7 = vsel %vm3244_vm1, %v3260_v6, %v3259_v14  ;;  %v3227_v30 = vsel %vm3139_vm14, %v8825_v13, %v7730_v55 }
 0x34d   :  { %3446 = vadd.xlane.f32.xlu2 %v3434_v49  ;;  %3274 = vadd.xlane.f32.xlu0 %v3261_v7  ;;  %v3230_v61 = vsel %vm3229_vm5, %v8826_v51, %v3227_v30  ;;  %v3234_v50 = vrot.slane %v7832_v8, 4  ;;  %v3240_v1 = vrot.slane %v3192_v9, 2  ;;  %v3243_v48 = vrot.slane %v3193_v44, 1 }
 0x34e   :  { %v2924_v37 = vmul.f32 %v2923_v32, %v2656_v54  ;;  %v3233_v26 = vsel %vm3232_vm10, %v8827_v62, %v3230_v61  ;;  %v2933_v55 = vsel %vm8008_vm13, %v7726_v36, %v2929_v17  ;;  %v3204_v23 = vmul.f32 %v7896_v46, %v7574_v47  ;;  %v8830_v47 = vld [vmem:[#allocation47_spill] sm:$0xff] }
 0x34f   :  { %v3236_v52 = vsel %vm3235_vm7, %v3234_v50, %v3233_v26  ;;  %v3205_v8 = vmul.f32 %v7916_v57, %v8828_v56  ;;  %v2938_v21 = vsel %vm7990_vm9, %v2937_v19, %v2933_v55  ;;  %vm3516_vm3 = vcmask 130112  }
 0x350   :  { %v3239_v42 = vsel %vm3238_vm12, %v3237_v63, %v3236_v52  ;;  %v2939_v11 = vmul.f32 %v2938_v21, %v7838_v31  ;;  %v3373_v16 = vmul.f32 %v2924_v37, %v2924_v37  ;;  %v3194_v28 = vmul.f32 %v2924_v37, %v8829_v3 }
 0x351   :  { %v3242_v38 = vsel %vm3241_vm15, %v3240_v1, %v3239_v42  ;;  %v3262_v35 = vrot.slane %v3205_v8, 7  ;;  %vm3523_vm9 = vcmask 74752   ;;  %vm8834_vm13 = vcmask 123904  }
 0x352   :  { %v3245_v36 = vsel %vm3244_vm1, %v3243_v48, %v3242_v38  ;;  %v3374_v0 = vmul.f32 %v2939_v11, %v2939_v11  ;;  %v3195_v46 = vmul.f32 %v2939_v11, %v8830_v47  ;;  %v8831_v38 = vlaneseq }
 0x353   :  { %v3263_v57 = vsel %vm3139_vm14, %v3262_v35, %v3204_v23 }
 0x354   :  { %v3419_v53 = vrot.slane %v3374_v0, 7  ;;  %v3246_v43 = vrot.slane %v3195_v46, 7  ;;  %v3276_v29 = vsel %vm3270_vm6, %v3263_v57, 0.0  ;;  %v8047_v35 = vand.u32 127, %v8831_v38 }
 0x356   :  { %v3420_v12 = vsel %vm3139_vm14, %v3419_v53, %v3373_v16  ;;  %v3247_v14 = vsel %vm3139_vm14, %v3246_v43, %v3194_v28  ;;  %v8050_v3 = vadd.s32 4294967288, %v8047_v35 }
 0x357   :  { %v3443_v31 = vsel %vm3270_vm6, %v3420_v12, 0.0  ;;  %v3271_v34 = vsel %vm3270_vm6, %v3247_v14, 0.0 }
 0x358   :  { %3444 = vadd.xlane.f32.xlu1 %v3443_v31  ;;  %3272 = vadd.xlane.f32.xlu2 %v3271_v34 }
 0x360   :  { %3268 = vadd.xlane.f32.xlu1 %v3245_v36 }
 0x368   :  { %3277 = vadd.xlane.f32.xlu1 %v3276_v29  ;;  %v3356_v58 = vpop.xlane.xlu1 %3355 }
 0x370   :  { %v3364_v39 = vpop.xlane.xlu1 %3363 }
 0x376   :  { %v3359_v2 = vpop.xlane.xlu2 %3358 }
 0x3af   :  { %v3442_v15 = vpop.xlane.xlu2 %3441 }
 0x3b0   :  { %v3451_v10 = vmul.f32 %v3442_v15, %v3356_v58 }
 0x3b2   :  { %v3450_v45 = vpop.xlane.xlu0 %3449  ;;  %v3455_v24 = vmax.f32 %v3451_v10, 1e-16 }
 0x3b3   :  { %v3454_v5 = vmul.f32 %v3450_v45, %v3364_v39  ;;  %v4170_v45 = vmov 0  }
 0x3b4   :  { %vm3465_vm4 = vweird.f32 %v3455_v24  ;;  %3779 = vset.pattern.permute.xlu2 %v4170_v45  ;;  %3777 = vset.pattern.permute.xlu0 %v4170_v45 }
 0x3b5   :  { %v3458_v18 = vmax.f32 %v3454_v5, 1e-16  ;;  %3778 = vset.pattern.permute.xlu1 %v4170_v45 }
 0x3b7   :  { %4033 = vrsqrt.f32 %v3458_v18  ;;  %vm3495_vm1 = vweird.f32 %v3458_v18 }
 0x3b8   :  { %4035 = vrsqrt.f32 %v3455_v24 }
 0x3bd   :  { %v4034_v33 = vpop.eup %4033 }
 0x3be   :  { %v4036_v59 = vpop.eup %4035  ;;  %v3490_v40 = vmul.f32 %v4034_v33, %v3458_v18  ;;  %vm3496_vm7 = vweird.f32 %v4034_v33 }
 0x3bf   :  { %v3460_v20 = vmul.f32 %v4036_v59, %v3455_v24  ;;  %vm3466_vm15 = vweird.f32 %v4036_v59  ;;  %vm3497_vm6 = vmor %vm3495_vm1, %vm3496_vm7 }
 0x3c0   :  { %v3447_v41 = vpop.xlane.xlu2 %3446  ;;  %v3491_v32 = vmul.f32 %v4034_v33, %v3490_v40  ;;  %v3275_v55 = vpop.xlane.xlu0 %3274  ;;  %vm3467_vm8 = vmor %vm3465_vm4, %vm3466_vm15 }
 0x3c1   :  { %v3453_v22 = vmul.f32 %v3447_v41, %v3361_v27  ;;  %v3461_v44 = vmul.f32 %v4036_v59, %v3460_v20 }
 0x3c2   :  { %v3492_v7 = vmul.f32 0.5, %v3491_v32 }
 0x3c3   :  { %v3457_v4 = vmax.f32 %v3453_v22, 1e-16  ;;  %v3462_v13 = vmul.f32 0.5, %v3461_v44 }
 0x3c4   :  { %v3493_v51 = vsub.f32 1.5, %v3492_v7 }
 0x3c5   :  { %4037 = vrsqrt.f32 %v3457_v4  ;;  %v3463_v50 = vsub.f32 1.5, %v3462_v13  ;;  %vm3485_vm10 = vweird.f32 %v3457_v4 }
 0x3c6   :  { %v3494_v62 = vmul.f32 %v4034_v33, %v3493_v51 }
 0x3c7   :  { %v3464_v48 = vmul.f32 %v4036_v59, %v3463_v50 }
 0x3c8   :  { %v3498_v23 = vsel %vm3497_vm6, %v4034_v33, %v3494_v62 }
 0x3c9   :  { %v3468_v11 = vsel %vm3467_vm8, %v4036_v59, %v3464_v48 }
 0x3cb   :  { %v4038_v6 = vpop.eup %4037  ;;  %v3445_v19 = vpop.xlane.xlu1 %3444 }
 0x3cc   :  { %v3480_v25 = vmul.f32 %v4038_v6, %v3457_v4  ;;  %v3452_v9 = vmul.f32 %v3445_v19, %v3359_v2  ;;  %vm3486_vm5 = vweird.f32 %v4038_v6  ;;  %v3273_v47 = vpop.xlane.xlu2 %3272  ;;  %v8833_v19 = vld [vmem:[#allocation40_spill] sm:$0xff] }
 0x3cd   :  { %vm3487_vm12 = vmor %vm3485_vm10, %vm3486_vm5 }
 0x3ce   :  { %v3481_v54 = vmul.f32 %v4038_v6, %v3480_v25  ;;  %v3456_v49 = vmax.f32 %v3452_v9, 1e-16  ;;  %v8832_v25 = vld [vmem:[#allocation54_spill] sm:$0xff]  ;;  %v3583_v9 = vld [vmem:[%s8125_s4] sm:$0x3] }
 0x3cf   :  { %v3585_v44 = vperm.slane %v3583_v9, 0 }
 0x3d0   :  { %v3482_v60 = vmul.f32 0.5, %v3481_v54  ;;  %4039 = vrsqrt.f32 %v3456_v49  ;;  %vm3475_vm11 = vweird.f32 %v3456_v49  ;;  %v3598_v54 = vperm.slane %v3583_v9, 1 }
 0x3d2   :  { %v3483_v30 = vsub.f32 1.5, %v3482_v60 }
 0x3d3   :  { %v3269_v17 = vpop.xlane.xlu1 %3268 }
 0x3d4   :  { %v3484_v61 = vmul.f32 %v4038_v6, %v3483_v30  ;;  %v3499_v16 = vmul.f32 %v3468_v11, %v3269_v17 }
 0x3d6   :  { %v4040_v63 = vpop.eup %4039  ;;  %v3488_v26 = vsel %vm3487_vm12, %v4038_v6, %v3484_v61  ;;  %v3503_v53 = vmul.f32 10.0, %v3499_v16 }
 0x3d7   :  { %v3470_v37 = vmul.f32 %v4040_v63, %v3456_v49  ;;  %v3501_v8 = vmul.f32 %v3488_v26, %v3275_v55  ;;  %vm3476_vm2 = vweird.f32 %v4040_v63 }
 0x3d8   :  { %vm3477_vm0 = vmor %vm3475_vm11, %vm3476_vm2  ;;  %v3513_v34 = vperm.slane %v3503_v53, %v8047_v35 }
 0x3d9   :  { %v3471_v1 = vmul.f32 %v4040_v63, %v3470_v37  ;;  %v3505_v0 = vmul.f32 10.0, %v3501_v8 }
 0x3db   :  { %v3472_v52 = vmul.f32 0.5, %v3471_v1  ;;  %v3278_v56 = vpop.xlane.xlu1 %3277  ;;  %v3518_v43 = vperm.slane %v3505_v0, %v8047_v35 }
 0x3dc   :  { %v3502_v21 = vmul.f32 %v3498_v23, %v3278_v56 }
 0x3dd   :  { %v3473_v42 = vsub.f32 1.5, %v3472_v52 }
 0x3de   :  { %v3506_v28 = vmul.f32 10.0, %v3502_v21 }
 0x3df   :  { %v3474_v36 = vmul.f32 %v4040_v63, %v3473_v42 }
 0x3e0   :  { %v3519_v14 = vperm.slane %v3506_v28, %v8050_v3 }
 0x3e1   :  { %v3478_v46 = vsel %vm3477_vm0, %v4040_v63, %v3474_v36 }
 0x3e2   :  { %v3500_v57 = vmul.f32 %v3478_v46, %v3273_v47  ;;  %v3520_v27 = vsel %vm3516_vm3, %v3519_v14, %v3518_v43  ;;  %v3091_v46 = vld [vmem:[%s8124_s3 + $0x10] sm:$0xff] }
 0x3e3   :  { %v3138_v43 = vrot.slane %v3091_v46, 7 }
 0x3e4   :  { %v3504_v12 = vmul.f32 10.0, %v3500_v57  ;;  %v3105_v57 = vperm.slane %v3091_v46, 0 }
 0x3e6   :  { %v3515_v31 = vperm.slane %v3504_v12, %v8050_v3 }
 0x3e8   :  { %v3517_v29 = vsel %vm3516_vm3, %v3515_v31, %v3513_v34 }
 0x3e9   :  { %v3521_v58 = vsel %vm3139_vm14, %v3520_v27, %v3517_v29 }
 0x3ea   :  { %v3525_v2 = vsel %vm3523_vm9, %v3521_v58, -inf  ;;  %3524 = vst.msk [vmem:[#allocation7] sm:$0x3] %vm3523_vm9, %v3521_v58 }
 0x3eb   :  { %3526 = vmax.xlane.f32.xlu2 %v3525_v2 }
 0x45e   :  { %v3527_v39 = vpop.xlane.xlu2 %3526 }
 0x45f   :  { %v3529_v15 = vperm.slane %v3527_v39, 0  ;;  %v3530_v5 = vperm.slane %v3527_v39, 1 }
 0x461   :  { %v3533_v10 = vsub.f32 %v3503_v53, %v3529_v15  ;;  %v3534_v18 = vsub.f32 %v3504_v12, %v3529_v15  ;;  %v3535_v24 = vsub.f32 %v3505_v0, %v3530_v5  ;;  %v3536_v33 = vsub.f32 %v3506_v28, %v3530_v5  ;;  %v3090_v53 = vld [vmem:[%s8124_s3] sm:$0xff]  ;;  %s4171_s3 = smov [#allocation7]  }
 0x462   :  { %v3092_v12 = vperm.slane %v3090_v53, 0  ;;  %v3140_v14 = vsel %vm3139_vm14, %v3138_v43, %v3090_v53  ;;  %s3681_s25 = sshll.u32 %s4171_s3, 4  ;;  %s3682_s25 = int_to_ptr.vmem [resolvable:$true] %s3681_s25 }
 0x463   :  { %v3537_v41 = vmul.f32 1.442695, %v3533_v10  ;;  %v3539_v22 = vmul.f32 1.442695, %v3534_v18  ;;  %v3541_v4 = vmul.f32 1.442695, %v3535_v24 }
 0x464   :  { %v3543_v59 = vmul.f32 1.442695, %v3536_v33  ;;  %v3142_v31 = vsel %vm8834_vm13, %v3140_v14, 0.0  ;;  %3686 = dma.vmem_to_hbm [thread:$0]  %s3682_s25, 32, %s3684_s28, [#allocation8]  }
 0x465   :  { %4041 = vpow2.f32 %v3537_v41 }
 0x466   :  { %4043 = vpow2.f32 %v3539_v22 }
 0x467   :  { %4045 = vpow2.f32 %v3541_v4 }
 0x468   :  { %4047 = vpow2.f32 %v3543_v59 }
 0x46b   :  { %v4042_v40 = vpop.eup %4041 }
 0x46c   :  { %v4044_v20 = vpop.eup %4043  ;;  %3550 = vperm.xlu0 %3777, %v4042_v40  }
 0x46d   :  { %v4046_v6 = vpop.eup %4045  ;;  %3553 = vperm.xlu1 %3778, %v4044_v20  }
 0x46e   :  { %3556 = vperm.xlu2 %3779, %v4046_v6   ;;  %v4048_v32 = vpop.eup %4047 }
 0x474   :  { %3781 = vset.pattern.permute.xlu0 %v8832_v25 }
 0x475   :  { %3559 = vperm.xlu1 %3778, %v4048_v32  }
 0x47c   :  { %3596 = vperm.xlu0 %3781, %v3585_v44  }
 0x47d   :  { %3780 = vset.pattern.permute.xlu1 %v8833_v19 }
 0x484   :  { %3783 = vset.pattern.permute.xlu0 %v4170_v45 }
 0x485   :  { %3590 = vperm.xlu1 %3780, %v3585_v44  }
 0x48d   :  { %3603 = vperm.xlu1 %3780, %v3598_v54  }
 0x495   :  { %3782 = vset.pattern.permute.xlu1 %v8832_v25 }
 0x49d   :  { %3609 = vperm.xlu1 %3782, %v3598_v54  }
 0x4a5   :  { %3784 = vset.pattern.permute.xlu1 %v4170_v45 }
 0x4c8   :  { %v3557_v60 = vpop.permute.xlu2 %3556 }
 0x4c9   :  { %v3564_v51 = vperm.slane %v3557_v60, %v8047_v35 }
 0x4de   :  { %v3551_v7 = vpop.permute.xlu0 %3550 }
 0x4df   :  { %v3554_v49 = vpop.permute.xlu1 %3553  ;;  %v3561_v30 = vperm.slane %v3551_v7, %v8047_v35  ;;  %v8835_v7 = vld [vmem:[#allocation56_spill] sm:$0xff] }
 0x4e0   :  { %v3562_v13 = vperm.slane %v3554_v49, %v8050_v3 }
 0x4e2   :  { %v3563_v50 = vsel %vm3516_vm3, %v3562_v13, %v3561_v30 }
 0x4e7   :  { %v3560_v17 = vpop.permute.xlu1 %3559 }
 0x4e8   :  { %v3565_v61 = vperm.slane %v3560_v17, %v8050_v3  ;;  %v8836_v17 = vld [vmem:[#allocation72_spill] sm:$0xff] }
 0x4ea   :  { %v3566_v63 = vsel %vm3516_vm3, %v3565_v61, %v3564_v51 }
 0x4eb   :  { %v3567_v37 = vsel %vm3139_vm14, %v3566_v63, %v3563_v50  ;;  %v8837_v50 = vld [vmem:[#allocation24_spill] sm:$0xff] }
 0x4ec   :  { %v3569_v62 = vsel %vm3523_vm9, %v3567_v37, 0.0  ;;  %v8838_v37 = vld [vmem:[#allocation39_spill] sm:$0xff] }
 0x4ed   :  { %3570 = vadd.xlane.f32.xlu2 %v3569_v62 }
 0x4ee   :  { %v3597_v21 = vpop.permute.xlu0 %3596 }
 0x4f7   :  { %v3591_v26 = vpop.permute.xlu1 %3590 }
 0x4ff   :  { %v3604_v48 = vpop.permute.xlu1 %3603 }
 0x50f   :  { %v3610_v8 = vpop.permute.xlu1 %3609 }
 0x560   :  { %v3571_v1 = vpop.xlane.xlu2 %3570 }
 0x561   :  { %4049 = vlog2.f32 %v3571_v1 }
 0x567   :  { %v4050_v55 = vpop.eup %4049 }
 0x568   :  { %v3573_v52 = vmul.f32 0.6931472, %v4050_v55 }
 0x56a   :  { %v3575_v23 = vperm.slane %v3573_v52, 0  ;;  %v3576_v56 = vperm.slane %v3573_v52, 1 }
 0x56c   :  { %v3579_v42 = vsub.f32 %v3533_v10, %v3575_v23  ;;  %v3582_v11 = vsub.f32 %v3536_v33, %v3576_v56  ;;  %v3580_v38 = vsub.f32 %v3534_v18, %v3575_v23  ;;  %v3581_v28 = vsub.f32 %v3535_v24, %v3576_v56 }
 0x56e   :  { %v3618_v16 = vmul.f32 %v3610_v8, %v3582_v11  ;;  %v3616_v36 = vmul.f32 %v3597_v21, %v3580_v38  ;;  %v3615_v0 = vmul.f32 %v3591_v26, %v3579_v42  ;;  %v3617_v47 = vmul.f32 %v3604_v48, %v3581_v28 }
 0x570   :  { %3633 = vperm.xlu2 %3779, %v3618_v16   ;;  %3624 = vperm.xlu0 %3783, %v3615_v0  }
 0x571   :  { %3627 = vperm.xlu1 %3784, %v3616_v36  }
 0x578   :  { %3785 = vset.pattern.permute.xlu2 %v8833_v19  ;;  %3788 = vset.pattern.permute.xlu0 %v8832_v25 }
 0x579   :  { %3630 = vperm.xlu1 %3784, %v3617_v47  }
 0x580   :  { %3110 = vperm.xlu2 %3785, %v3105_v57  }
 0x588   :  { %3786 = vset.pattern.permute.xlu2 %v8832_v25 }
 0x590   :  { %3116 = vperm.xlu2 %3786, %v3105_v57  }
 0x598   :  { %3787 = vset.pattern.permute.xlu2 %v8833_v19 }
 0x5a0   :  { %3097 = vperm.xlu2 %3787, %v3092_v12  }
 0x5a3   :  { %3143 = vadd.xlane.f32.xlu1 %v3142_v31 }
 0x5ca   :  { %v3634_v27 = vpop.permute.xlu2 %3633 }
 0x5cb   :  { %v3639_v15 = vperm.slane %v3634_v27, %v8050_v3 }
 0x5da   :  { %v3111_v59 = vpop.permute.xlu2 %3110 }
 0x5db   :  { %v3120_v51 = vmul.f32 %v3111_v59, %v8836_v17 }
 0x5e2   :  { %v3625_v29 = vpop.permute.xlu0 %3624 }
 0x5e3   :  { %v3628_v34 = vpop.permute.xlu1 %3627  ;;  %v3635_v2 = vperm.slane %v3625_v29, %v8047_v35 }
 0x5e4   :  { %v3636_v58 = vperm.slane %v3628_v34, %v8050_v3 }
 0x5e6   :  { %v3637_v10 = vsel %vm3516_vm3, %v3636_v58, %v3635_v2 }
 0x5ea   :  { %v3117_v19 = vpop.permute.xlu2 %3116 }
 0x5eb   :  { %v3631_v39 = vpop.permute.xlu1 %3630  ;;  %v3121_v60 = vmul.f32 %v3117_v19, %v8835_v7 }
 0x5ec   :  { %v3638_v5 = vperm.slane %v3631_v39, %v8047_v35  ;;  %v4172_v35 = vmov 20.0  }
 0x5ed   :  { %4051 = vrcp.f32 %v4172_v35  ;;  %v3129_v26 = vadd.f32 %v3121_v60, %v3120_v51 }
 0x5ee   :  { %v3640_v18 = vsel %vm3516_vm3, %v3639_v15, %v3638_v5 }
 0x5ef   :  { %v3641_v24 = vsel %vm3139_vm14, %v3640_v18, %v3637_v10  ;;  %v3130_v23 = vrot.slane %v3129_v26, 4 }
 0x5f0   :  { %v3643_v41 = vsel %vm3523_vm9, %v3641_v24, 0.0 }
 0x5f1   :  { %3644 = vadd.xlane.f32.xlu0 %v3643_v41  ;;  %v3131_v21 = vadd.f32 %v3130_v23, %v3129_v26 }
 0x5f3   :  { %v4052_v3 = vpop.eup %4051  ;;  %v3132_v38 = vrot.slane %v3131_v21, 2 }
 0x5f4   :  { %v3654_v22 = vmul.f32 20.0, %v4052_v3  ;;  %vm3658_vm5 = vweird.f32 %v4052_v3 }
 0x5f5   :  { %v3133_v28 = vadd.f32 %v3132_v38, %v3131_v21 }
 0x5f6   :  { %v3655_v4 = vsub.f32 1.0, %v3654_v22 }
 0x5f7   :  { %v3134_v27 = vrot.slane %v3133_v28, 1 }
 0x5f8   :  { %v3656_v6 = vmul.f32 %v4052_v3, %v3655_v4 }
 0x5f9   :  { %v3135_v18 = vadd.f32 %v3134_v27, %v3133_v28 }
 0x5fa   :  { %v3657_v25 = vadd.f32 %v4052_v3, %v3656_v6  ;;  %v3098_v13 = vpop.permute.xlu2 %3097 }
 0x5fb   :  { %v3118_v63 = vmul.f32 %v3098_v13, %v8837_v50 }
 0x5fc   :  { %v3659_v54 = vsel %vm3658_vm5, %v4052_v3, %v3657_v25 }
 0x605   :  { %3103 = vperm.xlu0 %3788, %v3092_v12  }
 0x60d   :  { %3789 = vset.pattern.permute.xlu0 %v4170_v45 }
 0x616   :  { %v3144_v49 = vpop.xlane.xlu1 %3143 }
 0x617   :  { %v3145_v30 = vadd.f32 1e-06, %v3144_v49 }
 0x619   :  { %4053 = vrcp.f32 %v3145_v30  ;;  %v3147_v48 = vrot.slane %v3145_v30, 1  ;;  %vm3155_vm10 = vweird.f32 %v3145_v30  ;;  %v3159_v47 = vand.u32 2147483647, %v3145_v30 }
 0x61a   :  { %v3161_v46 = vand.u32 2147483648, %v3145_v30 }
 0x61b   :  { %4055 = vrcp.f32 %v3147_v48  ;;  %v3176_v14 = vand.u32 2147483648, %v3147_v48  ;;  %vm3170_vm15 = vweird.f32 %v3147_v48  ;;  %v3174_v34 = vand.u32 2147483647, %v3147_v48 }
 0x61c   :  { %v3162_v29 = vor.u32 1.1754944e-38, %v3161_v46  ;;  %vm3160_vm6 = vcmp.eq.f32.partialorder %v3159_v47, 8.507059e+37 }
 0x61d   :  { %v3177_v39 = vor.u32 1.1754944e-38, %v3176_v14  ;;  %vm3175_vm8 = vcmp.eq.f32.partialorder %v3174_v34, 8.507059e+37 }
 0x61f   :  { %v4054_v52 = vpop.eup %4053 }
 0x620   :  { %v3151_v8 = vmul.f32 %v4054_v52, %v3145_v30  ;;  %vm3156_vm7 = vweird.f32 %v4054_v52 }
 0x621   :  { %v4056_v16 = vpop.eup %4055  ;;  %vm8108_vm12 = vmor %vm3155_vm10, %vm3156_vm7 }
 0x622   :  { %v3152_v11 = vsub.f32 1.0, %v3151_v8  ;;  %v3166_v57 = vmul.f32 %v4056_v16, %v3147_v48  ;;  %vm3171_vm1 = vweird.f32 %v4056_v16 }
 0x623   :  { %vm3172_vm4 = vmor %vm3170_vm15, %vm3171_vm1 }
 0x624   :  { %v3153_v0 = vmul.f32 %v4054_v52, %v3152_v11  ;;  %v3167_v31 = vsub.f32 1.0, %v3166_v57 }
 0x626   :  { %v3154_v43 = vadd.f32 %v4054_v52, %v3153_v0  ;;  %v3168_v2 = vmul.f32 %v4056_v16, %v3167_v31 }
 0x628   :  { %v3158_v58 = vsel %vm8108_vm12, %v4054_v52, %v3154_v43  ;;  %v3169_v5 = vadd.f32 %v4056_v16, %v3168_v2 }
 0x629   :  { %v3163_v10 = vsel %vm3160_vm6, %v3162_v29, %v3158_v58 }
 0x62a   :  { %v3173_v24 = vsel %vm3172_vm4, %v4056_v16, %v3169_v5 }
 0x62b   :  { %v3178_v41 = vsel %vm3175_vm8, %v3177_v39, %v3173_v24 }
 0x62c   :  { %v3179_v3 = vmul.f32 %v3178_v41, %v3135_v18 }
 0x62e   :  { %v3182_v22 = vrot.slane %v3179_v3, 7 }
 0x664   :  { %v3645_v33 = vpop.xlane.xlu0 %3644 }
 0x665   :  { %v3646_v40 = vrot.slane %v3645_v33, 4 }
 0x667   :  { %v3647_v20 = vadd.f32 %v3646_v40, %v3645_v33 }
 0x669   :  { %v3648_v45 = vrot.slane %v3647_v20, 2 }
 0x66b   :  { %v3649_v32 = vadd.f32 %v3648_v45, %v3647_v20 }
 0x66d   :  { %v3650_v9 = vrot.slane %v3649_v32, 1 }
 0x66f   :  { %v3651_v44 = vadd.f32 %v3650_v9, %v3649_v32 }
 0x671   :  { %3745 = vpush %v3651_v44 }
 0x672   :  { %3747 = vpush %v3659_v54 }
 0x677   :  { %v3104_v61 = vpop.permute.xlu0 %3103 }
 0x678   :  { %v3119_v62 = vmul.f32 %v3104_v61, %v8838_v37 }
 0x67a   :  { %v3122_v1 = vadd.f32 %v3119_v62, %v3118_v63 }
 0x67c   :  { %v3123_v55 = vrot.slane %v3122_v1, 4 }
 0x67e   :  { %v3124_v56 = vadd.f32 %v3123_v55, %v3122_v1 }
 0x680   :  { %v3125_v42 = vrot.slane %v3124_v56, 2 }
 0x682   :  { %v3126_v36 = vadd.f32 %v3125_v42, %v3124_v56 }
 0x684   :  { %v3127_v53 = vrot.slane %v3126_v36, 1 }
 0x686   :  { %v3128_v15 = vadd.f32 %v3127_v53, %v3126_v36 }
 0x688   :  { %v3164_v35 = vmul.f32 %v3163_v10, %v3128_v15 }
 0x68a   :  { %v3183_v4 = vsel %vm3139_vm14, %v3182_v22, %v3164_v35 }
 0x68b   :  { %3185 = vst [vmem:[#allocation6] sm:$0x3] %v3183_v4 }
 0x68c   :  { %3675 = dma.vmem_to_hbm [thread:$0]  %s3671_s29, 32, %s3673_s8, [#allocation4]  }
 0x6a2   :  { %s3746_s9 = spop %3745 }
 0x6a3   :  { %s3748_s10 = spop %3747 }
 0x6a4   :  { %s3661_s14 = smul.f32 %s3748_s10, %s3746_s9 }
 0x6a6   :  { %s3662_s15 = ssub.f32 0.0, %s3661_s14 }
 0x6a8   :  { %3664 = sst [smem:[#allocation9]] %s3662_s15 }
 0x6a9   :  { %3695 = dma.smem_to_hbm %s4174_s16, 16, %s3693_s13, [#allocation5]  }
 0x6aa   :  { %4160 = dma.done.wait [#allocation4], 32  }
 0x6ab   :  { %4161 = vsyncadd [#allocation4], 4294967264 }
 0x6ac   :  { %4162 = dma.done.wait [#allocation8], 32  }
 0x6ad   :  { %4163 = vsyncadd [#allocation8], 4294967264 }
 0x6ae   :  { %4164 = dma.done.wait [#allocation5], 16  }
 0x6af   :  { %4165 = vsyncadd [#allocation5], 4294967280 }
 0x6b0   :  { %3708 = sfence }
 0x6b1   :  { %3709 = vsyncpa [#allocation3], 1 }
 0x6b2   :  { %3710 = vsyncpa [#allocation4], 1 }
 0x6b3   :  { %3711 = vsyncpa [#allocation8], 1 }
 0x6b4   :  { %3712 = vsyncpa [#allocation5], 1 }

</bundles_post_ra>
